<compile_context>
chip_gen: v7x
topology: tpu7x:2x2x1
jax: 0.10.0
libtpu: 0.0.40
codegen_flags: <defaults>
</compile_context>

<pallas_src>
import functools
import math

import jax
import jax.numpy as jnp
from jax import lax
from jax.experimental import pallas as pl
from jax.experimental.pallas import tpu as pltpu


_VMEM_LIMIT = 32 * 1024 * 1024


# ---------------------------------------------------------------------------
# Kernel 1/2: transposed conv matmul  o = relu(W @ patches^T + b)
# ---------------------------------------------------------------------------
def _conv_t_kernel(a_ref, w_ref, b_ref, o_ref):
    # a: (K, TM) bf16 patch^T tile; w: (Cout, K) bf16; b: (Cout, 1) f32.
    acc = jnp.dot(w_ref[...], a_ref[...], preferred_element_type=jnp.float32)
    o_ref[...] = jnp.maximum(acc + b_ref[...], 0.0).astype(o_ref.dtype)


def _pick_m_tile(m, cap=4096):
    cands = [t for t in range(128, m + 1, 128) if m % t == 0 and t <= cap]
    return max(cands) if cands else m


def conv_transposed(patches_t, w_mat, bias):
    """(Cout, K) @ (K, M) + b, ReLU.  Lane-dense (Cout, M) bf16 output."""
    cout, k = w_mat.shape
    m = patches_t.shape[1]
    tm = _pick_m_tile(m)
    return pl.pallas_call(
        _conv_t_kernel,
        grid=(m // tm,),
        in_specs=[pl.BlockSpec((k, tm), lambda i: (0, i)),
                  pl.BlockSpec((cout, k), lambda i: (0, 0)),
                  pl.BlockSpec((cout, 1), lambda i: (0, 0))],
        out_specs=pl.BlockSpec((cout, tm), lambda i: (0, i)),
        out_shape=jax.ShapeDtypeStruct((cout, m), jnp.bfloat16),
        compiler_params=pltpu.CompilerParams(
            dimension_semantics=("parallel",),
            vmem_limit_bytes=_VMEM_LIMIT),
    )(patches_t.astype(jnp.bfloat16), w_mat.astype(jnp.bfloat16),
      bias.reshape(cout, 1).astype(jnp.float32))


# ---------------------------------------------------------------------------
# Kernel 3: fused tail (CNN attention tail + 2-layer LSTM + temporal attn + fc)
# ---------------------------------------------------------------------------
def _tail_kernel(f_sa_ref, sa_w_ref, sa_b_ref, rd_w_ref, rd_b_ref,
                 x_ref, wih0_ref, b0_ref, whh0_ref,
                 wih1_ref, b1_ref, whh1_ref,
                 ta_w1_ref, ta_b1_ref, ta_w2_ref, ta_b2_ref,
                 fc_w_ref, fc_b_ref, o_ref, *, batch, seq, hidden):
    f32 = jnp.float32

    # ---- CNN tail: 1x1x1-conv sigmoid gate, gated adaptive avg pool, reduce_dim
    f = f_sa_ref[...].astype(f32)                                   # (B*S, C)
    att = jax.nn.sigmoid(
        jnp.dot(f, sa_w_ref[...], preferred_element_type=f32) + sa_b_ref[...])
    gated = f * att
    s = f.shape[0] // batch
    pooled = jnp.concatenate(
        [jnp.mean(gated[b * s:(b + 1) * s], axis=0, keepdims=True)
         for b in range(batch)], axis=0)                            # (B, C)
    cnn_feats = jnp.maximum(
        jnp.dot(pooled, rd_w_ref[...], preferred_element_type=f32) + rd_b_ref[...],
        0.0)                                                        # (B, 32)

    # ---- LSTM layer-0 input projection for all timesteps (bf16 MXU, f32 acc)
    gx0 = jnp.dot(x_ref[...], wih0_ref[...],
                  preferred_element_type=f32) + b0_ref[...]         # (T*B, 4H)

    # ---- two-layer LSTM recurrence, fully unrolled over time (no T-grid)
    whh0 = whh0_ref[...]
    wih1 = wih1_ref[...]
    whh1 = whh1_ref[...]
    b1g = b1_ref[...]
    h0 = jnp.zeros((batch, hidden), f32)
    c0 = jnp.zeros((batch, hidden), f32)
    h1 = jnp.zeros((batch, hidden), f32)
    c1 = jnp.zeros((batch, hidden), f32)

    def cell(gates, c_prev):
        i = jax.nn.sigmoid(gates[:, 0 * hidden:1 * hidden])
        fg = jax.nn.sigmoid(gates[:, 1 * hidden:2 * hidden])
        g = jnp.tanh(gates[:, 2 * hidden:3 * hidden])
        o = jax.nn.sigmoid(gates[:, 3 * hidden:4 * hidden])
        c = fg * c_prev + i * g
        return o * jnp.tanh(c), c

    hs = []
    for t in range(seq):
        g0 = gx0[t * batch:(t + 1) * batch] + jnp.dot(
            h0, whh0, preferred_element_type=f32)
        h0, c0 = cell(g0, c0)
        # TODO(synk): inter-layer LSTM dropout is training-only; identity in eval mode.
        g1 = (jnp.dot(h0, wih1, preferred_element_type=f32) + b1g
              + jnp.dot(h1, whh1, preferred_element_type=f32))
        h1, c1 = cell(g1, c1)
        hs.append(h1)

    # ---- temporal attention over the hidden states (still in vregs)
    scores = []
    for t in range(seq):
        z = jnp.maximum(
            jnp.dot(hs[t], ta_w1_ref[...], preferred_element_type=f32)
            + ta_b1_ref[...], 0.0)
        scores.append(jnp.dot(z, ta_w2_ref[...], preferred_element_type=f32)
                      + ta_b2_ref[...])
    sc = jnp.concatenate(scores, axis=1)                            # (B, T)
    sc = sc - jnp.max(sc, axis=1, keepdims=True)
    e = jnp.exp(sc)
    a = e / jnp.sum(e, axis=1, keepdims=True)
    lstm_feats = sum(a[:, t:t + 1] * hs[t] for t in range(seq))     # (B, H)

    # ---- fusion + fc + sigmoid (dropout = identity in eval mode)
    fused = jnp.concatenate([cnn_feats, lstm_feats], axis=1)        # (B, 32+H)
    logits = jnp.dot(fused, fc_w_ref[...], preferred_element_type=f32) + fc_b_ref[...]
    o_ref[...] = jax.nn.sigmoid(logits).astype(o_ref.dtype)


def fused_tail(f_sa, params, x_seq, batch, seq, hidden, output_size):
    f32 = jnp.float32
    kernel = functools.partial(_tail_kernel, batch=batch, seq=seq, hidden=hidden)
    return pl.pallas_call(
        kernel,
        out_shape=jax.ShapeDtypeStruct((batch, output_size), jnp.float32),
        compiler_params=pltpu.CompilerParams(vmem_limit_bytes=_VMEM_LIMIT),
    )(
        f_sa,                                                       # (B*S, 32)
        params["sa_w"].reshape(1, 32).T.astype(f32),                # (32, 1)
        params["sa_b"].reshape(1, 1).astype(f32),
        params["rd_w"].T.astype(f32),                               # (32, 32)
        params["rd_b"].reshape(1, -1).astype(f32),
        x_seq.astype(jnp.bfloat16),                                 # (T*B, F)
        params["w_ih_l0"].T.astype(jnp.bfloat16),                   # (F, 4H)
        (params["b_ih_l0"] + params["b_hh_l0"]).reshape(1, -1).astype(f32),
        params["w_hh_l0"].T.astype(f32),                            # (H, 4H)
        params["w_ih_l1"].T.astype(f32),                            # (H, 4H)
        (params["b_ih_l1"] + params["b_hh_l1"]).reshape(1, -1).astype(f32),
        params["w_hh_l1"].T.astype(f32),                            # (H, 4H)
        params["ta_w1"].T.astype(f32),                              # (H, H//2)
        params["ta_b1"].reshape(1, -1).astype(f32),
        params["ta_w2"].T.astype(f32),                              # (H//2, 1)
        params["ta_b2"].reshape(1, 1).astype(f32),
        params["fc_w"].T.astype(f32),                               # (32+H, out)
        params["fc_b"].reshape(1, -1).astype(f32),
    )


# ---------------------------------------------------------------------------
# XLA glue (patch extraction / pooling / layout) + full forward
# ---------------------------------------------------------------------------
def cnn_lstm_attention_forward(params, x, hidden_size=32):
    """x: (batch, seq_len, 5000). Eval-mode forward (all dropout = identity)."""
    B, T, F = x.shape
    H = hidden_size
    output_size = params["fc_b"].shape[0]

    # ----- CNN branch (channel-first, spatial flattened on the lane axis) -----
    x_cnn = x[:, :-1].reshape(B, T - 1, 50, 100, 1).astype(jnp.bfloat16)  # NDHWC, C=1
    # im2col as one XLA patches op; output 'C' is the (cin,kd,kh,kw) patch axis,
    # emitted leading so the patch matrix arrives already transposed (K, M).
    p1 = lax.conv_general_dilated_patches(
        x_cnn, filter_shape=(2, 5, 5), window_strides=(1, 2, 2), padding="VALID",
        dimension_numbers=("NDHWC", "DHWIO", "CNDHW"))                # (50, B, 4, 23, 48)
    do1, ho1, wo1 = p1.shape[2:]
    patches1_t = p1.reshape(50, B * do1 * ho1 * wo1)
    c1 = conv_transposed(patches1_t, params["conv1_w"].reshape(16, -1),
                         params["conv1_b"])                           # (16, M1)
    c1 = c1.reshape(16, B, do1, ho1, wo1)

    # MaxPool3d((1,2,2)), floor mode, on the (C,B,D,H,W) layout — reshape/max glue.
    hp1, wp1 = ho1 // 2, wo1 // 2
    c1 = c1[:, :, :, :hp1 * 2, :wp1 * 2].reshape(
        16, B, do1, hp1, 2, wp1, 2).max(axis=(4, 6))                  # (16,B,4,11,24)

    p2 = lax.conv_general_dilated_patches(
        c1, filter_shape=(2, 3, 3), window_strides=(1, 2, 2), padding="VALID",
        dimension_numbers=("CNDHW", "DHWIO", "CNDHW"))                # (288, B, 3, 5, 11)
    do2, ho2, wo2 = p2.shape[2:]
    patches2_t = p2.reshape(16 * 18, B * do2 * ho2 * wo2)
    c2 = conv_transposed(patches2_t, params["conv2_w"].reshape(32, -1),
                         params["conv2_b"])                           # (32, M2)
    c2 = c2.reshape(32, B, do2, ho2, wo2)

    hp2, wp2 = ho2 // 2, wo2 // 2
    c2 = c2[:, :, :, :hp2 * 2, :wp2 * 2].reshape(
        32, B, do2, hp2, 2, wp2, 2).max(axis=(4, 6))                  # (32,B,3,2,5)
    S = do2 * hp2 * wp2
    f_sa = c2.reshape(32, B * S).T                                    # (B*S, 32), rows=(b,s)

    # ----- LSTM branch input (time-major rows for the fused tail) -----
    x_seq = x.transpose(1, 0, 2).reshape(T * B, F)

    return fused_tail(f_sa, params, x_seq, B, T, H, output_size)


# ---------------------------------------------------------------------------
# Parameter init (matches PyTorch module's shapes; eval-mode forward)
# ---------------------------------------------------------------------------
def init_params(key, input_size, hidden_size, output_size):
    def u(k, shape, fan_in):
        bound = 1.0 / math.sqrt(fan_in)
        return jax.random.uniform(k, shape, jnp.float32, -bound, bound)

    ks = jax.random.split(key, 22)
    H = hidden_size
    p = {}
    p["conv1_w"] = u(ks[0], (16, 1, 2, 5, 5), 1 * 2 * 5 * 5)
    p["conv1_b"] = u(ks[1], (16,), 1 * 2 * 5 * 5)
    p["conv2_w"] = u(ks[2], (32, 16, 2, 3, 3), 16 * 2 * 3 * 3)
    p["conv2_b"] = u(ks[3], (32,), 16 * 2 * 3 * 3)
    p["sa_w"] = u(ks[4], (1, 32, 1, 1, 1), 32)
    p["sa_b"] = u(ks[5], (1,), 32)
    p["w_ih_l0"] = u(ks[6], (4 * H, input_size), H)
    p["w_hh_l0"] = u(ks[7], (4 * H, H), H)
    p["b_ih_l0"] = u(ks[8], (4 * H,), H)
    p["b_hh_l0"] = u(ks[9], (4 * H,), H)
    p["w_ih_l1"] = u(ks[10], (4 * H, H), H)
    p["w_hh_l1"] = u(ks[11], (4 * H, H), H)
    p["b_ih_l1"] = u(ks[12], (4 * H,), H)
    p["b_hh_l1"] = u(ks[13], (4 * H,), H)
    p["ta_w1"] = u(ks[14], (H // 2, H), H)
    p["ta_b1"] = u(ks[15], (H // 2,), H)
    p["ta_w2"] = u(ks[16], (1, H // 2), H // 2)
    p["ta_b2"] = u(ks[17], (1,), H // 2)
    p["rd_w"] = u(ks[18], (32, 32), 32)
    p["rd_b"] = u(ks[19], (32,), 32)
    p["fc_w"] = u(ks[20], (output_size, 32 + H), 32 + H)
    p["fc_b"] = u(ks[21], (output_size,), 32 + H)
    return p


if __name__ == "__main__":
    key = jax.random.PRNGKey(0)
    kx, kp = jax.random.split(key)

    batch, seq_len, feat = 2, 6, 5000          # feat must be 50*100 per the module
    hidden_size, output_size = 32, 4

    x = jax.random.normal(kx, (batch, seq_len, feat), jnp.float32)
    params = init_params(kp, input_size=feat, hidden_size=hidden_size,
                         output_size=output_size)

    fwd = jax.jit(functools.partial(cnn_lstm_attention_forward,
                                    hidden_size=hidden_size))
    out = fwd(params, x)
    jax.block_until_ready(out)
    assert out.shape == (batch, output_size)
    assert bool(jnp.all(jnp.isfinite(out)))
    print("KERNEL_OK")
</pallas_src>

<mosaic_0001>
module attributes {stable_mosaic.version = 11 : i64} {
  func.func @_conv_t_kernel(%arg0: i32, %arg1: memref<50x2944xbf16, #tpu.memory_space<vmem>>, %arg2: memref<16x50xbf16, #tpu.memory_space<vmem>>, %arg3: memref<16x1xf32, #tpu.memory_space<vmem>>, %arg4: memref<16x2944xbf16, #tpu.memory_space<vmem>>) attributes {dimension_semantics = [#tpu.dimension_semantics<parallel>], iteration_bounds = array<i64: 3>, scalar_prefetch = 0 : i64, scratch_operands = 0 : i64, tpu.core_type = #tpu.core_type<tc>, window_params = [{transform_indices = @transform_0, window_bounds = array<i64: 50, 2944>}, {pipeline_mode = #tpu.pipeline_mode<synchronous>, transform_indices = @transform_1, window_bounds = array<i64: 16, 50>}, {pipeline_mode = #tpu.pipeline_mode<synchronous>, transform_indices = @transform_2, window_bounds = array<i64: 16, 1>}, {transform_indices = @transform_3, window_bounds = array<i64: 16, 2944>}]} {
    %c0 = arith.constant 0 : index
    %c0_0 = arith.constant 0 : index
    %0 = vector.load %arg2[%c0, %c0_0] : memref<16x50xbf16, #tpu.memory_space<vmem>>, vector<16x50xbf16>
    %c0_1 = arith.constant 0 : index
    %c0_2 = arith.constant 0 : index
    %1 = vector.load %arg1[%c0_1, %c0_2] : memref<50x2944xbf16, #tpu.memory_space<vmem>>, vector<50x2944xbf16>
    %cst = arith.constant dense<0.000000e+00> : vector<16x2944xf32>
    %2 = tpu.matmul %0, %1, %cst {dimension_numbers = #tpu.dot_dimension_numbers<[1], [0], [0], [1], [0, 0, 1, 1], [], []>} : vector<16x50xbf16>, vector<50x2944xbf16>, vector<16x2944xf32> -> vector<16x2944xf32>
    %c0_3 = arith.constant 0 : index
    %c0_4 = arith.constant 0 : index
    %3 = vector.load %arg3[%c0_3, %c0_4] : memref<16x1xf32, #tpu.memory_space<vmem>>, vector<16x1xf32>
    %4 = vector.broadcast %3 : vector<16x1xf32> to vector<16x2944xf32>
    %5 = arith.addf %2, %4 : vector<16x2944xf32>
    %cst_5 = arith.constant 0.000000e+00 : f32
    %6 = vector.broadcast %cst_5 : f32 to vector<16x2944xf32>
    %7 = arith.maximumf %5, %6 : vector<16x2944xf32>
    %8 = arith.truncf %7 : vector<16x2944xf32> to vector<16x2944xbf16>
    %c0_6 = arith.constant 0 : index
    %c0_7 = arith.constant 0 : index
    %9 = vector.load %arg4[%c0_6, %c0_7] : memref<16x2944xbf16, #tpu.memory_space<vmem>>, vector<16x2944xbf16>
    tpu.vector_store %arg4[%c0_6, %c0_7], %8 {strides = array<i32>} : memref<16x2944xbf16, #tpu.memory_space<vmem>>, vector<16x2944xbf16>,
    return
  }
  func.func @transform_0(%arg0: i32) -> (i32, i32) {
    %c0_i32 = arith.constant 0 : i32
    %c0_i32_0 = arith.constant 0 : i32
    return %c0_i32, %arg0 : i32, i32
  }
  func.func @transform_1(%arg0: i32) -> (i32, i32) {
    %c0_i32 = arith.constant 0 : i32
    %c0_i32_0 = arith.constant 0 : i32
    %c0_i32_1 = arith.constant 0 : i32
    return %c0_i32, %c0_i32_0 : i32, i32
  }
  func.func @transform_2(%arg0: i32) -> (i32, i32) {
    %c0_i32 = arith.constant 0 : i32
    %c0_i32_0 = arith.constant 0 : i32
    %c0_i32_1 = arith.constant 0 : i32
    return %c0_i32, %c0_i32_0 : i32, i32
  }
  func.func @transform_3(%arg0: i32) -> (i32, i32) {
    %c0_i32 = arith.constant 0 : i32
    %c0_i32_0 = arith.constant 0 : i32
    return %c0_i32, %arg0 : i32, i32
  }
}

module attributes {stable_mosaic.version = 11 : i64} {
  func.func @_conv_t_kernel(%arg0: i32, %arg1: memref<288x330xbf16, #tpu.memory_space<vmem>>, %arg2: memref<32x288xbf16, #tpu.memory_space<vmem>>, %arg3: memref<32x1xf32, #tpu.memory_space<vmem>>, %arg4: memref<32x330xbf16, #tpu.memory_space<vmem>>) attributes {dimension_semantics = [#tpu.dimension_semantics<parallel>], iteration_bounds = array<i64: 1>, scalar_prefetch = 0 : i64, scratch_operands = 0 : i64, tpu.core_type = #tpu.core_type<tc>, window_params = [{transform_indices = @transform_0, window_bounds = array<i64: 288, 330>}, {pipeline_mode = #tpu.pipeline_mode<synchronous>, transform_indices = @transform_1, window_bounds = array<i64: 32, 288>}, {pipeline_mode = #tpu.pipeline_mode<synchronous>, transform_indices = @transform_2, window_bounds = array<i64: 32, 1>}, {transform_indices = @transform_3, window_bounds = array<i64: 32, 330>}]} {
    %c0 = arith.constant 0 : index
    %c0_0 = arith.constant 0 : index
    %0 = vector.load %arg2[%c0, %c0_0] : memref<32x288xbf16, #tpu.memory_space<vmem>>, vector<32x288xbf16>
    %c0_1 = arith.constant 0 : index
    %c0_2 = arith.constant 0 : index
    %1 = vector.load %arg1[%c0_1, %c0_2] : memref<288x330xbf16, #tpu.memory_space<vmem>>, vector<288x330xbf16>
    %cst = arith.constant dense<0.000000e+00> : vector<32x330xf32>
    %2 = tpu.matmul %0, %1, %cst {dimension_numbers = #tpu.dot_dimension_numbers<[1], [0], [0], [1], [0, 0, 1, 1], [], []>} : vector<32x288xbf16>, vector<288x330xbf16>, vector<32x330xf32> -> vector<32x330xf32>
    %c0_3 = arith.constant 0 : index
    %c0_4 = arith.constant 0 : index
    %3 = vector.load %arg3[%c0_3, %c0_4] : memref<32x1xf32, #tpu.memory_space<vmem>>, vector<32x1xf32>
    %4 = vector.broadcast %3 : vector<32x1xf32> to vector<32x330xf32>
    %5 = arith.addf %2, %4 : vector<32x330xf32>
    %cst_5 = arith.constant 0.000000e+00 : f32
    %6 = vector.broadcast %cst_5 : f32 to vector<32x330xf32>
    %7 = arith.maximumf %5, %6 : vector<32x330xf32>
    %8 = arith.truncf %7 : vector<32x330xf32> to vector<32x330xbf16>
    %c0_6 = arith.constant 0 : index
    %c0_7 = arith.constant 0 : index
    %9 = vector.load %arg4[%c0_6, %c0_7] : memref<32x330xbf16, #tpu.memory_space<vmem>>, vector<32x330xbf16>
    tpu.vector_store %arg4[%c0_6, %c0_7], %8 {strides = array<i32>} : memref<32x330xbf16, #tpu.memory_space<vmem>>, vector<32x330xbf16>,
    return
  }
  func.func @transform_0(%arg0: i32) -> (i32, i32) {
    %c0_i32 = arith.constant 0 : i32
    %c0_i32_0 = arith.constant 0 : i32
    return %c0_i32, %arg0 : i32, i32
  }
  func.func @transform_1(%arg0: i32) -> (i32, i32) {
    %c0_i32 = arith.constant 0 : i32
    %c0_i32_0 = arith.constant 0 : i32
    %c0_i32_1 = arith.constant 0 : i32
    return %c0_i32, %c0_i32_0 : i32, i32
  }
  func.func @transform_2(%arg0: i32) -> (i32, i32) {
    %c0_i32 = arith.constant 0 : i32
    %c0_i32_0 = arith.constant 0 : i32
    %c0_i32_1 = arith.constant 0 : i32
    return %c0_i32, %c0_i32_0 : i32, i32
  }
  func.func @transform_3(%arg0: i32) -> (i32, i32) {
    %c0_i32 = arith.constant 0 : i32
    %c0_i32_0 = arith.constant 0 : i32
    return %c0_i32, %arg0 : i32, i32
  }
}

module attributes {stable_mosaic.version = 11 : i64} {
  func.func @_tail_kernel(%arg0: memref<60x32xbf16, #tpu.memory_space<vmem>>, %arg1: memref<32x1xf32, #tpu.memory_space<vmem>>, %arg2: memref<1x1xf32, #tpu.memory_space<vmem>>, %arg3: memref<32x32xf32, #tpu.memory_space<vmem>>, %arg4: memref<1x32xf32, #tpu.memory_space<vmem>>, %arg5: memref<12x5000xbf16, #tpu.memory_space<vmem>>, %arg6: memref<5000x128xbf16, #tpu.memory_space<vmem>>, %arg7: memref<1x128xf32, #tpu.memory_space<vmem>>, %arg8: memref<32x128xf32, #tpu.memory_space<vmem>>, %arg9: memref<32x128xf32, #tpu.memory_space<vmem>>, %arg10: memref<1x128xf32, #tpu.memory_space<vmem>>, %arg11: memref<32x128xf32, #tpu.memory_space<vmem>>, %arg12: memref<32x16xf32, #tpu.memory_space<vmem>>, %arg13: memref<1x16xf32, #tpu.memory_space<vmem>>, %arg14: memref<16x1xf32, #tpu.memory_space<vmem>>, %arg15: memref<1x1xf32, #tpu.memory_space<vmem>>, %arg16: memref<64x4xf32, #tpu.memory_space<vmem>>, %arg17: memref<1x4xf32, #tpu.memory_space<vmem>>, %arg18: memref<2x4xf32, #tpu.memory_space<vmem>>) attributes {dimension_semantics = [], scalar_prefetch = 0 : i64, scratch_operands = 0 : i64, tpu.core_type = #tpu.core_type<tc>} {
    %c0 = arith.constant 0 : index
    %c0_0 = arith.constant 0 : index
    %0 = vector.load %arg0[%c0, %c0_0] : memref<60x32xbf16, #tpu.memory_space<vmem>>, vector<60x32xbf16>
    %1 = arith.extf %0 : vector<60x32xbf16> to vector<60x32xf32>
    %c0_1 = arith.constant 0 : index
    %c0_2 = arith.constant 0 : index
    %2 = vector.load %arg1[%c0_1, %c0_2] : memref<32x1xf32, #tpu.memory_space<vmem>>, vector<32x1xf32>
    %cst = arith.constant dense<0.000000e+00> : vector<60x1xf32>
    %3 = tpu.matmul %1, %2, %cst {dimension_numbers = #tpu.dot_dimension_numbers<[1], [0], [0], [1], [0, 0, 1, 1], [], []>} : vector<60x32xf32>, vector<32x1xf32>, vector<60x1xf32> -> vector<60x1xf32>
    %c0_3 = arith.constant 0 : index
    %c0_4 = arith.constant 0 : index
    %4 = vector.load %arg2[%c0_3, %c0_4] : memref<1x1xf32, #tpu.memory_space<vmem>>, vector<1x1xf32>
    %5 = vector.broadcast %4 : vector<1x1xf32> to vector<60x1xf32>
    %6 = arith.addf %3, %5 : vector<60x1xf32>
    %7 = arith.negf %6 : vector<60x1xf32>
    %8 = math.exp %7 : vector<60x1xf32>
    %cst_5 = arith.constant 1.000000e+00 : f32
    %9 = vector.broadcast %cst_5 : f32 to vector<60x1xf32>
    %10 = arith.addf %9, %8 : vector<60x1xf32>
    %11 = arith.divf %9, %10 : vector<60x1xf32>
    %12 = vector.broadcast %11 : vector<60x1xf32> to vector<60x32xf32>
    %13 = arith.mulf %1, %12 : vector<60x32xf32>
    %14 = vector.extract_strided_slice %13 {offsets = [0, 0], sizes = [30, 32], strides = [1, 1]} : vector<60x32xf32> to vector<30x32xf32>
    %cst_6 = arith.constant dense<0.000000e+00> : vector<32xf32>
    %15 = vector.multi_reduction <add>, %14, %cst_6 [0] : vector<30x32xf32> to vector<32xf32>
    %16 = vector.shape_cast %15 : vector<32xf32> to vector<1x32xf32>
    %cst_7 = arith.constant 3.000000e+01 : f32
    %17 = vector.broadcast %cst_7 : f32 to vector<1x32xf32>
    %18 = arith.divf %16, %17 : vector<1x32xf32>
    %19 = vector.extract_strided_slice %13 {offsets = [30, 0], sizes = [30, 32], strides = [1, 1]} : vector<60x32xf32> to vector<30x32xf32>
    %cst_8 = arith.constant dense<0.000000e+00> : vector<32xf32>
    %20 = vector.multi_reduction <add>, %19, %cst_8 [0] : vector<30x32xf32> to vector<32xf32>
    %21 = vector.shape_cast %20 : vector<32xf32> to vector<1x32xf32>
    %cst_9 = arith.constant 3.000000e+01 : f32
    %22 = vector.broadcast %cst_9 : f32 to vector<1x32xf32>
    %23 = arith.divf %21, %22 : vector<1x32xf32>
    %24 = tpu.concatenate %18, %23 in 0 : vector<1x32xf32>, vector<1x32xf32> -> vector<2x32xf32>
    %c0_10 = arith.constant 0 : index
    %c0_11 = arith.constant 0 : index
    %25 = vector.load %arg3[%c0_10, %c0_11] : memref<32x32xf32, #tpu.memory_space<vmem>>, vector<32x32xf32>
    %cst_12 = arith.constant dense<0.000000e+00> : vector<2x32xf32>
    %26 = tpu.matmul %24, %25, %cst_12 {dimension_numbers = #tpu.dot_dimension_numbers<[1], [0], [0], [1], [0, 0, 1, 1], [], []>} : vector<2x32xf32>, vector<32x32xf32>, vector<2x32xf32> -> vector<2x32xf32>
    %c0_13 = arith.constant 0 : index
    %c0_14 = arith.constant 0 : index
    %27 = vector.load %arg4[%c0_13, %c0_14] : memref<1x32xf32, #tpu.memory_space<vmem>>, vector<1x32xf32>
    %28 = vector.broadcast %27 : vector<1x32xf32> to vector<2x32xf32>
    %29 = arith.addf %26, %28 : vector<2x32xf32>
    %cst_15 = arith.constant 0.000000e+00 : f32
    %30 = vector.broadcast %cst_15 : f32 to vector<2x32xf32>
    %31 = arith.maximumf %29, %30 : vector<2x32xf32>
    %c0_16 = arith.constant 0 : index
    %c0_17 = arith.constant 0 : index
    %32 = vector.load %arg5[%c0_16, %c0_17] : memref<12x5000xbf16, #tpu.memory_space<vmem>>, vector<12x5000xbf16>
    %c0_18 = arith.constant 0 : index
    %c0_19 = arith.constant 0 : index
    %33 = vector.load %arg6[%c0_18, %c0_19] : memref<5000x128xbf16, #tpu.memory_space<vmem>>, vector<5000x128xbf16>
    %cst_20 = arith.constant dense<0.000000e+00> : vector<12x128xf32>
    %34 = tpu.matmul %32, %33, %cst_20 {dimension_numbers = #tpu.dot_dimension_numbers<[1], [0], [0], [1], [0, 0, 1, 1], [], []>} : vector<12x5000xbf16>, vector<5000x128xbf16>, vector<12x128xf32> -> vector<12x128xf32>
    %c0_21 = arith.constant 0 : index
    %c0_22 = arith.constant 0 : index
    %35 = vector.load %arg7[%c0_21, %c0_22] : memref<1x128xf32, #tpu.memory_space<vmem>>, vector<1x128xf32>
    %36 = vector.broadcast %35 : vector<1x128xf32> to vector<12x128xf32>
    %37 = arith.addf %34, %36 : vector<12x128xf32>
    %c0_23 = arith.constant 0 : index
    %c0_24 = arith.constant 0 : index
    %38 = vector.load %arg8[%c0_23, %c0_24] : memref<32x128xf32, #tpu.memory_space<vmem>>, vector<32x128xf32>
    %c0_25 = arith.constant 0 : index
    %c0_26 = arith.constant 0 : index
    %39 = vector.load %arg9[%c0_25, %c0_26] : memref<32x128xf32, #tpu.memory_space<vmem>>, vector<32x128xf32>
    %c0_27 = arith.constant 0 : index
    %c0_28 = arith.constant 0 : index
    %40 = vector.load %arg11[%c0_27, %c0_28] : memref<32x128xf32, #tpu.memory_space<vmem>>, vector<32x128xf32>
    %c0_29 = arith.constant 0 : index
    %c0_30 = arith.constant 0 : index
    %41 = vector.load %arg10[%c0_29, %c0_30] : memref<1x128xf32, #tpu.memory_space<vmem>>, vector<1x128xf32>
    %cst_31 = arith.constant 0.000000e+00 : f32
    %42 = vector.broadcast %cst_31 : f32 to vector<2x32xf32>
    %cst_32 = arith.constant 0.000000e+00 : f32
    %43 = vector.broadcast %cst_32 : f32 to vector<2x32xf32>
    %cst_33 = arith.constant 0.000000e+00 : f32
    %44 = vector.broadcast %cst_33 : f32 to vector<2x32xf32>
    %cst_34 = arith.constant 0.000000e+00 : f32
    %45 = vector.broadcast %cst_34 : f32 to vector<2x32xf32>
    %46 = vector.extract_strided_slice %37 {offsets = [0, 0], sizes = [2, 128], strides = [1, 1]} : vector<12x128xf32> to vector<2x128xf32>
    %cst_35 = arith.constant dense<0.000000e+00> : vector<2x128xf32>
    %47 = tpu.matmul %42, %38, %cst_35 {dimension_numbers = #tpu.dot_dimension_numbers<[1], [0], [0], [1], [0, 0, 1, 1], [], []>} : vector<2x32xf32>, vector<32x128xf32>, vector<2x128xf32> -> vector<2x128xf32>
    %48 = arith.addf %46, %47 : vector<2x128xf32>
    %49 = vector.extract_strided_slice %48 {offsets = [0, 0], sizes = [2, 32], strides = [1, 1]} : vector<2x128xf32> to vector<2x32xf32>
    %50 = arith.negf %49 : vector<2x32xf32>
    %51 = math.exp %50 : vector<2x32xf32>
    %cst_36 = arith.constant 1.000000e+00 : f32
    %52 = vector.broadcast %cst_36 : f32 to vector<2x32xf32>
    %53 = arith.addf %52, %51 : vector<2x32xf32>
    %54 = arith.divf %52, %53 : vector<2x32xf32>
    %55 = vector.extract_strided_slice %48 {offsets = [0, 32], sizes = [2, 32], strides = [1, 1]} : vector<2x128xf32> to vector<2x32xf32>
    %56 = arith.negf %55 : vector<2x32xf32>
    %57 = math.exp %56 : vector<2x32xf32>
    %cst_37 = arith.constant 1.000000e+00 : f32
    %58 = vector.broadcast %cst_37 : f32 to vector<2x32xf32>
    %59 = arith.addf %58, %57 : vector<2x32xf32>
    %60 = arith.divf %58, %59 : vector<2x32xf32>
    %61 = vector.extract_strided_slice %48 {offsets = [0, 64], sizes = [2, 32], strides = [1, 1]} : vector<2x128xf32> to vector<2x32xf32>
    %62 = math.tanh %61 : vector<2x32xf32>
    %63 = vector.extract_strided_slice %48 {offsets = [0, 96], sizes = [2, 32], strides = [1, 1]} : vector<2x128xf32> to vector<2x32xf32>
    %64 = arith.negf %63 : vector<2x32xf32>
    %65 = math.exp %64 : vector<2x32xf32>
    %cst_38 = arith.constant 1.000000e+00 : f32
    %66 = vector.broadcast %cst_38 : f32 to vector<2x32xf32>
    %67 = arith.addf %66, %65 : vector<2x32xf32>
    %68 = arith.divf %66, %67 : vector<2x32xf32>
    %69 = arith.mulf %60, %43 : vector<2x32xf32>
    %70 = arith.mulf %54, %62 : vector<2x32xf32>
    %71 = arith.addf %69, %70 : vector<2x32xf32>
    %72 = math.tanh %71 : vector<2x32xf32>
    %73 = arith.mulf %68, %72 : vector<2x32xf32>
    %cst_39 = arith.constant dense<0.000000e+00> : vector<2x128xf32>
    %74 = tpu.matmul %73, %39, %cst_39 {dimension_numbers = #tpu.dot_dimension_numbers<[1], [0], [0], [1], [0, 0, 1, 1], [], []>} : vector<2x32xf32>, vector<32x128xf32>, vector<2x128xf32> -> vector<2x128xf32>
    %75 = vector.broadcast %41 : vector<1x128xf32> to vector<2x128xf32>
    %76 = arith.addf %74, %75 : vector<2x128xf32>
    %cst_40 = arith.constant dense<0.000000e+00> : vector<2x128xf32>
    %77 = tpu.matmul %44, %40, %cst_40 {dimension_numbers = #tpu.dot_dimension_numbers<[1], [0], [0], [1], [0, 0, 1, 1], [], []>} : vector<2x32xf32>, vector<32x128xf32>, vector<2x128xf32> -> vector<2x128xf32>
    %78 = arith.addf %76, %77 : vector<2x128xf32>
    %79 = vector.extract_strided_slice %78 {offsets = [0, 0], sizes = [2, 32], strides = [1, 1]} : vector<2x128xf32> to vector<2x32xf32>
    %80 = arith.negf %79 : vector<2x32xf32>
    %81 = math.exp %80 : vector<2x32xf32>
    %cst_41 = arith.constant 1.000000e+00 : f32
    %82 = vector.broadcast %cst_41 : f32 to vector<2x32xf32>
    %83 = arith.addf %82, %81 : vector<2x32xf32>
    %84 = arith.divf %82, %83 : vector<2x32xf32>
    %85 = vector.extract_strided_slice %78 {offsets = [0, 32], sizes = [2, 32], strides = [1, 1]} : vector<2x128xf32> to vector<2x32xf32>
    %86 = arith.negf %85 : vector<2x32xf32>
    %87 = math.exp %86 : vector<2x32xf32>
    %cst_42 = arith.constant 1.000000e+00 : f32
    %88 = vector.broadcast %cst_42 : f32 to vector<2x32xf32>
    %89 = arith.addf %88, %87 : vector<2x32xf32>
    %90 = arith.divf %88, %89 : vector<2x32xf32>
    %91 = vector.extract_strided_slice %78 {offsets = [0, 64], sizes = [2, 32], strides = [1, 1]} : vector<2x128xf32> to vector<2x32xf32>
    %92 = math.tanh %91 : vector<2x32xf32>
    %93 = vector.extract_strided_slice %78 {offsets = [0, 96], sizes = [2, 32], strides = [1, 1]} : vector<2x128xf32> to vector<2x32xf32>
    %94 = arith.negf %93 : vector<2x32xf32>
    %95 = math.exp %94 : vector<2x32xf32>
    %cst_43 = arith.constant 1.000000e+00 : f32
    %96 = vector.broadcast %cst_43 : f32 to vector<2x32xf32>
    %97 = arith.addf %96, %95 : vector<2x32xf32>
    %98 = arith.divf %96, %97 : vector<2x32xf32>
    %99 = arith.mulf %90, %45 : vector<2x32xf32>
    %100 = arith.mulf %84, %92 : vector<2x32xf32>
    %101 = arith.addf %99, %100 : vector<2x32xf32>
    %102 = math.tanh %101 : vector<2x32xf32>
    %103 = arith.mulf %98, %102 : vector<2x32xf32>
    %104 = vector.extract_strided_slice %37 {offsets = [2, 0], sizes = [2, 128], strides = [1, 1]} : vector<12x128xf32> to vector<2x128xf32>
    %cst_44 = arith.constant dense<0.000000e+00> : vector<2x128xf32>
    %105 = tpu.matmul %73, %38, %cst_44 {dimension_numbers = #tpu.dot_dimension_numbers<[1], [0], [0], [1], [0, 0, 1, 1], [], []>} : vector<2x32xf32>, vector<32x128xf32>, vector<2x128xf32> -> vector<2x128xf32>
    %106 = arith.addf %104, %105 : vector<2x128xf32>
    %107 = vector.extract_strided_slice %106 {offsets = [0, 0], sizes = [2, 32], strides = [1, 1]} : vector<2x128xf32> to vector<2x32xf32>
    %108 = arith.negf %107 : vector<2x32xf32>
    %109 = math.exp %108 : vector<2x32xf32>
    %cst_45 = arith.constant 1.000000e+00 : f32
    %110 = vector.broadcast %cst_45 : f32 to vector<2x32xf32>
    %111 = arith.addf %110, %109 : vector<2x32xf32>
    %112 = arith.divf %110, %111 : vector<2x32xf32>
    %113 = vector.extract_strided_slice %106 {offsets = [0, 32], sizes = [2, 32], strides = [1, 1]} : vector<2x128xf32> to vector<2x32xf32>
    %114 = arith.negf %113 : vector<2x32xf32>
    %115 = math.exp %114 : vector<2x32xf32>
    %cst_46 = arith.constant 1.000000e+00 : f32
    %116 = vector.broadcast %cst_46 : f32 to vector<2x32xf32>
    %117 = arith.addf %116, %115 : vector<2x32xf32>
    %118 = arith.divf %116, %117 : vector<2x32xf32>
    %119 = vector.extract_strided_slice %106 {offsets = [0, 64], sizes = [2, 32], strides = [1, 1]} : vector<2x128xf32> to vector<2x32xf32>
    %120 = math.tanh %119 : vector<2x32xf32>
    %121 = vector.extract_strided_slice %106 {offsets = [0, 96], sizes = [2, 32], strides = [1, 1]} : vector<2x128xf32> to vector<2x32xf32>
    %122 = arith.negf %121 : vector<2x32xf32>
    %123 = math.exp %122 : vector<2x32xf32>
    %cst_47 = arith.constant 1.000000e+00 : f32
    %124 = vector.broadcast %cst_47 : f32 to vector<2x32xf32>
    %125 = arith.addf %124, %123 : vector<2x32xf32>
    %126 = arith.divf %124, %125 : vector<2x32xf32>
    %127 = arith.mulf %118, %71 : vector<2x32xf32>
    %128 = arith.mulf %112, %120 : vector<2x32xf32>
    %129 = arith.addf %127, %128 : vector<2x32xf32>
    %130 = math.tanh %129 : vector<2x32xf32>
    %131 = arith.mulf %126, %130 : vector<2x32xf32>
    %cst_48 = arith.constant dense<0.000000e+00> : vector<2x128xf32>
    %132 = tpu.matmul %131, %39, %cst_48 {dimension_numbers = #tpu.dot_dimension_numbers<[1], [0], [0], [1], [0, 0, 1, 1], [], []>} : vector<2x32xf32>, vector<32x128xf32>, vector<2x128xf32> -> vector<2x128xf32>
    %133 = vector.broadcast %41 : vector<1x128xf32> to vector<2x128xf32>
    %134 = arith.addf %132, %133 : vector<2x128xf32>
    %cst_49 = arith.constant dense<0.000000e+00> : vector<2x128xf32>
    %135 = tpu.matmul %103, %40, %cst_49 {dimension_numbers = #tpu.dot_dimension_numbers<[1], [0], [0], [1], [0, 0, 1, 1], [], []>} : vector<2x32xf32>, vector<32x128xf32>, vector<2x128xf32> -> vector<2x128xf32>
    %136 = arith.addf %134, %135 : vector<2x128xf32>
    %137 = vector.extract_strided_slice %136 {offsets = [0, 0], sizes = [2, 32], strides = [1, 1]} : vector<2x128xf32> to vector<2x32xf32>
    %138 = arith.negf %137 : vector<2x32xf32>
    %139 = math.exp %138 : vector<2x32xf32>
    %cst_50 = arith.constant 1.000000e+00 : f32
    %140 = vector.broadcast %cst_50 : f32 to vector<2x32xf32>
    %141 = arith.addf %140, %139 : vector<2x32xf32>
    %142 = arith.divf %140, %141 : vector<2x32xf32>
    %143 = vector.extract_strided_slice %136 {offsets = [0, 32], sizes = [2, 32], strides = [1, 1]} : vector<2x128xf32> to vector<2x32xf32>
    %144 = arith.negf %143 : vector<2x32xf32>
    %145 = math.exp %144 : vector<2x32xf32>
    %cst_51 = arith.constant 1.000000e+00 : f32
    %146 = vector.broadcast %cst_51 : f32 to vector<2x32xf32>
    %147 = arith.addf %146, %145 : vector<2x32xf32>
    %148 = arith.divf %146, %147 : vector<2x32xf32>
    %149 = vector.extract_strided_slice %136 {offsets = [0, 64], sizes = [2, 32], strides = [1, 1]} : vector<2x128xf32> to vector<2x32xf32>
    %150 = math.tanh %149 : vector<2x32xf32>
    %151 = vector.extract_strided_slice %136 {offsets = [0, 96], sizes = [2, 32], strides = [1, 1]} : vector<2x128xf32> to vector<2x32xf32>
    %152 = arith.negf %151 : vector<2x32xf32>
    %153 = math.exp %152 : vector<2x32xf32>
    %cst_52 = arith.constant 1.000000e+00 : f32
    %154 = vector.broadcast %cst_52 : f32 to vector<2x32xf32>
    %155 = arith.addf %154, %153 : vector<2x32xf32>
    %156 = arith.divf %154, %155 : vector<2x32xf32>
    %157 = arith.mulf %148, %101 : vector<2x32xf32>
    %158 = arith.mulf %142, %150 : vector<2x32xf32>
    %159 = arith.addf %157, %158 : vector<2x32xf32>
    %160 = math.tanh %159 : vector<2x32xf32>
    %161 = arith.mulf %156, %160 : vector<2x32xf32>
    %162 = vector.extract_strided_slice %37 {offsets = [4, 0], sizes = [2, 128], strides = [1, 1]} : vector<12x128xf32> to vector<2x128xf32>
    %cst_53 = arith.constant dense<0.000000e+00> : vector<2x128xf32>
    %163 = tpu.matmul %131, %38, %cst_53 {dimension_numbers = #tpu.dot_dimension_numbers<[1], [0], [0], [1], [0, 0, 1, 1], [], []>} : vector<2x32xf32>, vector<32x128xf32>, vector<2x128xf32> -> vector<2x128xf32>
    %164 = arith.addf %162, %163 : vector<2x128xf32>
    %165 = vector.extract_strided_slice %164 {offsets = [0, 0], sizes = [2, 32], strides = [1, 1]} : vector<2x128xf32> to vector<2x32xf32>
    %166 = arith.negf %165 : vector<2x32xf32>
    %167 = math.exp %166 : vector<2x32xf32>
    %cst_54 = arith.constant 1.000000e+00 : f32
    %168 = vector.broadcast %cst_54 : f32 to vector<2x32xf32>
    %169 = arith.addf %168, %167 : vector<2x32xf32>
    %170 = arith.divf %168, %169 : vector<2x32xf32>
    %171 = vector.extract_strided_slice %164 {offsets = [0, 32], sizes = [2, 32], strides = [1, 1]} : vector<2x128xf32> to vector<2x32xf32>
    %172 = arith.negf %171 : vector<2x32xf32>
    %173 = math.exp %172 : vector<2x32xf32>
    %cst_55 = arith.constant 1.000000e+00 : f32
    %174 = vector.broadcast %cst_55 : f32 to vector<2x32xf32>
    %175 = arith.addf %174, %173 : vector<2x32xf32>
    %176 = arith.divf %174, %175 : vector<2x32xf32>
    %177 = vector.extract_strided_slice %164 {offsets = [0, 64], sizes = [2, 32], strides = [1, 1]} : vector<2x128xf32> to vector<2x32xf32>
    %178 = math.tanh %177 : vector<2x32xf32>
    %179 = vector.extract_strided_slice %164 {offsets = [0, 96], sizes = [2, 32], strides = [1, 1]} : vector<2x128xf32> to vector<2x32xf32>
    %180 = arith.negf %179 : vector<2x32xf32>
    %181 = math.exp %180 : vector<2x32xf32>
    %cst_56 = arith.constant 1.000000e+00 : f32
    %182 = vector.broadcast %cst_56 : f32 to vector<2x32xf32>
    %183 = arith.addf %182, %181 : vector<2x32xf32>
    %184 = arith.divf %182, %183 : vector<2x32xf32>
    %185 = arith.mulf %176, %129 : vector<2x32xf32>
    %186 = arith.mulf %170, %178 : vector<2x32xf32>
    %187 = arith.addf %185, %186 : vector<2x32xf32>
    %188 = math.tanh %187 : vector<2x32xf32>
    %189 = arith.mulf %184, %188 : vector<2x32xf32>
    %cst_57 = arith.constant dense<0.000000e+00> : vector<2x128xf32>
    %190 = tpu.matmul %189, %39, %cst_57 {dimension_numbers = #tpu.dot_dimension_numbers<[1], [0], [0], [1], [0, 0, 1, 1], [], []>} : vector<2x32xf32>, vector<32x128xf32>, vector<2x128xf32> -> vector<2x128xf32>
    %191 = vector.broadcast %41 : vector<1x128xf32> to vector<2x128xf32>
    %192 = arith.addf %190, %191 : vector<2x128xf32>
    %cst_58 = arith.constant dense<0.000000e+00> : vector<2x128xf32>
    %193 = tpu.matmul %161, %40, %cst_58 {dimension_numbers = #tpu.dot_dimension_numbers<[1], [0], [0], [1], [0, 0, 1, 1], [], []>} : vector<2x32xf32>, vector<32x128xf32>, vector<2x128xf32> -> vector<2x128xf32>
    %194 = arith.addf %192, %193 : vector<2x128xf32>
    %195 = vector.extract_strided_slice %194 {offsets = [0, 0], sizes = [2, 32], strides = [1, 1]} : vector<2x128xf32> to vector<2x32xf32>
    %196 = arith.negf %195 : vector<2x32xf32>
    %197 = math.exp %196 : vector<2x32xf32>
    %cst_59 = arith.constant 1.000000e+00 : f32
    %198 = vector.broadcast %cst_59 : f32 to vector<2x32xf32>
    %199 = arith.addf %198, %197 : vector<2x32xf32>
    %200 = arith.divf %198, %199 : vector<2x32xf32>
    %201 = vector.extract_strided_slice %194 {offsets = [0, 32], sizes = [2, 32], strides = [1, 1]} : vector<2x128xf32> to vector<2x32xf32>
    %202 = arith.negf %201 : vector<2x32xf32>
    %203 = math.exp %202 : vector<2x32xf32>
    %cst_60 = arith.constant 1.000000e+00 : f32
    %204 = vector.broadcast %cst_60 : f32 to vector<2x32xf32>
    %205 = arith.addf %204, %203 : vector<2x32xf32>
    %206 = arith.divf %204, %205 : vector<2x32xf32>
    %207 = vector.extract_strided_slice %194 {offsets = [0, 64], sizes = [2, 32], strides = [1, 1]} : vector<2x128xf32> to vector<2x32xf32>
    %208 = math.tanh %207 : vector<2x32xf32>
    %209 = vector.extract_strided_slice %194 {offsets = [0, 96], sizes = [2, 32], strides = [1, 1]} : vector<2x128xf32> to vector<2x32xf32>
    %210 = arith.negf %209 : vector<2x32xf32>
    %211 = math.exp %210 : vector<2x32xf32>
    %cst_61 = arith.constant 1.000000e+00 : f32
    %212 = vector.broadcast %cst_61 : f32 to vector<2x32xf32>
    %213 = arith.addf %212, %211 : vector<2x32xf32>
    %214 = arith.divf %212, %213 : vector<2x32xf32>
    %215 = arith.mulf %206, %159 : vector<2x32xf32>
    %216 = arith.mulf %200, %208 : vector<2x32xf32>
    %217 = arith.addf %215, %216 : vector<2x32xf32>
    %218 = math.tanh %217 : vector<2x32xf32>
    %219 = arith.mulf %214, %218 : vector<2x32xf32>
    %220 = vector.extract_strided_slice %37 {offsets = [6, 0], sizes = [2, 128], strides = [1, 1]} : vector<12x128xf32> to vector<2x128xf32>
    %cst_62 = arith.constant dense<0.000000e+00> : vector<2x128xf32>
    %221 = tpu.matmul %189, %38, %cst_62 {dimension_numbers = #tpu.dot_dimension_numbers<[1], [0], [0], [1], [0, 0, 1, 1], [], []>} : vector<2x32xf32>, vector<32x128xf32>, vector<2x128xf32> -> vector<2x128xf32>
    %222 = arith.addf %220, %221 : vector<2x128xf32>
    %223 = vector.extract_strided_slice %222 {offsets = [0, 0], sizes = [2, 32], strides = [1, 1]} : vector<2x128xf32> to vector<2x32xf32>
    %224 = arith.negf %223 : vector<2x32xf32>
    %225 = math.exp %224 : vector<2x32xf32>
    %cst_63 = arith.constant 1.000000e+00 : f32
    %226 = vector.broadcast %cst_63 : f32 to vector<2x32xf32>
    %227 = arith.addf %226, %225 : vector<2x32xf32>
    %228 = arith.divf %226, %227 : vector<2x32xf32>
    %229 = vector.extract_strided_slice %222 {offsets = [0, 32], sizes = [2, 32], strides = [1, 1]} : vector<2x128xf32> to vector<2x32xf32>
    %230 = arith.negf %229 : vector<2x32xf32>
    %231 = math.exp %230 : vector<2x32xf32>
    %cst_64 = arith.constant 1.000000e+00 : f32
    %232 = vector.broadcast %cst_64 : f32 to vector<2x32xf32>
    %233 = arith.addf %232, %231 : vector<2x32xf32>
    %234 = arith.divf %232, %233 : vector<2x32xf32>
    %235 = vector.extract_strided_slice %222 {offsets = [0, 64], sizes = [2, 32], strides = [1, 1]} : vector<2x128xf32> to vector<2x32xf32>
    %236 = math.tanh %235 : vector<2x32xf32>
    %237 = vector.extract_strided_slice %222 {offsets = [0, 96], sizes = [2, 32], strides = [1, 1]} : vector<2x128xf32> to vector<2x32xf32>
    %238 = arith.negf %237 : vector<2x32xf32>
    %239 = math.exp %238 : vector<2x32xf32>
    %cst_65 = arith.constant 1.000000e+00 : f32
    %240 = vector.broadcast %cst_65 : f32 to vector<2x32xf32>
    %241 = arith.addf %240, %239 : vector<2x32xf32>
    %242 = arith.divf %240, %241 : vector<2x32xf32>
    %243 = arith.mulf %234, %187 : vector<2x32xf32>
    %244 = arith.mulf %228, %236 : vector<2x32xf32>
    %245 = arith.addf %243, %244 : vector<2x32xf32>
    %246 = math.tanh %245 : vector<2x32xf32>
    %247 = arith.mulf %242, %246 : vector<2x32xf32>
    %cst_66 = arith.constant dense<0.000000e+00> : vector<2x128xf32>
    %248 = tpu.matmul %247, %39, %cst_66 {dimension_numbers = #tpu.dot_dimension_numbers<[1], [0], [0], [1], [0, 0, 1, 1], [], []>} : vector<2x32xf32>, vector<32x128xf32>, vector<2x128xf32> -> vector<2x128xf32>
    %249 = vector.broadcast %41 : vector<1x128xf32> to vector<2x128xf32>
    %250 = arith.addf %248, %249 : vector<2x128xf32>
    %cst_67 = arith.constant dense<0.000000e+00> : vector<2x128xf32>
    %251 = tpu.matmul %219, %40, %cst_67 {dimension_numbers = #tpu.dot_dimension_numbers<[1], [0], [0], [1], [0, 0, 1, 1], [], []>} : vector<2x32xf32>, vector<32x128xf32>, vector<2x128xf32> -> vector<2x128xf32>
    %252 = arith.addf %250, %251 : vector<2x128xf32>
    %253 = vector.extract_strided_slice %252 {offsets = [0, 0], sizes = [2, 32], strides = [1, 1]} : vector<2x128xf32> to vector<2x32xf32>
    %254 = arith.negf %253 : vector<2x32xf32>
    %255 = math.exp %254 : vector<2x32xf32>
    %cst_68 = arith.constant 1.000000e+00 : f32
    %256 = vector.broadcast %cst_68 : f32 to vector<2x32xf32>
    %257 = arith.addf %256, %255 : vector<2x32xf32>
    %258 = arith.divf %256, %257 : vector<2x32xf32>
    %259 = vector.extract_strided_slice %252 {offsets = [0, 32], sizes = [2, 32], strides = [1, 1]} : vector<2x128xf32> to vector<2x32xf32>
    %260 = arith.negf %259 : vector<2x32xf32>
    %261 = math.exp %260 : vector<2x32xf32>
    %cst_69 = arith.constant 1.000000e+00 : f32
    %262 = vector.broadcast %cst_69 : f32 to vector<2x32xf32>
    %263 = arith.addf %262, %261 : vector<2x32xf32>
    %264 = arith.divf %262, %263 : vector<2x32xf32>
    %265 = vector.extract_strided_slice %252 {offsets = [0, 64], sizes = [2, 32], strides = [1, 1]} : vector<2x128xf32> to vector<2x32xf32>
    %266 = math.tanh %265 : vector<2x32xf32>
    %267 = vector.extract_strided_slice %252 {offsets = [0, 96], sizes = [2, 32], strides = [1, 1]} : vector<2x128xf32> to vector<2x32xf32>
    %268 = arith.negf %267 : vector<2x32xf32>
    %269 = math.exp %268 : vector<2x32xf32>
    %cst_70 = arith.constant 1.000000e+00 : f32
    %270 = vector.broadcast %cst_70 : f32 to vector<2x32xf32>
    %271 = arith.addf %270, %269 : vector<2x32xf32>
    %272 = arith.divf %270, %271 : vector<2x32xf32>
    %273 = arith.mulf %264, %217 : vector<2x32xf32>
    %274 = arith.mulf %258, %266 : vector<2x32xf32>
    %275 = arith.addf %273, %274 : vector<2x32xf32>
    %276 = math.tanh %275 : vector<2x32xf32>
    %277 = arith.mulf %272, %276 : vector<2x32xf32>
    %278 = vector.extract_strided_slice %37 {offsets = [8, 0], sizes = [2, 128], strides = [1, 1]} : vector<12x128xf32> to vector<2x128xf32>
    %cst_71 = arith.constant dense<0.000000e+00> : vector<2x128xf32>
    %279 = tpu.matmul %247, %38, %cst_71 {dimension_numbers = #tpu.dot_dimension_numbers<[1], [0], [0], [1], [0, 0, 1, 1], [], []>} : vector<2x32xf32>, vector<32x128xf32>, vector<2x128xf32> -> vector<2x128xf32>
    %280 = arith.addf %278, %279 : vector<2x128xf32>
    %281 = vector.extract_strided_slice %280 {offsets = [0, 0], sizes = [2, 32], strides = [1, 1]} : vector<2x128xf32> to vector<2x32xf32>
    %282 = arith.negf %281 : vector<2x32xf32>
    %283 = math.exp %282 : vector<2x32xf32>
    %cst_72 = arith.constant 1.000000e+00 : f32
    %284 = vector.broadcast %cst_72 : f32 to vector<2x32xf32>
    %285 = arith.addf %284, %283 : vector<2x32xf32>
    %286 = arith.divf %284, %285 : vector<2x32xf32>
    %287 = vector.extract_strided_slice %280 {offsets = [0, 32], sizes = [2, 32], strides = [1, 1]} : vector<2x128xf32> to vector<2x32xf32>
    %288 = arith.negf %287 : vector<2x32xf32>
    %289 = math.exp %288 : vector<2x32xf32>
    %cst_73 = arith.constant 1.000000e+00 : f32
    %290 = vector.broadcast %cst_73 : f32 to vector<2x32xf32>
    %291 = arith.addf %290, %289 : vector<2x32xf32>
    %292 = arith.divf %290, %291 : vector<2x32xf32>
    %293 = vector.extract_strided_slice %280 {offsets = [0, 64], sizes = [2, 32], strides = [1, 1]} : vector<2x128xf32> to vector<2x32xf32>
    %294 = math.tanh %293 : vector<2x32xf32>
    %295 = vector.extract_strided_slice %280 {offsets = [0, 96], sizes = [2, 32], strides = [1, 1]} : vector<2x128xf32> to vector<2x32xf32>
    %296 = arith.negf %295 : vector<2x32xf32>
    %297 = math.exp %296 : vector<2x32xf32>
    %cst_74 = arith.constant 1.000000e+00 : f32
    %298 = vector.broadcast %cst_74 : f32 to vector<2x32xf32>
    %299 = arith.addf %298, %297 : vector<2x32xf32>
    %300 = arith.divf %298, %299 : vector<2x32xf32>
    %301 = arith.mulf %292, %245 : vector<2x32xf32>
    %302 = arith.mulf %286, %294 : vector<2x32xf32>
    %303 = arith.addf %301, %302 : vector<2x32xf32>
    %304 = math.tanh %303 : vector<2x32xf32>
    %305 = arith.mulf %300, %304 : vector<2x32xf32>
    %cst_75 = arith.constant dense<0.000000e+00> : vector<2x128xf32>
    %306 = tpu.matmul %305, %39, %cst_75 {dimension_numbers = #tpu.dot_dimension_numbers<[1], [0], [0], [1], [0, 0, 1, 1], [], []>} : vector<2x32xf32>, vector<32x128xf32>, vector<2x128xf32> -> vector<2x128xf32>
    %307 = vector.broadcast %41 : vector<1x128xf32> to vector<2x128xf32>
    %308 = arith.addf %306, %307 : vector<2x128xf32>
    %cst_76 = arith.constant dense<0.000000e+00> : vector<2x128xf32>
    %309 = tpu.matmul %277, %40, %cst_76 {dimension_numbers = #tpu.dot_dimension_numbers<[1], [0], [0], [1], [0, 0, 1, 1], [], []>} : vector<2x32xf32>, vector<32x128xf32>, vector<2x128xf32> -> vector<2x128xf32>
    %310 = arith.addf %308, %309 : vector<2x128xf32>
    %311 = vector.extract_strided_slice %310 {offsets = [0, 0], sizes = [2, 32], strides = [1, 1]} : vector<2x128xf32> to vector<2x32xf32>
    %312 = arith.negf %311 : vector<2x32xf32>
    %313 = math.exp %312 : vector<2x32xf32>
    %cst_77 = arith.constant 1.000000e+00 : f32
    %314 = vector.broadcast %cst_77 : f32 to vector<2x32xf32>
    %315 = arith.addf %314, %313 : vector<2x32xf32>
    %316 = arith.divf %314, %315 : vector<2x32xf32>
    %317 = vector.extract_strided_slice %310 {offsets = [0, 32], sizes = [2, 32], strides = [1, 1]} : vector<2x128xf32> to vector<2x32xf32>
    %318 = arith.negf %317 : vector<2x32xf32>
    %319 = math.exp %318 : vector<2x32xf32>
    %cst_78 = arith.constant 1.000000e+00 : f32
    %320 = vector.broadcast %cst_78 : f32 to vector<2x32xf32>
    %321 = arith.addf %320, %319 : vector<2x32xf32>
    %322 = arith.divf %320, %321 : vector<2x32xf32>
    %323 = vector.extract_strided_slice %310 {offsets = [0, 64], sizes = [2, 32], strides = [1, 1]} : vector<2x128xf32> to vector<2x32xf32>
    %324 = math.tanh %323 : vector<2x32xf32>
    %325 = vector.extract_strided_slice %310 {offsets = [0, 96], sizes = [2, 32], strides = [1, 1]} : vector<2x128xf32> to vector<2x32xf32>
    %326 = arith.negf %325 : vector<2x32xf32>
    %327 = math.exp %326 : vector<2x32xf32>
    %cst_79 = arith.constant 1.000000e+00 : f32
    %328 = vector.broadcast %cst_79 : f32 to vector<2x32xf32>
    %329 = arith.addf %328, %327 : vector<2x32xf32>
    %330 = arith.divf %328, %329 : vector<2x32xf32>
    %331 = arith.mulf %322, %275 : vector<2x32xf32>
    %332 = arith.mulf %316, %324 : vector<2x32xf32>
    %333 = arith.addf %331, %332 : vector<2x32xf32>
    %334 = math.tanh %333 : vector<2x32xf32>
    %335 = arith.mulf %330, %334 : vector<2x32xf32>
    %336 = vector.extract_strided_slice %37 {offsets = [10, 0], sizes = [2, 128], strides = [1, 1]} : vector<12x128xf32> to vector<2x128xf32>
    %cst_80 = arith.constant dense<0.000000e+00> : vector<2x128xf32>
    %337 = tpu.matmul %305, %38, %cst_80 {dimension_numbers = #tpu.dot_dimension_numbers<[1], [0], [0], [1], [0, 0, 1, 1], [], []>} : vector<2x32xf32>, vector<32x128xf32>, vector<2x128xf32> -> vector<2x128xf32>
    %338 = arith.addf %336, %337 : vector<2x128xf32>
    %339 = vector.extract_strided_slice %338 {offsets = [0, 0], sizes = [2, 32], strides = [1, 1]} : vector<2x128xf32> to vector<2x32xf32>
    %340 = arith.negf %339 : vector<2x32xf32>
    %341 = math.exp %340 : vector<2x32xf32>
    %cst_81 = arith.constant 1.000000e+00 : f32
    %342 = vector.broadcast %cst_81 : f32 to vector<2x32xf32>
    %343 = arith.addf %342, %341 : vector<2x32xf32>
    %344 = arith.divf %342, %343 : vector<2x32xf32>
    %345 = vector.extract_strided_slice %338 {offsets = [0, 32], sizes = [2, 32], strides = [1, 1]} : vector<2x128xf32> to vector<2x32xf32>
    %346 = arith.negf %345 : vector<2x32xf32>
    %347 = math.exp %346 : vector<2x32xf32>
    %cst_82 = arith.constant 1.000000e+00 : f32
    %348 = vector.broadcast %cst_82 : f32 to vector<2x32xf32>
    %349 = arith.addf %348, %347 : vector<2x32xf32>
    %350 = arith.divf %348, %349 : vector<2x32xf32>
    %351 = vector.extract_strided_slice %338 {offsets = [0, 64], sizes = [2, 32], strides = [1, 1]} : vector<2x128xf32> to vector<2x32xf32>
    %352 = math.tanh %351 : vector<2x32xf32>
    %353 = vector.extract_strided_slice %338 {offsets = [0, 96], sizes = [2, 32], strides = [1, 1]} : vector<2x128xf32> to vector<2x32xf32>
    %354 = arith.negf %353 : vector<2x32xf32>
    %355 = math.exp %354 : vector<2x32xf32>
    %cst_83 = arith.constant 1.000000e+00 : f32
    %356 = vector.broadcast %cst_83 : f32 to vector<2x32xf32>
    %357 = arith.addf %356, %355 : vector<2x32xf32>
    %358 = arith.divf %356, %357 : vector<2x32xf32>
    %359 = arith.mulf %350, %303 : vector<2x32xf32>
    %360 = arith.mulf %344, %352 : vector<2x32xf32>
    %361 = arith.addf %359, %360 : vector<2x32xf32>
    %362 = math.tanh %361 : vector<2x32xf32>
    %363 = arith.mulf %358, %362 : vector<2x32xf32>
    %cst_84 = arith.constant dense<0.000000e+00> : vector<2x128xf32>
    %364 = tpu.matmul %363, %39, %cst_84 {dimension_numbers = #tpu.dot_dimension_numbers<[1], [0], [0], [1], [0, 0, 1, 1], [], []>} : vector<2x32xf32>, vector<32x128xf32>, vector<2x128xf32> -> vector<2x128xf32>
    %365 = vector.broadcast %41 : vector<1x128xf32> to vector<2x128xf32>
    %366 = arith.addf %364, %365 : vector<2x128xf32>
    %cst_85 = arith.constant dense<0.000000e+00> : vector<2x128xf32>
    %367 = tpu.matmul %335, %40, %cst_85 {dimension_numbers = #tpu.dot_dimension_numbers<[1], [0], [0], [1], [0, 0, 1, 1], [], []>} : vector<2x32xf32>, vector<32x128xf32>, vector<2x128xf32> -> vector<2x128xf32>
    %368 = arith.addf %366, %367 : vector<2x128xf32>
    %369 = vector.extract_strided_slice %368 {offsets = [0, 0], sizes = [2, 32], strides = [1, 1]} : vector<2x128xf32> to vector<2x32xf32>
    %370 = arith.negf %369 : vector<2x32xf32>
    %371 = math.exp %370 : vector<2x32xf32>
    %cst_86 = arith.constant 1.000000e+00 : f32
    %372 = vector.broadcast %cst_86 : f32 to vector<2x32xf32>
    %373 = arith.addf %372, %371 : vector<2x32xf32>
    %374 = arith.divf %372, %373 : vector<2x32xf32>
    %375 = vector.extract_strided_slice %368 {offsets = [0, 32], sizes = [2, 32], strides = [1, 1]} : vector<2x128xf32> to vector<2x32xf32>
    %376 = arith.negf %375 : vector<2x32xf32>
    %377 = math.exp %376 : vector<2x32xf32>
    %cst_87 = arith.constant 1.000000e+00 : f32
    %378 = vector.broadcast %cst_87 : f32 to vector<2x32xf32>
    %379 = arith.addf %378, %377 : vector<2x32xf32>
    %380 = arith.divf %378, %379 : vector<2x32xf32>
    %381 = vector.extract_strided_slice %368 {offsets = [0, 64], sizes = [2, 32], strides = [1, 1]} : vector<2x128xf32> to vector<2x32xf32>
    %382 = math.tanh %381 : vector<2x32xf32>
    %383 = vector.extract_strided_slice %368 {offsets = [0, 96], sizes = [2, 32], strides = [1, 1]} : vector<2x128xf32> to vector<2x32xf32>
    %384 = arith.negf %383 : vector<2x32xf32>
    %385 = math.exp %384 : vector<2x32xf32>
    %cst_88 = arith.constant 1.000000e+00 : f32
    %386 = vector.broadcast %cst_88 : f32 to vector<2x32xf32>
    %387 = arith.addf %386, %385 : vector<2x32xf32>
    %388 = arith.divf %386, %387 : vector<2x32xf32>
    %389 = arith.mulf %380, %333 : vector<2x32xf32>
    %390 = arith.mulf %374, %382 : vector<2x32xf32>
    %391 = arith.addf %389, %390 : vector<2x32xf32>
    %392 = math.tanh %391 : vector<2x32xf32>
    %393 = arith.mulf %388, %392 : vector<2x32xf32>
    %c0_89 = arith.constant 0 : index
    %c0_90 = arith.constant 0 : index
    %394 = vector.load %arg12[%c0_89, %c0_90] : memref<32x16xf32, #tpu.memory_space<vmem>>, vector<32x16xf32>
    %cst_91 = arith.constant dense<0.000000e+00> : vector<2x16xf32>
    %395 = tpu.matmul %103, %394, %cst_91 {dimension_numbers = #tpu.dot_dimension_numbers<[1], [0], [0], [1], [0, 0, 1, 1], [], []>} : vector<2x32xf32>, vector<32x16xf32>, vector<2x16xf32> -> vector<2x16xf32>
    %c0_92 = arith.constant 0 : index
    %c0_93 = arith.constant 0 : index
    %396 = vector.load %arg13[%c0_92, %c0_93] : memref<1x16xf32, #tpu.memory_space<vmem>>, vector<1x16xf32>
    %397 = vector.broadcast %396 : vector<1x16xf32> to vector<2x16xf32>
    %398 = arith.addf %395, %397 : vector<2x16xf32>
    %cst_94 = arith.constant 0.000000e+00 : f32
    %399 = vector.broadcast %cst_94 : f32 to vector<2x16xf32>
    %400 = arith.maximumf %398, %399 : vector<2x16xf32>
    %c0_95 = arith.constant 0 : index
    %c0_96 = arith.constant 0 : index
    %401 = vector.load %arg14[%c0_95, %c0_96] : memref<16x1xf32, #tpu.memory_space<vmem>>, vector<16x1xf32>
    %cst_97 = arith.constant dense<0.000000e+00> : vector<2x1xf32>
    %402 = tpu.matmul %400, %401, %cst_97 {dimension_numbers = #tpu.dot_dimension_numbers<[1], [0], [0], [1], [0, 0, 1, 1], [], []>} : vector<2x16xf32>, vector<16x1xf32>, vector<2x1xf32> -> vector<2x1xf32>
    %c0_98 = arith.constant 0 : index
    %c0_99 = arith.constant 0 : index
    %403 = vector.load %arg15[%c0_98, %c0_99] : memref<1x1xf32, #tpu.memory_space<vmem>>, vector<1x1xf32>
    %404 = vector.broadcast %403 : vector<1x1xf32> to vector<2x1xf32>
    %405 = arith.addf %402, %404 : vector<2x1xf32>
    %c0_100 = arith.constant 0 : index
    %c0_101 = arith.constant 0 : index
    %406 = vector.load %arg12[%c0_100, %c0_101] : memref<32x16xf32, #tpu.memory_space<vmem>>, vector<32x16xf32>
    %cst_102 = arith.constant dense<0.000000e+00> : vector<2x16xf32>
    %407 = tpu.matmul %161, %406, %cst_102 {dimension_numbers = #tpu.dot_dimension_numbers<[1], [0], [0], [1], [0, 0, 1, 1], [], []>} : vector<2x32xf32>, vector<32x16xf32>, vector<2x16xf32> -> vector<2x16xf32>
    %c0_103 = arith.constant 0 : index
    %c0_104 = arith.constant 0 : index
    %408 = vector.load %arg13[%c0_103, %c0_104] : memref<1x16xf32, #tpu.memory_space<vmem>>, vector<1x16xf32>
    %409 = vector.broadcast %408 : vector<1x16xf32> to vector<2x16xf32>
    %410 = arith.addf %407, %409 : vector<2x16xf32>
    %cst_105 = arith.constant 0.000000e+00 : f32
    %411 = vector.broadcast %cst_105 : f32 to vector<2x16xf32>
    %412 = arith.maximumf %410, %411 : vector<2x16xf32>
    %c0_106 = arith.constant 0 : index
    %c0_107 = arith.constant 0 : index
    %413 = vector.load %arg14[%c0_106, %c0_107] : memref<16x1xf32, #tpu.memory_space<vmem>>, vector<16x1xf32>
    %cst_108 = arith.constant dense<0.000000e+00> : vector<2x1xf32>
    %414 = tpu.matmul %412, %413, %cst_108 {dimension_numbers = #tpu.dot_dimension_numbers<[1], [0], [0], [1], [0, 0, 1, 1], [], []>} : vector<2x16xf32>, vector<16x1xf32>, vector<2x1xf32> -> vector<2x1xf32>
    %c0_109 = arith.constant 0 : index
    %c0_110 = arith.constant 0 : index
    %415 = vector.load %arg15[%c0_109, %c0_110] : memref<1x1xf32, #tpu.memory_space<vmem>>, vector<1x1xf32>
    %416 = vector.broadcast %415 : vector<1x1xf32> to vector<2x1xf32>
    %417 = arith.addf %414, %416 : vector<2x1xf32>
    %c0_111 = arith.constant 0 : index
    %c0_112 = arith.constant 0 : index
    %418 = vector.load %arg12[%c0_111, %c0_112] : memref<32x16xf32, #tpu.memory_space<vmem>>, vector<32x16xf32>
    %cst_113 = arith.constant dense<0.000000e+00> : vector<2x16xf32>
    %419 = tpu.matmul %219, %418, %cst_113 {dimension_numbers = #tpu.dot_dimension_numbers<[1], [0], [0], [1], [0, 0, 1, 1], [], []>} : vector<2x32xf32>, vector<32x16xf32>, vector<2x16xf32> -> vector<2x16xf32>
    %c0_114 = arith.constant 0 : index
    %c0_115 = arith.constant 0 : index
    %420 = vector.load %arg13[%c0_114, %c0_115] : memref<1x16xf32, #tpu.memory_space<vmem>>, vector<1x16xf32>
    %421 = vector.broadcast %420 : vector<1x16xf32> to vector<2x16xf32>
    %422 = arith.addf %419, %421 : vector<2x16xf32>
    %cst_116 = arith.constant 0.000000e+00 : f32
    %423 = vector.broadcast %cst_116 : f32 to vector<2x16xf32>
    %424 = arith.maximumf %422, %423 : vector<2x16xf32>
    %c0_117 = arith.constant 0 : index
    %c0_118 = arith.constant 0 : index
    %425 = vector.load %arg14[%c0_117, %c0_118] : memref<16x1xf32, #tpu.memory_space<vmem>>, vector<16x1xf32>
    %cst_119 = arith.constant dense<0.000000e+00> : vector<2x1xf32>
    %426 = tpu.matmul %424, %425, %cst_119 {dimension_numbers = #tpu.dot_dimension_numbers<[1], [0], [0], [1], [0, 0, 1, 1], [], []>} : vector<2x16xf32>, vector<16x1xf32>, vector<2x1xf32> -> vector<2x1xf32>
    %c0_120 = arith.constant 0 : index
    %c0_121 = arith.constant 0 : index
    %427 = vector.load %arg15[%c0_120, %c0_121] : memref<1x1xf32, #tpu.memory_space<vmem>>, vector<1x1xf32>
    %428 = vector.broadcast %427 : vector<1x1xf32> to vector<2x1xf32>
    %429 = arith.addf %426, %428 : vector<2x1xf32>
    %c0_122 = arith.constant 0 : index
    %c0_123 = arith.constant 0 : index
    %430 = vector.load %arg12[%c0_122, %c0_123] : memref<32x16xf32, #tpu.memory_space<vmem>>, vector<32x16xf32>
    %cst_124 = arith.constant dense<0.000000e+00> : vector<2x16xf32>
    %431 = tpu.matmul %277, %430, %cst_124 {dimension_numbers = #tpu.dot_dimension_numbers<[1], [0], [0], [1], [0, 0, 1, 1], [], []>} : vector<2x32xf32>, vector<32x16xf32>, vector<2x16xf32> -> vector<2x16xf32>
    %c0_125 = arith.constant 0 : index
    %c0_126 = arith.constant 0 : index
    %432 = vector.load %arg13[%c0_125, %c0_126] : memref<1x16xf32, #tpu.memory_space<vmem>>, vector<1x16xf32>
    %433 = vector.broadcast %432 : vector<1x16xf32> to vector<2x16xf32>
    %434 = arith.addf %431, %433 : vector<2x16xf32>
    %cst_127 = arith.constant 0.000000e+00 : f32
    %435 = vector.broadcast %cst_127 : f32 to vector<2x16xf32>
    %436 = arith.maximumf %434, %435 : vector<2x16xf32>
    %c0_128 = arith.constant 0 : index
    %c0_129 = arith.constant 0 : index
    %437 = vector.load %arg14[%c0_128, %c0_129] : memref<16x1xf32, #tpu.memory_space<vmem>>, vector<16x1xf32>
    %cst_130 = arith.constant dense<0.000000e+00> : vector<2x1xf32>
    %438 = tpu.matmul %436, %437, %cst_130 {dimension_numbers = #tpu.dot_dimension_numbers<[1], [0], [0], [1], [0, 0, 1, 1], [], []>} : vector<2x16xf32>, vector<16x1xf32>, vector<2x1xf32> -> vector<2x1xf32>
    %c0_131 = arith.constant 0 : index
    %c0_132 = arith.constant 0 : index
    %439 = vector.load %arg15[%c0_131, %c0_132] : memref<1x1xf32, #tpu.memory_space<vmem>>, vector<1x1xf32>
    %440 = vector.broadcast %439 : vector<1x1xf32> to vector<2x1xf32>
    %441 = arith.addf %438, %440 : vector<2x1xf32>
    %c0_133 = arith.constant 0 : index
    %c0_134 = arith.constant 0 : index
    %442 = vector.load %arg12[%c0_133, %c0_134] : memref<32x16xf32, #tpu.memory_space<vmem>>, vector<32x16xf32>
    %cst_135 = arith.constant dense<0.000000e+00> : vector<2x16xf32>
    %443 = tpu.matmul %335, %442, %cst_135 {dimension_numbers = #tpu.dot_dimension_numbers<[1], [0], [0], [1], [0, 0, 1, 1], [], []>} : vector<2x32xf32>, vector<32x16xf32>, vector<2x16xf32> -> vector<2x16xf32>
    %c0_136 = arith.constant 0 : index
    %c0_137 = arith.constant 0 : index
    %444 = vector.load %arg13[%c0_136, %c0_137] : memref<1x16xf32, #tpu.memory_space<vmem>>, vector<1x16xf32>
    %445 = vector.broadcast %444 : vector<1x16xf32> to vector<2x16xf32>
    %446 = arith.addf %443, %445 : vector<2x16xf32>
    %cst_138 = arith.constant 0.000000e+00 : f32
    %447 = vector.broadcast %cst_138 : f32 to vector<2x16xf32>
    %448 = arith.maximumf %446, %447 : vector<2x16xf32>
    %c0_139 = arith.constant 0 : index
    %c0_140 = arith.constant 0 : index
    %449 = vector.load %arg14[%c0_139, %c0_140] : memref<16x1xf32, #tpu.memory_space<vmem>>, vector<16x1xf32>
    %cst_141 = arith.constant dense<0.000000e+00> : vector<2x1xf32>
    %450 = tpu.matmul %448, %449, %cst_141 {dimension_numbers = #tpu.dot_dimension_numbers<[1], [0], [0], [1], [0, 0, 1, 1], [], []>} : vector<2x16xf32>, vector<16x1xf32>, vector<2x1xf32> -> vector<2x1xf32>
    %c0_142 = arith.constant 0 : index
    %c0_143 = arith.constant 0 : index
    %451 = vector.load %arg15[%c0_142, %c0_143] : memref<1x1xf32, #tpu.memory_space<vmem>>, vector<1x1xf32>
    %452 = vector.broadcast %451 : vector<1x1xf32> to vector<2x1xf32>
    %453 = arith.addf %450, %452 : vector<2x1xf32>
    %c0_144 = arith.constant 0 : index
    %c0_145 = arith.constant 0 : index
    %454 = vector.load %arg12[%c0_144, %c0_145] : memref<32x16xf32, #tpu.memory_space<vmem>>, vector<32x16xf32>
    %cst_146 = arith.constant dense<0.000000e+00> : vector<2x16xf32>
    %455 = tpu.matmul %393, %454, %cst_146 {dimension_numbers = #tpu.dot_dimension_numbers<[1], [0], [0], [1], [0, 0, 1, 1], [], []>} : vector<2x32xf32>, vector<32x16xf32>, vector<2x16xf32> -> vector<2x16xf32>
    %c0_147 = arith.constant 0 : index
    %c0_148 = arith.constant 0 : index
    %456 = vector.load %arg13[%c0_147, %c0_148] : memref<1x16xf32, #tpu.memory_space<vmem>>, vector<1x16xf32>
    %457 = vector.broadcast %456 : vector<1x16xf32> to vector<2x16xf32>
    %458 = arith.addf %455, %457 : vector<2x16xf32>
    %cst_149 = arith.constant 0.000000e+00 : f32
    %459 = vector.broadcast %cst_149 : f32 to vector<2x16xf32>
    %460 = arith.maximumf %458, %459 : vector<2x16xf32>
    %c0_150 = arith.constant 0 : index
    %c0_151 = arith.constant 0 : index
    %461 = vector.load %arg14[%c0_150, %c0_151] : memref<16x1xf32, #tpu.memory_space<vmem>>, vector<16x1xf32>
    %cst_152 = arith.constant dense<0.000000e+00> : vector<2x1xf32>
    %462 = tpu.matmul %460, %461, %cst_152 {dimension_numbers = #tpu.dot_dimension_numbers<[1], [0], [0], [1], [0, 0, 1, 1], [], []>} : vector<2x16xf32>, vector<16x1xf32>, vector<2x1xf32> -> vector<2x1xf32>
    %c0_153 = arith.constant 0 : index
    %c0_154 = arith.constant 0 : index
    %463 = vector.load %arg15[%c0_153, %c0_154] : memref<1x1xf32, #tpu.memory_space<vmem>>, vector<1x1xf32>
    %464 = vector.broadcast %463 : vector<1x1xf32> to vector<2x1xf32>
    %465 = arith.addf %462, %464 : vector<2x1xf32>
    %466 = tpu.concatenate %405, %417, %429, %441, %453, %465 in 1 : vector<2x1xf32>, vector<2x1xf32>, vector<2x1xf32>, vector<2x1xf32>, vector<2x1xf32>, vector<2x1xf32> -> vector<2x6xf32>
    %cst_155 = arith.constant dense<0xFF800000> : vector<2xf32>
    %467 = vector.multi_reduction <maximumf>, %466, %cst_155 [1] : vector<2x6xf32> to vector<2xf32>
    %468 = vector.shape_cast %467 : vector<2xf32> to vector<2x1xf32>
    %469 = vector.broadcast %468 : vector<2x1xf32> to vector<2x6xf32>
    %470 = arith.subf %466, %469 : vector<2x6xf32>
    %471 = math.exp %470 : vector<2x6xf32>
    %cst_156 = arith.constant dense<0.000000e+00> : vector<2xf32>
    %472 = vector.multi_reduction <add>, %471, %cst_156 [1] : vector<2x6xf32> to vector<2xf32>
    %473 = vector.shape_cast %472 : vector<2xf32> to vector<2x1xf32>
    %474 = vector.broadcast %473 : vector<2x1xf32> to vector<2x6xf32>
    %475 = arith.divf %471, %474 : vector<2x6xf32>
    %476 = vector.extract_strided_slice %475 {offsets = [0, 0], sizes = [2, 1], strides = [1, 1]} : vector<2x6xf32> to vector<2x1xf32>
    %477 = vector.broadcast %476 : vector<2x1xf32> to vector<2x32xf32>
    %478 = arith.mulf %477, %103 : vector<2x32xf32>
    %cst_157 = arith.constant 0.000000e+00 : f32
    %479 = vector.broadcast %cst_157 : f32 to vector<2x32xf32>
    %480 = arith.addf %479, %478 : vector<2x32xf32>
    %481 = vector.extract_strided_slice %475 {offsets = [0, 1], sizes = [2, 1], strides = [1, 1]} : vector<2x6xf32> to vector<2x1xf32>
    %482 = vector.broadcast %481 : vector<2x1xf32> to vector<2x32xf32>
    %483 = arith.mulf %482, %161 : vector<2x32xf32>
    %484 = arith.addf %480, %483 : vector<2x32xf32>
    %485 = vector.extract_strided_slice %475 {offsets = [0, 2], sizes = [2, 1], strides = [1, 1]} : vector<2x6xf32> to vector<2x1xf32>
    %486 = vector.broadcast %485 : vector<2x1xf32> to vector<2x32xf32>
    %487 = arith.mulf %486, %219 : vector<2x32xf32>
    %488 = arith.addf %484, %487 : vector<2x32xf32>
    %489 = vector.extract_strided_slice %475 {offsets = [0, 3], sizes = [2, 1], strides = [1, 1]} : vector<2x6xf32> to vector<2x1xf32>
    %490 = vector.broadcast %489 : vector<2x1xf32> to vector<2x32xf32>
    %491 = arith.mulf %490, %277 : vector<2x32xf32>
    %492 = arith.addf %488, %491 : vector<2x32xf32>
    %493 = vector.extract_strided_slice %475 {offsets = [0, 4], sizes = [2, 1], strides = [1, 1]} : vector<2x6xf32> to vector<2x1xf32>
    %494 = vector.broadcast %493 : vector<2x1xf32> to vector<2x32xf32>
    %495 = arith.mulf %494, %335 : vector<2x32xf32>
    %496 = arith.addf %492, %495 : vector<2x32xf32>
    %497 = vector.extract_strided_slice %475 {offsets = [0, 5], sizes = [2, 1], strides = [1, 1]} : vector<2x6xf32> to vector<2x1xf32>
    %498 = vector.broadcast %497 : vector<2x1xf32> to vector<2x32xf32>
    %499 = arith.mulf %498, %393 : vector<2x32xf32>
    %500 = arith.addf %496, %499 : vector<2x32xf32>
    %501 = tpu.concatenate %31, %500 in 1 : vector<2x32xf32>, vector<2x32xf32> -> vector<2x64xf32>
    %c0_158 = arith.constant 0 : index
    %c0_159 = arith.constant 0 : index
    %502 = vector.load %arg16[%c0_158, %c0_159] : memref<64x4xf32, #tpu.memory_space<vmem>>, vector<64x4xf32>
    %cst_160 = arith.constant dense<0.000000e+00> : vector<2x4xf32>
    %503 = tpu.matmul %501, %502, %cst_160 {dimension_numbers = #tpu.dot_dimension_numbers<[1], [0], [0], [1], [0, 0, 1, 1], [], []>} : vector<2x64xf32>, vector<64x4xf32>, vector<2x4xf32> -> vector<2x4xf32>
    %c0_161 = arith.constant 0 : index
    %c0_162 = arith.constant 0 : index
    %504 = vector.load %arg17[%c0_161, %c0_162] : memref<1x4xf32, #tpu.memory_space<vmem>>, vector<1x4xf32>
    %505 = vector.broadcast %504 : vector<1x4xf32> to vector<2x4xf32>
    %506 = arith.addf %503, %505 : vector<2x4xf32>
    %507 = arith.negf %506 : vector<2x4xf32>
    %508 = math.exp %507 : vector<2x4xf32>
    %cst_163 = arith.constant 1.000000e+00 : f32
    %509 = vector.broadcast %cst_163 : f32 to vector<2x4xf32>
    %510 = arith.addf %509, %508 : vector<2x4xf32>
    %511 = arith.divf %509, %510 : vector<2x4xf32>
    %c0_164 = arith.constant 0 : index
    %c0_165 = arith.constant 0 : index
    %512 = vector.load %arg18[%c0_164, %c0_165] : memref<2x4xf32, #tpu.memory_space<vmem>>, vector<2x4xf32>
    tpu.vector_store %arg18[%c0_164, %c0_165], %511 {strides = array<i32>} : memref<2x4xf32, #tpu.memory_space<vmem>>, vector<2x4xf32>,
    return
  }
}

</mosaic_0001>

<bundles_post_ra>
// kernel: cnn_lstm_attention_forward.3
= control target key start
LH: loop header
LB: loop body
LE: loop exit
PB: predicated region body
PF: predicated region fallthrough
CT: control target
= control target key end

     0   :  { %s2230_s12 = smov 0   ;;  %s2232_s13 = smov 0   ;;  %s2745_s0 = inlined_call_operand.vmem [shape: bf16[50,8832], index: 0, kind: input, shape index: {}]   ;;  %s2746_s1 = inlined_call_operand.vmem [shape: bf16[16,50], index: 1, kind: input, shape index: {}]   ;;  %s2747_s2 = inlined_call_operand.vmem [shape: f32[16,1], index: 2, kind: input, shape index: {}]   ;;  %s2748_s3 = inlined_call_operand.vmem [shape: bf16[16,8832], index: 3, kind: output, shape index: {}]  }
   0x1   :  { %s2234_s14 = smov 0  }
   0x2 LB: > { %s1816_s15 = sadd.s32 4294967295, %s2205_s14   ;;  %s2247_s16 = sadd.s32 1, %s2205_s14   ;;  %s2205_s14 = sphi %s2234_s14, %s2752_s14   ;;  %s2201_s13 = sphi %s2232_s13, %s2751_s13   ;;  %s2197_s12 = sphi %s2230_s12, %s2750_s12  }
   0x3   : > { %s17_s17 = ssub.s32 %s2205_s14, %s2247_s16  ;;  %s20_s18 = sadd.s32 1, %s2201_s13 }
   0x4   : > { %p18_p0 = scmp.eq.s32.totalorder %s17_s17, 0  ;;  %p27_p1 = scmp.ne.s32.totalorder %s2201_s13, %s2197_s12 }
   0x5   : > { %p28_p2 = scmp.eq.s32.totalorder %s2205_s14, 0  ;;  %p99_p3 = scmp.eq.s32.totalorder %s1816_s15, 2 }
   0x6   : > { %s2258_s19 = scalar_select %p18_p0, %s2201_s13, %s20_s18  }
   0x7   : > { %p29_p4 = por %p28_p2, %p27_p1  ;;  %p2260_p5 = por %p99_p3, %p27_p1 }
   0x8   : > { %p1819_p6 = scmp.ge.s32.totalorder %s2205_s14, 3 }
   0xa   : > { %127 = sbr.rel (%p1819_p6) target bundleno = 65 (0x41), region = 24 }
  0x11   : > { %130 = sbr.rel (!%p29_p4) target bundleno = 65 (0x41), region = 28  ;;  %s132_s21 = sand.u32 (%p29_p4), 1, %s2201_s13  }
  0x12   : > { %s1983_s22 = smul.u32 (%p29_p4), 92, %s2205_s14 }
  0x13   : > { %s2026_s23 = smul.u32 (%p29_p4), 644, %s132_s21 }
  0x14   : > { %s2270_s26 = scalar_lea.vmem (%p29_p4), %s2745_s0, %s1983_s22 }
  0x15   : > { %v152_v0 = vld [vmem:[%s2270_s26] sm:$0xff] (%p29_p4)  ;;  %v154_v1 = vld [vmem:[%s2270_s26 + $0x8] sm:$0xff] (%p29_p4)  ;;  %v156_v2 = vld [vmem:[%s2270_s26 + $0x10] sm:$0xff] (%p29_p4)  ;;  %s2275_s27 = scalar_lea.vmem (%p29_p4), [#allocation2], %s2026_s23 }
  0x16   : > { %153 = vst [vmem:[%s2275_s27] sm:$0xff] (%p29_p4), %v152_v0  ;;  %155 = vst [vmem:[%s2275_s27 + $0x8] sm:$0xff] (%p29_p4), %v154_v1  ;;  %v158_v3 = vld [vmem:[%s2270_s26 + $0x18] sm:$0xff] (%p29_p4)  ;;  %v160_v4 = vld [vmem:[%s2270_s26 + $0x20] sm:$0xff] (%p29_p4) }
  0x17   : > { %157 = vst [vmem:[%s2275_s27 + $0x10] sm:$0xff] (%p29_p4), %v156_v2  ;;  %v162_v5 = vld [vmem:[%s2270_s26 + $0x28] sm:$0xff] (%p29_p4)  ;;  %159 = vst [vmem:[%s2275_s27 + $0x18] sm:$0xff] (%p29_p4), %v158_v3  ;;  %v164_v6 = vld [vmem:[%s2270_s26 + $0x30] sm:$0xff] (%p29_p4) }
  0x18   : > { %161 = vst [vmem:[%s2275_s27 + $0x20] sm:$0xff] %v160_v4  ;;  %163 = vst [vmem:[%s2275_s27 + $0x28] sm:$0xff] %v162_v5  ;;  %v166_v7 = vld [vmem:[%s2270_s26 + $0x38] sm:$0xff]  ;;  %v168_v8 = vld [vmem:[%s2270_s26 + $0x40] sm:$0xff] }
  0x19   : > { %165 = vst [vmem:[%s2275_s27 + $0x30] sm:$0xff] %v164_v6  ;;  %167 = vst [vmem:[%s2275_s27 + $0x38] sm:$0xff] %v166_v7  ;;  %v170_v9 = vld [vmem:[%s2270_s26 + $0x48] sm:$0xff]  ;;  %v172_v10 = vld [vmem:[%s2270_s26 + $0x50] sm:$0xff] }
  0x1a   : > { %169 = vst [vmem:[%s2275_s27 + $0x40] sm:$0xff] %v168_v8  ;;  %v174_v11 = vld [vmem:[%s2270_s26 + $0x114] sm:$0xff]  ;;  %171 = vst [vmem:[%s2275_s27 + $0x48] sm:$0xff] %v170_v9  ;;  %v176_v12 = vld [vmem:[%s2270_s26 + $0x11c] sm:$0xff] }
  0x1b   : > { %173 = vst [vmem:[%s2275_s27 + $0x50] sm:$0xff] %v172_v10  ;;  %175 = vst [vmem:[%s2275_s27 + $0x5c] sm:$0xff] %v174_v11  ;;  %v178_v13 = vld [vmem:[%s2270_s26 + $0x124] sm:$0xff]  ;;  %v180_v14 = vld [vmem:[%s2270_s26 + $0x12c] sm:$0xff] }
  0x1c   : > { %177 = vst [vmem:[%s2275_s27 + $0x64] sm:$0xff] %v176_v12  ;;  %179 = vst [vmem:[%s2275_s27 + $0x6c] sm:$0xff] %v178_v13  ;;  %v182_v15 = vld [vmem:[%s2270_s26 + $0x134] sm:$0xff]  ;;  %v184_v16 = vld [vmem:[%s2270_s26 + $0x13c] sm:$0xff] }
  0x1d   : > { %181 = vst [vmem:[%s2275_s27 + $0x74] sm:$0xff] %v180_v14  ;;  %v186_v17 = vld [vmem:[%s2270_s26 + $0x144] sm:$0xff]  ;;  %183 = vst [vmem:[%s2275_s27 + $0x7c] sm:$0xff] %v182_v15  ;;  %v188_v18 = vld [vmem:[%s2270_s26 + $0x14c] sm:$0xff] }
  0x1e   : > { %185 = vst [vmem:[%s2275_s27 + $0x84] sm:$0xff] %v184_v16  ;;  %187 = vst [vmem:[%s2275_s27 + $0x8c] sm:$0xff] %v186_v17  ;;  %v190_v19 = vld [vmem:[%s2270_s26 + $0x154] sm:$0xff]  ;;  %v192_v20 = vld [vmem:[%s2270_s26 + $0x15c] sm:$0xff] }
  0x1f   : > { %189 = vst [vmem:[%s2275_s27 + $0x94] sm:$0xff] %v188_v18  ;;  %191 = vst [vmem:[%s2275_s27 + $0x9c] sm:$0xff] %v190_v19  ;;  %v194_v21 = vld [vmem:[%s2270_s26 + $0x164] sm:$0xff]  ;;  %v198_v23 = vld [vmem:[%s2270_s26 + $0x230] sm:$0xff] }
  0x20   : > { %193 = vst [vmem:[%s2275_s27 + $0xa4] sm:$0xff] %v192_v20  ;;  %v196_v22 = vld [vmem:[%s2270_s26 + $0x228] sm:$0xff]  ;;  %195 = vst [vmem:[%s2275_s27 + $0xac] sm:$0xff] %v194_v21  ;;  %v200_v24 = vld [vmem:[%s2270_s26 + $0x238] sm:$0xff] }
  0x21   : > { %197 = vst [vmem:[%s2275_s27 + $0xb8] sm:$0xff] %v196_v22  ;;  %199 = vst [vmem:[%s2275_s27 + $0xc0] sm:$0xff] %v198_v23  ;;  %v202_v25 = vld [vmem:[%s2270_s26 + $0x240] sm:$0xff]  ;;  %v204_v26 = vld [vmem:[%s2270_s26 + $0x248] sm:$0xff] }
  0x22   : > { %201 = vst [vmem:[%s2275_s27 + $0xc8] sm:$0xff] %v200_v24  ;;  %203 = vst [vmem:[%s2275_s27 + $0xd0] sm:$0xff] %v202_v25  ;;  %v206_v27 = vld [vmem:[%s2270_s26 + $0x250] sm:$0xff]  ;;  %v208_v28 = vld [vmem:[%s2270_s26 + $0x258] sm:$0xff] }
  0x23   : > { %205 = vst [vmem:[%s2275_s27 + $0xd8] sm:$0xff] %v204_v26  ;;  %v210_v29 = vld [vmem:[%s2270_s26 + $0x260] sm:$0xff]  ;;  %207 = vst [vmem:[%s2275_s27 + $0xe0] sm:$0xff] %v206_v27  ;;  %v212_v30 = vld [vmem:[%s2270_s26 + $0x268] sm:$0xff] }
  0x24   : > { %209 = vst [vmem:[%s2275_s27 + $0xe8] sm:$0xff] %v208_v28  ;;  %211 = vst [vmem:[%s2275_s27 + $0xf0] sm:$0xff] %v210_v29  ;;  %v214_v31 = vld [vmem:[%s2270_s26 + $0x270] sm:$0xff]  ;;  %v216_v32 = vld [vmem:[%s2270_s26 + $0x278] sm:$0xff] }
  0x25   : > { %213 = vst [vmem:[%s2275_s27 + $0xf8] sm:$0xff] %v212_v30  ;;  %215 = vst [vmem:[%s2275_s27 + $0x100] sm:$0xff] %v214_v31  ;;  %v218_v33 = vld [vmem:[%s2270_s26 + $0x33c] sm:$0xff]  ;;  %v220_v34 = vld [vmem:[%s2270_s26 + $0x344] sm:$0xff] }
  0x26   : > { %217 = vst [vmem:[%s2275_s27 + $0x108] sm:$0xff] %v216_v32  ;;  %v222_v35 = vld [vmem:[%s2270_s26 + $0x34c] sm:$0xff]  ;;  %219 = vst [vmem:[%s2275_s27 + $0x114] sm:$0xff] %v218_v33  ;;  %v224_v36 = vld [vmem:[%s2270_s26 + $0x354] sm:$0xff] }
  0x27   : > { %221 = vst [vmem:[%s2275_s27 + $0x11c] sm:$0xff] %v220_v34  ;;  %223 = vst [vmem:[%s2275_s27 + $0x124] sm:$0xff] %v222_v35  ;;  %v226_v37 = vld [vmem:[%s2270_s26 + $0x35c] sm:$0xff]  ;;  %v228_v38 = vld [vmem:[%s2270_s26 + $0x364] sm:$0xff] }
  0x28   : > { %225 = vst [vmem:[%s2275_s27 + $0x12c] sm:$0xff] %v224_v36  ;;  %227 = vst [vmem:[%s2275_s27 + $0x134] sm:$0xff] %v226_v37  ;;  %v230_v39 = vld [vmem:[%s2270_s26 + $0x36c] sm:$0xff]  ;;  %v232_v40 = vld [vmem:[%s2270_s26 + $0x374] sm:$0xff] }
  0x29   : > { %229 = vst [vmem:[%s2275_s27 + $0x13c] sm:$0xff] %v228_v38  ;;  %v234_v41 = vld [vmem:[%s2270_s26 + $0x37c] sm:$0xff]  ;;  %231 = vst [vmem:[%s2275_s27 + $0x144] sm:$0xff] %v230_v39  ;;  %v236_v42 = vld [vmem:[%s2270_s26 + $0x384] sm:$0xff] }
  0x2a   : > { %233 = vst [vmem:[%s2275_s27 + $0x14c] sm:$0xff] %v232_v40  ;;  %235 = vst [vmem:[%s2275_s27 + $0x154] sm:$0xff] %v234_v41  ;;  %v238_v43 = vld [vmem:[%s2270_s26 + $0x38c] sm:$0xff]  ;;  %v242_v45 = vld [vmem:[%s2270_s26 + $0x458] sm:$0xff] }
  0x2b   : > { %v240_v44 = vld [vmem:[%s2270_s26 + $0x450] sm:$0xff]  ;;  %237 = vst [vmem:[%s2275_s27 + $0x15c] sm:$0xff] %v236_v42  ;;  %239 = vst [vmem:[%s2275_s27 + $0x164] sm:$0xff] %v238_v43  ;;  %v244_v46 = vld [vmem:[%s2270_s26 + $0x460] sm:$0xff] }
  0x2c   : > { %241 = vst [vmem:[%s2275_s27 + $0x170] sm:$0xff] %v240_v44  ;;  %v246_v47 = vld [vmem:[%s2270_s26 + $0x468] sm:$0xff]  ;;  %243 = vst [vmem:[%s2275_s27 + $0x178] sm:$0xff] %v242_v45  ;;  %v248_v48 = vld [vmem:[%s2270_s26 + $0x470] sm:$0xff] }
  0x2d   : > { %245 = vst [vmem:[%s2275_s27 + $0x180] sm:$0xff] %v244_v46  ;;  %247 = vst [vmem:[%s2275_s27 + $0x188] sm:$0xff] %v246_v47  ;;  %v250_v49 = vld [vmem:[%s2270_s26 + $0x478] sm:$0xff]  ;;  %v252_v50 = vld [vmem:[%s2270_s26 + $0x480] sm:$0xff] }
  0x2e   : > { %249 = vst [vmem:[%s2275_s27 + $0x190] sm:$0xff] %v248_v48  ;;  %251 = vst [vmem:[%s2275_s27 + $0x198] sm:$0xff] %v250_v49  ;;  %v254_v51 = vld [vmem:[%s2270_s26 + $0x488] sm:$0xff]  ;;  %v256_v52 = vld [vmem:[%s2270_s26 + $0x490] sm:$0xff] }
  0x2f   : > { %253 = vst [vmem:[%s2275_s27 + $0x1a0] sm:$0xff] %v252_v50  ;;  %v258_v53 = vld [vmem:[%s2270_s26 + $0x498] sm:$0xff]  ;;  %255 = vst [vmem:[%s2275_s27 + $0x1a8] sm:$0xff] %v254_v51  ;;  %v260_v54 = vld [vmem:[%s2270_s26 + $0x4a0] sm:$0xff] }
  0x30   : > { %257 = vst [vmem:[%s2275_s27 + $0x1b0] sm:$0xff] %v256_v52  ;;  %259 = vst [vmem:[%s2275_s27 + $0x1b8] sm:$0xff] %v258_v53  ;;  %v262_v55 = vld [vmem:[%s2270_s26 + $0x564] sm:$0xff]  ;;  %v264_v56 = vld [vmem:[%s2270_s26 + $0x56c] sm:$0xff] }
  0x31   : > { %261 = vst [vmem:[%s2275_s27 + $0x1c0] sm:$0xff] %v260_v54  ;;  %263 = vst [vmem:[%s2275_s27 + $0x1cc] sm:$0xff] %v262_v55  ;;  %v266_v57 = vld [vmem:[%s2270_s26 + $0x574] sm:$0xff]  ;;  %v268_v58 = vld [vmem:[%s2270_s26 + $0x57c] sm:$0xff] }
  0x32   : > { %265 = vst [vmem:[%s2275_s27 + $0x1d4] sm:$0xff] %v264_v56  ;;  %v270_v59 = vld [vmem:[%s2270_s26 + $0x584] sm:$0xff]  ;;  %267 = vst [vmem:[%s2275_s27 + $0x1dc] sm:$0xff] %v266_v57  ;;  %v272_v60 = vld [vmem:[%s2270_s26 + $0x58c] sm:$0xff] }
  0x33   : > { %269 = vst [vmem:[%s2275_s27 + $0x1e4] sm:$0xff] %v268_v58  ;;  %271 = vst [vmem:[%s2275_s27 + $0x1ec] sm:$0xff] %v270_v59  ;;  %v274_v61 = vld [vmem:[%s2270_s26 + $0x594] sm:$0xff]  ;;  %v276_v62 = vld [vmem:[%s2270_s26 + $0x59c] sm:$0xff] }
  0x34   : > { %273 = vst [vmem:[%s2275_s27 + $0x1f4] sm:$0xff] %v272_v60  ;;  %275 = vst [vmem:[%s2275_s27 + $0x1fc] sm:$0xff] %v274_v61  ;;  %v278_v63 = vld [vmem:[%s2270_s26 + $0x5a4] sm:$0xff]  ;;  %v280_v0 = vld [vmem:[%s2270_s26 + $0x5ac] sm:$0xff] }
  0x35   : > { %277 = vst [vmem:[%s2275_s27 + $0x204] sm:$0xff] %v276_v62  ;;  %v282_v1 = vld [vmem:[%s2270_s26 + $0x5b4] sm:$0xff]  ;;  %279 = vst [vmem:[%s2275_s27 + $0x20c] sm:$0xff] %v278_v63  ;;  %v286_v3 = vld [vmem:[%s2270_s26 + $0x680] sm:$0xff] }
  0x36   : > { %281 = vst [vmem:[%s2275_s27 + $0x214] sm:$0xff] %v280_v0  ;;  %283 = vst [vmem:[%s2275_s27 + $0x21c] sm:$0xff] %v282_v1  ;;  %v284_v2 = vld [vmem:[%s2270_s26 + $0x678] sm:$0xff]  ;;  %v288_v4 = vld [vmem:[%s2270_s26 + $0x688] sm:$0xff] }
  0x37   : > { %285 = vst [vmem:[%s2275_s27 + $0x228] sm:$0xff] %v284_v2  ;;  %287 = vst [vmem:[%s2275_s27 + $0x230] sm:$0xff] %v286_v3  ;;  %v290_v5 = vld [vmem:[%s2270_s26 + $0x690] sm:$0xff]  ;;  %v292_v6 = vld [vmem:[%s2270_s26 + $0x698] sm:$0xff] }
  0x38   : > { %289 = vst [vmem:[%s2275_s27 + $0x238] sm:$0xff] %v288_v4  ;;  %v294_v7 = vld [vmem:[%s2270_s26 + $0x6a0] sm:$0xff]  ;;  %291 = vst [vmem:[%s2275_s27 + $0x240] sm:$0xff] %v290_v5  ;;  %v296_v8 = vld [vmem:[%s2270_s26 + $0x6a8] sm:$0xff] }
  0x39   : > { %293 = vst [vmem:[%s2275_s27 + $0x248] sm:$0xff] %v292_v6  ;;  %295 = vst [vmem:[%s2275_s27 + $0x250] sm:$0xff] %v294_v7  ;;  %v298_v9 = vld [vmem:[%s2270_s26 + $0x6b0] sm:$0xff]  ;;  %v300_v10 = vld [vmem:[%s2270_s26 + $0x6b8] sm:$0xff] }
  0x3a   : > { %297 = vst [vmem:[%s2275_s27 + $0x258] sm:$0xff] %v296_v8  ;;  %299 = vst [vmem:[%s2275_s27 + $0x260] sm:$0xff] %v298_v9  ;;  %v302_v11 = vld [vmem:[%s2270_s26 + $0x6c0] sm:$0xff]  ;;  %v304_v12 = vld [vmem:[%s2270_s26 + $0x6c8] sm:$0xff] }
  0x3b   : > { %301 = vst [vmem:[%s2275_s27 + $0x268] sm:$0xff] %v300_v10  ;;  %v1821_v13 = vld [vmem:[%s2270_s26 + $0x58] sm:$0xf]  ;;  %303 = vst [vmem:[%s2275_s27 + $0x270] sm:$0xff] %v302_v11  ;;  %v1823_v14 = vld [vmem:[%s2270_s26 + $0x16c] sm:$0xf] }
  0x3c   : > { %305 = vst [vmem:[%s2275_s27 + $0x278] sm:$0xff] %v304_v12  ;;  %1822 = vst [vmem:[%s2275_s27 + $0x58] sm:$0xf] %v1821_v13  ;;  %v1825_v15 = vld [vmem:[%s2270_s26 + $0x280] sm:$0xf] }
  0x3d   : > { %v1827_v16 = vld [vmem:[%s2270_s26 + $0x394] sm:$0xf]  ;;  %1824 = vst [vmem:[%s2275_s27 + $0xb4] sm:$0xf] %v1823_v14  ;;  %1826 = vst [vmem:[%s2275_s27 + $0x110] sm:$0xf] %v1825_v15 }
  0x3e   : > { %1828 = vst [vmem:[%s2275_s27 + $0x16c] sm:$0xf] %v1827_v16  ;;  %v1829_v17 = vld [vmem:[%s2270_s26 + $0x4a8] sm:$0xf]  ;;  %v1831_v18 = vld [vmem:[%s2270_s26 + $0x5bc] sm:$0xf] }
  0x3f   : > { %v1833_v19 = vld [vmem:[%s2270_s26 + $0x6d0] sm:$0xf]  ;;  %1830 = vst [vmem:[%s2275_s27 + $0x1c8] sm:$0xf] %v1829_v17  ;;  %1832 = vst [vmem:[%s2275_s27 + $0x224] sm:$0xf] %v1831_v18 }
  0x40   : > { %1834 = vst [vmem:[%s2275_s27 + $0x280] sm:$0xf] %v1833_v19 }
  0x41 PF: > { %p1835_p7 = scmp.ge.s32.totalorder %s2205_s14, 1  ;;  %p331_p8 = scmp.lt.s32.totalorder %s2205_s14, 4 }
  0x43   : > { %p332_p9 = pnand %p1835_p7, %p331_p8 }
  0x44   : > { %s338_s28 = sand.u32 (!%p332_p9), 1, %s2197_s12   ;;  %v2207_v20 = vmov (!%p332_p9), 0   ;;  %v449_v21 = vld [vmem:[%s2747_s2] sm:$0xff] (!%p332_p9)  ;;  %v450_v22 = vld [vmem:[%s2747_s2 + $0x8] sm:$0xff] (!%p332_p9)  ;;  %vm876_vm0 = vcmask (!%p332_p9), 1040384   ;;  %vm872_vm1 = vcmask (!%p332_p9), 408576  }
  0x45   : > { %335 = sbr.rel (%p332_p9) target bundleno = 400 (0x190), region = 54  ;;  %978 = vmatprep.mubr.bf16.mxu0 (!%p332_p9), %v2207_v20  ;;  %1021 = vmatprep.mubr.bf16.mxu1 (!%p332_p9), %v2207_v20  ;;  %v2481_v45 = vld [vmem:[%s2746_s1] sm:$0xff] (!%p332_p9)   ;;  %vm2209_vm2 = vmmov (!%p332_p9), 0  }
  0x46   : > { %s2027_s29 = smul.u32 (!%p332_p9), 644, %s338_s28  ;;  %2056 = vset.pattern.permute.xlu0 (!%p332_p9), %v2207_v20 }
  0x47   : > { %453 = vperm.xlu0 (!%p332_p9), %2056, %v449_v21   ;;  %s2028_s10 = smul.u32 (!%p332_p9), 184, %s338_s28 }
  0x48   : > { %s2456_s7 = scalar_lea.vmem (!%p332_p9), [#allocation2], %s2027_s29 }
  0x49   : > { %v2057_v23 = vld [vmem:[%s2456_s7 + $0x4] ss:$92 sps:$4 sm:$0xff] (!%p332_p9)   ;;  %v2059_v24 = vld [vmem:[%s2456_s7 + $0xc] ss:$92 sps:$4 sm:$0xff] (!%p332_p9)   ;;  %v2063_v27 = vld [vmem:[%s2456_s7 + $0xbc] ss:$92 sps:$4 sm:$0xff] (!%p332_p9)  }
  0x4a   : > { %946 = vmatprep.subr.bf16.mxu0 (!%p332_p9), %v2057_v23  ;;  %v2061_v25 = vld [vmem:[%s2456_s7] ss:$92 sps:$4 sm:$0xff] (!%p332_p9)   ;;  %v2062_v26 = vld [vmem:[%s2456_s7 + $0x8] ss:$92 sps:$4 sm:$0xff] (!%p332_p9)   ;;  %989 = vmatprep.subr.bf16.mxu1 (!%p332_p9), %v2059_v24  ;;  %v2067_v29 = vld [vmem:[%s2456_s7 + $0xb8] ss:$92 sps:$4 sm:$0xff] (!%p332_p9)  }
  0x4b   : > { %458 = vperm.xlu0 (!%p332_p9), %2056, %v450_v22   ;;  %947 = vmatpush1.bf16.msra.mxu0 (!%p332_p9), %v2061_v25  ;;  %v2065_v28 = vld [vmem:[%s2456_s7 + $0xc4] ss:$92 sps:$4 sm:$0xff] (!%p332_p9)   ;;  %v2069_v31 = vld [vmem:[%s2456_s7 + $0x174] ss:$92 sps:$4 sm:$0xff] (!%p332_p9)   ;;  %v2071_v32 = vld [vmem:[%s2456_s7 + $0x17c] ss:$92 sps:$4 sm:$0xff] (!%p332_p9)  }
  0x4c   : > { %990 = vmatpush1.bf16.msra.mxu1 %v2062_v26  ;;  %948 = vmatprep.subr.bf16.mxu0 %v2063_v27  ;;  %v2068_v30 = vld [vmem:[%s2456_s7 + $0xc0] ss:$92 sps:$4 sm:$0xff]   ;;  %v2073_v33 = vld [vmem:[%s2456_s7 + $0x170] ss:$92 sps:$4 sm:$0xff]   ;;  %v2074_v34 = vld [vmem:[%s2456_s7 + $0x178] ss:$92 sps:$4 sm:$0xff]  }
  0x4d   : > { %991 = vmatprep.subr.bf16.mxu1 %v2065_v28  ;;  %v437_v35 = vld [vmem:[%s2456_s7 + $0x228] sm:$0x11]  ;;  %v438_v36 = vld [vmem:[%s2456_s7 + $0x230] sm:$0x11]  ;;  %v2085_v44 = vld [vmem:[%s2456_s7 + $0x1c] ss:$92 sps:$4 sm:$0xff]  }
  0x4e   : > { %v1907_v37 = vcombine.high %v437_v35, %v437_v35  ;;  %v1909_v38 = vcombine.high %v438_v36, %v438_v36  ;;  %v1906_v39 = vcombine.low %v437_v35, %v437_v35  ;;  %v1908_v40 = vcombine.low %v438_v36, %v438_v36  ;;  %v2082_v41 = vld [vmem:[%s2456_s7 + $0x14] ss:$92 sps:$4 sm:$0xff]   ;;  %v2088_v48 = vld [vmem:[%s2456_s7 + $0xcc] ss:$92 sps:$4 sm:$0xff]   ;;  %v2094_v52 = vld [vmem:[%s2456_s7 + $0x184] ss:$92 sps:$4 sm:$0xff]  }
  0x4f   : > { %949 = vmatpush1.bf16.msra.mxu0 %v2067_v29  ;;  %v2080_v46 = vld [vmem:[%s2456_s7 + $0x10] ss:$92 sps:$4 sm:$0xff]   ;;  %v2083_v47 = vld [vmem:[%s2456_s7 + $0x18] ss:$92 sps:$4 sm:$0xff]   ;;  %v2086_v50 = vld [vmem:[%s2456_s7 + $0xc8] ss:$92 sps:$4 sm:$0xff]  }
  0x50   : > { %992 = vmatpush1.bf16.msra.mxu1 %v2068_v30  ;;  %950 = vmatprep.subr.bf16.mxu0 %v2069_v31  ;;  %v878_v42 = vsel %vm876_vm0, %v1906_v39, 0  ;;  %v884_v43 = vsel %vm876_vm0, %v1908_v40, 0  ;;  %v2091_v49 = vld [vmem:[%s2456_s7 + $0xd4] ss:$92 sps:$4 sm:$0xff]   ;;  %v2097_v53 = vld [vmem:[%s2456_s7 + $0x18c] ss:$92 sps:$4 sm:$0xff]  }
  0x51   : > { %993 = vmatprep.subr.bf16.mxu1 %v2071_v32  ;;  %v2089_v51 = vld [vmem:[%s2456_s7 + $0xd0] ss:$92 sps:$4 sm:$0xff]   ;;  %v439_v54 = vld [vmem:[%s2456_s7 + $0x238] sm:$0x11]  ;;  %v440_v55 = vld [vmem:[%s2456_s7 + $0x240] sm:$0x11] }
  0x52   : > { %v2092_v56 = vld [vmem:[%s2456_s7 + $0x180] ss:$92 sps:$4 sm:$0xff]   ;;  %v2095_v57 = vld [vmem:[%s2456_s7 + $0x188] ss:$92 sps:$4 sm:$0xff]   ;;  %v1911_v58 = vcombine.high %v439_v54, %v439_v54  ;;  %v1913_v59 = vcombine.high %v440_v55, %v440_v55  ;;  %v1910_v60 = vcombine.low %v439_v54, %v439_v54  ;;  %v1912_v61 = vcombine.low %v440_v55, %v440_v55  ;;  %v2108_v6 = vld [vmem:[%s2456_s7 + $0xd8] ss:$92 sps:$4 sm:$0xff]  }
  0x53   : > { %951 = vmatpush1.bf16.msra.mxu0 %v2073_v33  ;;  %v2104_v62 = vld [vmem:[%s2456_s7 + $0x24] ss:$92 sps:$4 sm:$0xff]   ;;  %v2107_v1 = vld [vmem:[%s2456_s7 + $0x2c] ss:$92 sps:$4 sm:$0xff]   ;;  %v2110_v4 = vld [vmem:[%s2456_s7 + $0xdc] ss:$92 sps:$4 sm:$0xff]  }
  0x54   : > { %994 = vmatpush1.bf16.msra.mxu1 %v2074_v34  ;;  %1929 = vmatprep.subr.msk.bf16.mxu0 %vm876_vm0, %v1907_v37  ;;  %v890_v63 = vsel %vm876_vm0, %v1910_v60, 0  ;;  %v896_v0 = vsel %vm876_vm0, %v1912_v61, 0  ;;  %v2102_v2 = vld [vmem:[%s2456_s7 + $0x20] ss:$92 sps:$4 sm:$0xff]   ;;  %v2105_v3 = vld [vmem:[%s2456_s7 + $0x28] ss:$92 sps:$4 sm:$0xff]  }
  0x55   : > { %1931 = vmatprep.subr.msk.bf16.mxu1 %vm876_vm0, %v1909_v38  ;;  %v2113_v5 = vld [vmem:[%s2456_s7 + $0xe4] ss:$92 sps:$4 sm:$0xff]   ;;  %v2116_v8 = vld [vmem:[%s2456_s7 + $0x194] ss:$92 sps:$4 sm:$0xff]   ;;  %v2119_v9 = vld [vmem:[%s2456_s7 + $0x19c] ss:$92 sps:$4 sm:$0xff]  }
  0x56   : > { %v2111_v7 = vld [vmem:[%s2456_s7 + $0xe0] ss:$92 sps:$4 sm:$0xff]   ;;  %v441_v10 = vld [vmem:[%s2456_s7 + $0x248] sm:$0x11]  ;;  %v442_v11 = vld [vmem:[%s2456_s7 + $0x250] sm:$0x11] }
  0x57   : > { %953 = vmatpush1.bf16.msra.mxu0 %v878_v42  ;;  %v2114_v12 = vld [vmem:[%s2456_s7 + $0x190] ss:$92 sps:$4 sm:$0xff]   ;;  %v2117_v13 = vld [vmem:[%s2456_s7 + $0x198] ss:$92 sps:$4 sm:$0xff]   ;;  %v1914_v14 = vcombine.low %v441_v10, %v441_v10  ;;  %v1916_v15 = vcombine.low %v442_v11, %v442_v11  ;;  %v1915_v16 = vcombine.high %v441_v10, %v441_v10  ;;  %v1917_v17 = vcombine.high %v442_v11, %v442_v11  ;;  %v2130_v27 = vld [vmem:[%s2456_s7 + $0xe8] ss:$92 sps:$4 sm:$0xff]  }
  0x58   : > { %996 = vmatpush1.bf16.msra.mxu1 %v884_v43  ;;  %1032 = vmatprep.subr.bf16.mxu0 %v2082_v41  ;;  %v2126_v21 = vld [vmem:[%s2456_s7 + $0x34] ss:$92 sps:$4 sm:$0xff]   ;;  %v2129_v22 = vld [vmem:[%s2456_s7 + $0x3c] ss:$92 sps:$4 sm:$0xff]   ;;  %v2132_v25 = vld [vmem:[%s2456_s7 + $0xec] ss:$92 sps:$4 sm:$0xff]  }
  0x59   : > { %1075 = vmatprep.subr.bf16.mxu1 %v2085_v44  ;;  %v902_v18 = vsel %vm876_vm0, %v1914_v14, 0  ;;  %v908_v19 = vsel %vm876_vm0, %v1916_v15, 0  ;;  %v2124_v23 = vld [vmem:[%s2456_s7 + $0x30] ss:$92 sps:$4 sm:$0xff]   ;;  %v2127_v24 = vld [vmem:[%s2456_s7 + $0x38] ss:$92 sps:$4 sm:$0xff]  }
  0x5a   : > { %1930 = vmatmul.mubr.msk.bf16.vlgmr.msra.gmra.mrb[0].mxu0 %vm872_vm1, %v2481_v45  ;;  %v2135_v26 = vld [vmem:[%s2456_s7 + $0xf4] ss:$92 sps:$4 sm:$0xff]   ;;  %v2138_v29 = vld [vmem:[%s2456_s7 + $0x1a4] ss:$92 sps:$4 sm:$0xff]   ;;  %v2141_v30 = vld [vmem:[%s2456_s7 + $0x1ac] ss:$92 sps:$4 sm:$0xff]  }
  0x5b   : > { %1932 = vmatmul.mubr.msk.bf16.vlgmr.msra.gmra.mrb[0].mxu1 %vm872_vm1, %v2481_v45  ;;  %1033 = vmatpush1.bf16.msra.mxu0 %v2080_v46  ;;  %v2133_v28 = vld [vmem:[%s2456_s7 + $0xf0] ss:$92 sps:$4 sm:$0xff]   ;;  %v443_v31 = vld [vmem:[%s2456_s7 + $0x258] sm:$0x11]  ;;  %v444_v32 = vld [vmem:[%s2456_s7 + $0x260] sm:$0x11] }
  0x5c   : > { %1076 = vmatpush1.bf16.msra.mxu1 %v2083_v47  ;;  %1034 = vmatprep.subr.bf16.mxu0 %v2088_v48  ;;  %v2136_v33 = vld [vmem:[%s2456_s7 + $0x1a0] ss:$92 sps:$4 sm:$0xff]   ;;  %v2139_v34 = vld [vmem:[%s2456_s7 + $0x1a8] ss:$92 sps:$4 sm:$0xff]   ;;  %v1919_v35 = vcombine.high %v443_v31, %v443_v31  ;;  %v1921_v36 = vcombine.high %v444_v32, %v444_v32  ;;  %v1918_v37 = vcombine.low %v443_v31, %v443_v31  ;;  %v2152_v48 = vld [vmem:[%s2456_s7 + $0xf8] ss:$92 sps:$4 sm:$0xff]  }
  0x5d   : > { %1077 = vmatprep.subr.bf16.mxu1 %v2091_v49  ;;  %1064 = vmatprep.mubr.bf16.mxu0 %v2207_v20  ;;  %v1920_v38 = vcombine.low %v444_v32, %v444_v32  ;;  %v2148_v41 = vld [vmem:[%s2456_s7 + $0x44] ss:$92 sps:$4 sm:$0xff]   ;;  %v2151_v42 = vld [vmem:[%s2456_s7 + $0x4c] ss:$92 sps:$4 sm:$0xff]   ;;  %v2154_v46 = vld [vmem:[%s2456_s7 + $0xfc] ss:$92 sps:$4 sm:$0xff]  }
  0x5e   : > { %1107 = vmatprep.mubr.bf16.mxu1 %v2207_v20  ;;  %v914_v39 = vsel %vm876_vm0, %v1918_v37, 0  ;;  %v2146_v43 = vld [vmem:[%s2456_s7 + $0x40] ss:$92 sps:$4 sm:$0xff]   ;;  %v2149_v44 = vld [vmem:[%s2456_s7 + $0x48] ss:$92 sps:$4 sm:$0xff]   ;;  %s2614_s11 = scalar_lea.vmem [#allocation3], %s2028_s10 }
  0x5f   : > { %1035 = vmatpush1.bf16.msra.mxu0 %v2086_v50  ;;  %v920_v40 = vsel %vm876_vm0, %v1920_v38, 0  ;;  %v2157_v47 = vld [vmem:[%s2456_s7 + $0x104] ss:$92 sps:$4 sm:$0xff]   ;;  %v2160_v50 = vld [vmem:[%s2456_s7 + $0x1b4] ss:$92 sps:$4 sm:$0xff]   ;;  %s2008_s12 = smul.u32 (%p2260_p5), 92, %s1816_s15 }
  0x60   : > { %1078 = vmatpush1.bf16.msra.mxu1 %v2089_v51  ;;  %1036 = vmatprep.subr.bf16.mxu0 %v2094_v52  ;;  %v2155_v49 = vld [vmem:[%s2456_s7 + $0x100] ss:$92 sps:$4 sm:$0xff]   ;;  %v445_v52 = vld [vmem:[%s2456_s7 + $0x268] sm:$0x11]  ;;  %v2161_v55 = vld [vmem:[%s2456_s7 + $0x1b8] ss:$92 sps:$4 sm:$0xff]  }
  0x61   : > { %1079 = vmatprep.subr.bf16.mxu1 %v2097_v53  ;;  %v2163_v51 = vld [vmem:[%s2456_s7 + $0x1bc] ss:$92 sps:$4 sm:$0xff]   ;;  %v446_v53 = vld [vmem:[%s2456_s7 + $0x270] sm:$0x11]  ;;  %s2691_s18 = scalar_lea.vmem (%p2260_p5), %s2748_s3, %s2008_s12 }
  0x62   : > { %v2158_v54 = vld [vmem:[%s2456_s7 + $0x1b0] ss:$92 sps:$4 sm:$0xff]   ;;  %v2182_v11 = vld [vmem:[%s2456_s7 + $0x280] ss:$0 sps:$4 sm:$0x11]  }
  0x63   : > { %1037 = vmatpush1.bf16.msra.mxu0 %v2092_v56  ;;  %v1923_v56 = vcombine.high %v445_v52, %v445_v52 }
  0x64   : > { %1080 = vmatpush1.bf16.msra.mxu1 %v2095_v57  ;;  %1933 = vmatprep.subr.msk.bf16.mxu0 %vm876_vm0, %v1911_v58  ;;  %v1925_v57 = vcombine.high %v446_v53, %v446_v53  ;;  %v1922_v58 = vcombine.low %v445_v52, %v445_v52 }
  0x65   : > { %1935 = vmatprep.subr.msk.bf16.mxu1 %vm876_vm0, %v1913_v59  ;;  %v1924_v59 = vcombine.low %v446_v53, %v446_v53 }
  0x66   : > { %v926_v60 = vsel %vm876_vm0, %v1922_v58, 0 }
  0x67   : > { %1039 = vmatpush1.bf16.msra.mxu0 %v890_v63  ;;  %v932_v61 = vsel %vm876_vm0, %v1924_v59, 0  ;;  %v2168_v63 = vld [vmem:[%s2456_s7 + $0x50] ss:$92 sps:$4 sm:$0xff]  }
  0x68   : > { %1082 = vmatpush1.bf16.msra.mxu1 %v896_v0  ;;  %1118 = vmatprep.subr.bf16.mxu0 %v2104_v62  ;;  %v2170_v62 = vld [vmem:[%s2456_s7 + $0x54] ss:$92 sps:$4 sm:$0xff]  }
  0x69   : > { %1161 = vmatprep.subr.bf16.mxu1 %v2107_v1  ;;  %v2171_v0 = vld [vmem:[%s2456_s7 + $0x58] ss:$92 sps:$4 sm:$0xff]   ;;  %v2208_v1 = vmov 0.0  }
  0x6a   : > { %1934 = vmatmul.mubr.msk.bf16.vlgmr.msra.gmra.mrb[4].mxu0 %vm872_vm1, %v2481_v45 }
  0x6b   : > { %1936 = vmatmul.mubr.msk.bf16.vlgmr.msra.gmra.mrb[4].mxu1 %vm872_vm1, %v2481_v45  ;;  %1119 = vmatpush1.bf16.msra.mxu0 %v2102_v2  ;;  %v2174_v2 = vld [vmem:[%s2456_s7 + $0x10c] ss:$92 sps:$4 sm:$0xff]  }
  0x6c   : > { %1162 = vmatpush1.bf16.msra.mxu1 %v2105_v3  ;;  %1120 = vmatprep.subr.bf16.mxu0 %v2110_v4  ;;  %v2172_v3 = vld [vmem:[%s2456_s7 + $0x108] ss:$92 sps:$4 sm:$0xff]   ;;  %v2175_v4 = vld [vmem:[%s2456_s7 + $0x110] ss:$92 sps:$4 sm:$0xff]  }
  0x6d   : > { %1163 = vmatprep.subr.bf16.mxu1 %v2113_v5  ;;  %1150 = vmatprep.mubr.bf16.mxu0 %v2207_v20  ;;  %v2178_v5 = vld [vmem:[%s2456_s7 + $0x1c4] ss:$92 sps:$4 sm:$0xff]  }
  0x6e   : > { %1193 = vmatprep.mubr.bf16.mxu1 %v2207_v20 }
  0x6f   : > { %1121 = vmatpush1.bf16.msra.mxu0 %v2108_v6  ;;  %v447_v6 = vld [vmem:[%s2456_s7 + $0x278] sm:$0x11] }
  0x70   : > { %1164 = vmatpush1.bf16.msra.mxu1 %v2111_v7  ;;  %1122 = vmatprep.subr.bf16.mxu0 %v2116_v8  ;;  %v2176_v7 = vld [vmem:[%s2456_s7 + $0x1c0] ss:$92 sps:$4 sm:$0xff]   ;;  %v2179_v8 = vld [vmem:[%s2456_s7 + $0x1c8] ss:$92 sps:$4 sm:$0xff]   ;;  %v1926_v10 = vcombine.low %v447_v6, %v447_v6 }
  0x71   : > { %1165 = vmatprep.subr.bf16.mxu1 %v2119_v9  ;;  %v1927_v9 = vcombine.high %v447_v6, %v447_v6 }
  0x73   : > { %1123 = vmatpush1.bf16.msra.mxu0 %v2114_v12  ;;  %v938_v12 = vsel %vm876_vm0, %v1926_v10, 0 }
  0x74   : > { %1166 = vmatpush1.bf16.msra.mxu1 %v2117_v13  ;;  %1937 = vmatprep.subr.msk.bf16.mxu0 %vm876_vm0, %v1915_v16 }
  0x75   : > { %1939 = vmatprep.subr.msk.bf16.mxu1 %vm876_vm0, %v1917_v17 }
  0x77   : > { %1125 = vmatpush1.bf16.msra.mxu0 %v902_v18 }
  0x78   : > { %1168 = vmatpush1.bf16.msra.mxu1 %v908_v19  ;;  %1204 = vmatprep.subr.bf16.mxu0 %v2126_v21 }
  0x79   : > { %1247 = vmatprep.subr.bf16.mxu1 %v2129_v22 }
  0x7a   : > { %1938 = vmatmul.mubr.msk.bf16.vlgmr.msra.gmra.mrb[8].mxu0 %vm872_vm1, %v2481_v45 }
  0x7b   : > { %1940 = vmatmul.mubr.msk.bf16.vlgmr.msra.gmra.mrb[8].mxu1 %vm872_vm1, %v2481_v45  ;;  %1205 = vmatpush1.bf16.msra.mxu0 %v2124_v23 }
  0x7c   : > { %1248 = vmatpush1.bf16.msra.mxu1 %v2127_v24  ;;  %1206 = vmatprep.subr.bf16.mxu0 %v2132_v25 }
  0x7d   : > { %1249 = vmatprep.subr.bf16.mxu1 %v2135_v26  ;;  %1236 = vmatprep.mubr.bf16.mxu0 %v2207_v20 }
  0x7e   : > { %1279 = vmatprep.mubr.bf16.mxu1 %v2207_v20 }
  0x7f   : > { %1207 = vmatpush1.bf16.msra.mxu0 %v2130_v27 }
  0x80   : > { %1250 = vmatpush1.bf16.msra.mxu1 %v2133_v28  ;;  %1208 = vmatprep.subr.bf16.mxu0 %v2138_v29 }
  0x81   : > { %1251 = vmatprep.subr.bf16.mxu1 %v2141_v30 }
  0x83   : > { %1209 = vmatpush1.bf16.msra.mxu0 %v2136_v33 }
  0x84   : > { %1252 = vmatpush1.bf16.msra.mxu1 %v2139_v34  ;;  %1941 = vmatprep.subr.msk.bf16.mxu0 %vm876_vm0, %v1919_v35 }
  0x85   : > { %1943 = vmatprep.subr.msk.bf16.mxu1 %vm876_vm0, %v1921_v36 }
  0x87   : > { %1211 = vmatpush1.bf16.msra.mxu0 %v914_v39 }
  0x88   : > { %1254 = vmatpush1.bf16.msra.mxu1 %v920_v40  ;;  %1290 = vmatprep.subr.bf16.mxu0 %v2148_v41 }
  0x89   : > { %1333 = vmatprep.subr.bf16.mxu1 %v2151_v42 }
  0x8a   : > { %1942 = vmatmul.mubr.msk.bf16.vlgmr.msra.gmra.mrb[12].mxu0 %vm872_vm1, %v2481_v45 }
  0x8b   : > { %1944 = vmatmul.mubr.msk.bf16.vlgmr.msra.gmra.mrb[12].mxu1 %vm872_vm1, %v2481_v45  ;;  %1291 = vmatpush1.bf16.msra.mxu0 %v2146_v43 }
  0x8c   : > { %1334 = vmatpush1.bf16.msra.mxu1 %v2149_v44  ;;  %1292 = vmatprep.subr.bf16.mxu0 %v2154_v46 }
  0x8d   : > { %1335 = vmatprep.subr.bf16.mxu1 %v2157_v47  ;;  %1322 = vmatprep.mubr.bf16.mxu0 %v2207_v20 }
  0x8e   : > { %1365 = vmatprep.mubr.bf16.mxu1 %v2207_v20 }
  0x8f   : > { %1293 = vmatpush1.bf16.msra.mxu0 %v2152_v48 }
  0x90   : > { %1336 = vmatpush1.bf16.msra.mxu1 %v2155_v49  ;;  %1294 = vmatprep.subr.bf16.mxu0 %v2160_v50 }
  0x91   : > { %1337 = vmatprep.subr.bf16.mxu1 %v2163_v51 }
  0x93   : > { %1295 = vmatpush1.bf16.msra.mxu0 %v2158_v54 }
  0x94   : > { %1338 = vmatpush1.bf16.msra.mxu1 %v2161_v55  ;;  %1945 = vmatprep.subr.msk.bf16.mxu0 %vm876_vm0, %v1923_v56 }
  0x95   : > { %1947 = vmatprep.subr.msk.bf16.mxu1 %vm876_vm0, %v1925_v57 }
  0x97   : > { %1297 = vmatpush1.bf16.msra.mxu0 %v926_v60 }
  0x98   : > { %1340 = vmatpush1.bf16.msra.mxu1 %v932_v61  ;;  %1376 = vmatprep.subr.bf16.mxu0 %v2170_v62 }
  0x99   : > { %2014 = vmatprep.subr.bf16.mxu1 %v2208_v1 }
  0x9a   : > { %1946 = vmatmul.mubr.msk.bf16.vlgmr.msra.gmra.mrb[16].mxu0 %vm872_vm1, %v2481_v45 }
  0x9b   : > { %1948 = vmatmul.mubr.msk.bf16.vlgmr.msra.gmra.mrb[16].mxu1 %vm872_vm1, %v2481_v45  ;;  %1377 = vmatpush1.bf16.msra.mxu0 %v2168_v63 }
  0x9c   : > { %2015 = vmatpush3.bf16.msra.mxu1 %v2171_v0  ;;  %1378 = vmatprep.subr.bf16.mxu0 %v2174_v2 }
  0x9d   : > { %2016 = vmatprep.subr.bf16.mxu1 %v2208_v1  ;;  %1408 = vmatprep.mubr.bf16.mxu0 %v2207_v20  ;;  %v944_v20 = vsel %vm876_vm0, %v2182_v11, 0 }
  0x9e   : > { %2022 = vmatprep.mubr.msk.bf16.mxu1 %vm2209_vm2, %v2208_v1 }
  0x9f   : > { %1379 = vmatpush1.bf16.msra.mxu0 %v2172_v3 }
  0xa0   : > { %2017 = vmatpush3.bf16.msra.mxu1 %v2175_v4  ;;  %1380 = vmatprep.subr.bf16.mxu0 %v2178_v5 }
  0xa1   : > { %2018 = vmatprep.subr.bf16.mxu1 %v2208_v1 }
  0xa3   : > { %1381 = vmatpush1.bf16.msra.mxu0 %v2176_v7 }
  0xa4   : > { %2019 = vmatpush3.bf16.msra.mxu1 %v2179_v8  ;;  %1949 = vmatprep.subr.msk.bf16.mxu0 %vm876_vm0, %v1927_v9 }
  0xa5   : > { %2020 = vmatprep.subr.bf16.mxu1 %v2208_v1 }
  0xa7   : > { %1383 = vmatpush1.bf16.msra.mxu0 %v938_v12 }
  0xa8   : > { %2021 = vmatpush3.bf16.msra.mxu1 %v944_v20 }
  0xaa   : > { %1950 = vmatmul.mubr.msk.bf16.vlgmr.msra.gmra.mrb[20].mxu0 %vm872_vm1, %v2481_v45 }
  0xab   : > { %2023 = vmatmul.mubr.msk.bf16.vlgmr.msra.gmra.mrb[20].mxu1 %vm872_vm1, %v2481_v45 }
  0xc6   : > { %v2600_v13 = vpop.permute.xlu0 %453 }
  0xca   : > { %v2602_v14 = vpop.permute.xlu0 %458 }
 0x12d   : > { %v980_v15 = vpop.f32.mrb[0].mxu0 }
 0x12e   : > { %v1023_v16 = vpop.f32.mrb[0].mxu1  ;;  %v981_v17 = vadd.f32 %v980_v15, %v2600_v13  ;;  %v982_v19 = vpop.f32.mrb[1].mxu0 }
 0x12f   : > { %v1024_v18 = vadd.f32 %v1023_v16, %v2600_v13  ;;  %v1025_v21 = vpop.f32.mrb[1].mxu1  ;;  %v983_v22 = vadd.f32 %v982_v19, %v2600_v13  ;;  %v984_v24 = vpop.f32.mrb[2].mxu0 }
 0x130   : > { %v1026_v23 = vadd.f32 %v1025_v21, %v2600_v13  ;;  %v1027_v45 = vpop.f32.mrb[2].mxu1  ;;  %v1460_v25 = vmax.f32 %v981_v17, 0.0  ;;  %v985_v27 = vadd.f32 %v984_v24, %v2602_v14  ;;  %v986_v29 = vpop.f32.mrb[3].mxu0 }
 0x131   : > { %v1462_v26 = vmax.f32 %v1024_v18, 0.0  ;;  %v1028_v28 = vadd.f32 %v1027_v45, %v2602_v14  ;;  %v1029_v30 = vpop.f32.mrb[3].mxu1  ;;  %v1461_v31 = vmax.f32 %v983_v22, 0.0  ;;  %v987_v33 = vadd.f32 %v986_v29, %v2602_v14 }
 0x132   : > { %v1463_v32 = vmax.f32 %v1026_v23, 0.0  ;;  %v1030_v34 = vadd.f32 %v1029_v30, %v2602_v14  ;;  %v1483_v35 = vmax.f32 %v985_v27, 0.0 }
 0x133   : > { %v1485_v36 = vmax.f32 %v1028_v28, 0.0  ;;  %v1984_v37 = vpack.c.bf16 %v1461_v31, %v1460_v25  ;;  %v1484_v39 = vmax.f32 %v987_v33, 0.0 }
 0x134   : > { %v1985_v38 = vpack.c.bf16 %v1463_v32, %v1462_v26  ;;  %v1486_v40 = vmax.f32 %v1030_v34, 0.0 }
 0x135   : > { %1646 = vst [vmem:[%s2614_s11] sm:$0xff] %v1984_v37  ;;  %v1996_v41 = vpack.c.bf16 %v1484_v39, %v1483_v35 }
 0x136   : > { %1647 = vst [vmem:[%s2614_s11 + $0x8] sm:$0xff] %v1985_v38  ;;  %v1997_v42 = vpack.c.bf16 %v1486_v40, %v1485_v36 }
 0x137   : > { %1658 = vst [vmem:[%s2614_s11 + $0x5c] sm:$0xff] %v1996_v41 }
 0x138   : > { %1659 = vst [vmem:[%s2614_s11 + $0x64] sm:$0xff] %v1997_v42 }
 0x13d   : > { %v1066_v43 = vpop.f32.mrb[4].mxu0 }
 0x13e   : > { %v1109_v44 = vpop.f32.mrb[4].mxu1  ;;  %v1067_v46 = vadd.f32 %v1066_v43, %v2600_v13  ;;  %v1068_v48 = vpop.f32.mrb[5].mxu0 }
 0x13f   : > { %v1110_v47 = vadd.f32 %v1109_v44, %v2600_v13  ;;  %v1111_v49 = vpop.f32.mrb[5].mxu1  ;;  %v1069_v50 = vadd.f32 %v1068_v48, %v2600_v13  ;;  %v1070_v52 = vpop.f32.mrb[6].mxu0 }
 0x140   : > { %v1112_v51 = vadd.f32 %v1111_v49, %v2600_v13  ;;  %v1113_v53 = vpop.f32.mrb[6].mxu1  ;;  %v1464_v54 = vmax.f32 %v1067_v46, 0.0  ;;  %v1071_v56 = vadd.f32 %v1070_v52, %v2602_v14  ;;  %v1072_v58 = vpop.f32.mrb[7].mxu0 }
 0x141   : > { %v1466_v55 = vmax.f32 %v1110_v47, 0.0  ;;  %v1114_v57 = vadd.f32 %v1113_v53, %v2602_v14  ;;  %v1115_v59 = vpop.f32.mrb[7].mxu1  ;;  %v1465_v60 = vmax.f32 %v1069_v50, 0.0  ;;  %v1073_v62 = vadd.f32 %v1072_v58, %v2602_v14 }
 0x142   : > { %v1467_v61 = vmax.f32 %v1112_v51, 0.0  ;;  %v1116_v63 = vadd.f32 %v1115_v59, %v2602_v14  ;;  %v1487_v0 = vmax.f32 %v1071_v56, 0.0 }
 0x143   : > { %v1489_v1 = vmax.f32 %v1114_v57, 0.0  ;;  %v1986_v2 = vpack.c.bf16 %v1465_v60, %v1464_v54  ;;  %v1488_v4 = vmax.f32 %v1073_v62, 0.0 }
 0x144   : > { %v1987_v3 = vpack.c.bf16 %v1467_v61, %v1466_v55  ;;  %v1490_v5 = vmax.f32 %v1116_v63, 0.0 }
 0x145   : > { %1648 = vst [vmem:[%s2614_s11 + $0x10] sm:$0xff] %v1986_v2  ;;  %v1998_v6 = vpack.c.bf16 %v1488_v4, %v1487_v0 }
 0x146   : > { %1649 = vst [vmem:[%s2614_s11 + $0x18] sm:$0xff] %v1987_v3  ;;  %v1999_v7 = vpack.c.bf16 %v1490_v5, %v1489_v1 }
 0x147   : > { %1660 = vst [vmem:[%s2614_s11 + $0x6c] sm:$0xff] %v1998_v6 }
 0x148   : > { %1661 = vst [vmem:[%s2614_s11 + $0x74] sm:$0xff] %v1999_v7 }
 0x14d   : > { %v1152_v8 = vpop.f32.mrb[8].mxu0 }
 0x14e   : > { %v1195_v9 = vpop.f32.mrb[8].mxu1  ;;  %v1153_v10 = vadd.f32 %v1152_v8, %v2600_v13  ;;  %v1154_v12 = vpop.f32.mrb[9].mxu0 }
 0x14f   : > { %v1196_v11 = vadd.f32 %v1195_v9, %v2600_v13  ;;  %v1197_v20 = vpop.f32.mrb[9].mxu1  ;;  %v1155_v15 = vadd.f32 %v1154_v12, %v2600_v13  ;;  %v1156_v17 = vpop.f32.mrb[10].mxu0 }
 0x150   : > { %v1198_v16 = vadd.f32 %v1197_v20, %v2600_v13  ;;  %v1199_v18 = vpop.f32.mrb[10].mxu1  ;;  %v1468_v19 = vmax.f32 %v1153_v10, 0.0  ;;  %v1157_v22 = vadd.f32 %v1156_v17, %v2602_v14  ;;  %v1158_v24 = vpop.f32.mrb[11].mxu0 }
 0x151   : > { %v1470_v21 = vmax.f32 %v1196_v11, 0.0  ;;  %v1200_v23 = vadd.f32 %v1199_v18, %v2602_v14  ;;  %v1201_v45 = vpop.f32.mrb[11].mxu1  ;;  %v1469_v25 = vmax.f32 %v1155_v15, 0.0  ;;  %v1159_v27 = vadd.f32 %v1158_v24, %v2602_v14 }
 0x152   : > { %v1471_v26 = vmax.f32 %v1198_v16, 0.0  ;;  %v1202_v28 = vadd.f32 %v1201_v45, %v2602_v14  ;;  %v1491_v29 = vmax.f32 %v1157_v22, 0.0 }
 0x153   : > { %v1493_v30 = vmax.f32 %v1200_v23, 0.0  ;;  %v1988_v31 = vpack.c.bf16 %v1469_v25, %v1468_v19  ;;  %v1492_v33 = vmax.f32 %v1159_v27, 0.0 }
 0x154   : > { %v1989_v32 = vpack.c.bf16 %v1471_v26, %v1470_v21  ;;  %v1494_v34 = vmax.f32 %v1202_v28, 0.0 }
 0x155   : > { %1650 = vst [vmem:[%s2614_s11 + $0x20] sm:$0xff] %v1988_v31  ;;  %v2000_v35 = vpack.c.bf16 %v1492_v33, %v1491_v29 }
 0x156   : > { %1651 = vst [vmem:[%s2614_s11 + $0x28] sm:$0xff] %v1989_v32  ;;  %v2001_v36 = vpack.c.bf16 %v1494_v34, %v1493_v30 }
 0x157   : > { %1662 = vst [vmem:[%s2614_s11 + $0x7c] sm:$0xff] %v2000_v35 }
 0x158   : > { %1663 = vst [vmem:[%s2614_s11 + $0x84] sm:$0xff] %v2001_v36 }
 0x15d   : > { %v1238_v37 = vpop.f32.mrb[12].mxu0 }
 0x15e   : > { %v1281_v38 = vpop.f32.mrb[12].mxu1  ;;  %v1239_v39 = vadd.f32 %v1238_v37, %v2600_v13  ;;  %v1240_v41 = vpop.f32.mrb[13].mxu0 }
 0x15f   : > { %v1282_v40 = vadd.f32 %v1281_v38, %v2600_v13  ;;  %v1283_v42 = vpop.f32.mrb[13].mxu1  ;;  %v1241_v43 = vadd.f32 %v1240_v41, %v2600_v13  ;;  %v1242_v46 = vpop.f32.mrb[14].mxu0 }
 0x160   : > { %v1284_v44 = vadd.f32 %v1283_v42, %v2600_v13  ;;  %v1285_v47 = vpop.f32.mrb[14].mxu1  ;;  %v1472_v48 = vmax.f32 %v1239_v39, 0.0  ;;  %v1243_v50 = vadd.f32 %v1242_v46, %v2602_v14  ;;  %v1244_v52 = vpop.f32.mrb[15].mxu0 }
 0x161   : > { %v1474_v49 = vmax.f32 %v1282_v40, 0.0  ;;  %v1286_v51 = vadd.f32 %v1285_v47, %v2602_v14  ;;  %v1287_v53 = vpop.f32.mrb[15].mxu1  ;;  %v1473_v54 = vmax.f32 %v1241_v43, 0.0  ;;  %v1245_v56 = vadd.f32 %v1244_v52, %v2602_v14 }
 0x162   : > { %v1475_v55 = vmax.f32 %v1284_v44, 0.0  ;;  %v1288_v57 = vadd.f32 %v1287_v53, %v2602_v14  ;;  %v1495_v58 = vmax.f32 %v1243_v50, 0.0 }
 0x163   : > { %v1497_v59 = vmax.f32 %v1286_v51, 0.0  ;;  %v1990_v60 = vpack.c.bf16 %v1473_v54, %v1472_v48  ;;  %v1496_v62 = vmax.f32 %v1245_v56, 0.0  ;;  %v1698_v56 = vld [vmem:[%s2614_s11 + $0x10] sm:$0xff] (%p2260_p5) }
 0x164   : > { %v1991_v61 = vpack.c.bf16 %v1475_v55, %v1474_v49  ;;  %v1498_v63 = vmax.f32 %v1288_v57, 0.0  ;;  %v1696_v55 = vld [vmem:[%s2614_s11 + $0x8] sm:$0xff] (%p2260_p5)  ;;  %v1700_v57 = vld [vmem:[%s2614_s11 + $0x18] sm:$0xff] (%p2260_p5)  ;;  %1699 = vst [vmem:[%s2691_s18 + $0x10] sm:$0xff] (%p2260_p5), %v1698_v56 }
 0x165   : > { %1652 = vst [vmem:[%s2614_s11 + $0x30] sm:$0xff] %v1990_v60  ;;  %v2002_v0 = vpack.c.bf16 %v1496_v62, %v1495_v58  ;;  %v1702_v58 = vld [vmem:[%s2614_s11 + $0x20] sm:$0xff] (%p2260_p5)  ;;  %1697 = vst [vmem:[%s2691_s18 + $0x8] sm:$0xff] (%p2260_p5), %v1696_v55 }
 0x166   : > { %1653 = vst [vmem:[%s2614_s11 + $0x38] sm:$0xff] %v1991_v61  ;;  %v2003_v1 = vpack.c.bf16 %v1498_v63, %v1497_v59  ;;  %v1704_v59 = vld [vmem:[%s2614_s11 + $0x28] sm:$0xff] (%p2260_p5)  ;;  %1701 = vst [vmem:[%s2691_s18 + $0x18] sm:$0xff] (%p2260_p5), %v1700_v57 }
 0x167   : > { %1664 = vst [vmem:[%s2614_s11 + $0x8c] sm:$0xff] %v2002_v0  ;;  %1703 = vst [vmem:[%s2691_s18 + $0x20] sm:$0xff] (%p2260_p5), %v1702_v58 }
 0x168   : > { %1665 = vst [vmem:[%s2614_s11 + $0x94] sm:$0xff] %v2003_v1  ;;  %1705 = vst [vmem:[%s2691_s18 + $0x28] sm:$0xff] (%p2260_p5), %v1704_v59  ;;  %v1716_v1 = vld [vmem:[%s2614_s11 + $0x5c] sm:$0xff] (%p2260_p5) }
 0x169   : > { %1717 = vst [vmem:[%s2691_s18 + $0x114] sm:$0xff] (%p2260_p5), %v1716_v1 }
 0x16c   : > { %v1706_v60 = vld [vmem:[%s2614_s11 + $0x30] sm:$0xff] (%p2260_p5) }
 0x16d   : > { %v1324_v2 = vpop.f32.mrb[16].mxu0  ;;  %v1708_v61 = vld [vmem:[%s2614_s11 + $0x38] sm:$0xff] (%p2260_p5)  ;;  %1707 = vst [vmem:[%s2691_s18 + $0x30] sm:$0xff] (%p2260_p5), %v1706_v60 }
 0x16e   : > { %v1367_v3 = vpop.f32.mrb[16].mxu1  ;;  %v1325_v4 = vadd.f32 %v1324_v2, %v2600_v13  ;;  %v1326_v6 = vpop.f32.mrb[17].mxu0  ;;  %1709 = vst [vmem:[%s2691_s18 + $0x38] sm:$0xff] (%p2260_p5), %v1708_v61  ;;  %v1718_v2 = vld [vmem:[%s2614_s11 + $0x64] sm:$0xff] (%p2260_p5) }
 0x16f   : > { %v1368_v5 = vadd.f32 %v1367_v3, %v2600_v13  ;;  %v1369_v7 = vpop.f32.mrb[17].mxu1  ;;  %v1327_v8 = vadd.f32 %v1326_v6, %v2600_v13  ;;  %v1328_v10 = vpop.f32.mrb[18].mxu0  ;;  %v1720_v3 = vld [vmem:[%s2614_s11 + $0x6c] sm:$0xff] (%p2260_p5)  ;;  %1719 = vst [vmem:[%s2691_s18 + $0x11c] sm:$0xff] (%p2260_p5), %v1718_v2  ;;  %v1726_v6 = vld [vmem:[%s2614_s11 + $0x84] sm:$0xff] (%p2260_p5) }
 0x170   : > { %v1370_v9 = vadd.f32 %v1369_v7, %v2600_v13  ;;  %v1371_v11 = vpop.f32.mrb[18].mxu1  ;;  %v1476_v12 = vmax.f32 %v1325_v4, 0.0  ;;  %v1329_v15 = vadd.f32 %v1328_v10, %v2602_v14  ;;  %v1330_v17 = vpop.f32.mrb[19].mxu0  ;;  %v1722_v4 = vld [vmem:[%s2614_s11 + $0x74] sm:$0xff] (%p2260_p5)  ;;  %1721 = vst [vmem:[%s2691_s18 + $0x124] sm:$0xff] (%p2260_p5), %v1720_v3  ;;  %v1728_v7 = vld [vmem:[%s2614_s11 + $0x8c] sm:$0xff] (%p2260_p5) }
 0x171   : > { %v1478_v20 = vmax.f32 %v1368_v5, 0.0  ;;  %v1372_v16 = vadd.f32 %v1371_v11, %v2602_v14  ;;  %v1373_v18 = vpop.f32.mrb[19].mxu1  ;;  %v1477_v19 = vmax.f32 %v1327_v8, 0.0  ;;  %v1331_v22 = vadd.f32 %v1330_v17, %v2602_v14  ;;  %1723 = vst [vmem:[%s2691_s18 + $0x12c] sm:$0xff] (%p2260_p5), %v1722_v4  ;;  %v1724_v5 = vld [vmem:[%s2614_s11 + $0x7c] sm:$0xff] (%p2260_p5)  ;;  %1727 = vst [vmem:[%s2691_s18 + $0x13c] sm:$0xff] (%p2260_p5), %v1726_v6 }
 0x172   : > { %v1479_v21 = vmax.f32 %v1370_v9, 0.0  ;;  %v1374_v23 = vadd.f32 %v1373_v18, %v2602_v14  ;;  %v1499_v24 = vmax.f32 %v1329_v15, 0.0  ;;  %1725 = vst [vmem:[%s2691_s18 + $0x134] sm:$0xff] (%p2260_p5), %v1724_v5  ;;  %1729 = vst [vmem:[%s2691_s18 + $0x144] sm:$0xff] (%p2260_p5), %v1728_v7  ;;  %v1730_v8 = vld [vmem:[%s2614_s11 + $0x94] sm:$0xff] (%p2260_p5) }
 0x173   : > { %v1501_v45 = vmax.f32 %v1372_v16, 0.0  ;;  %v1992_v25 = vpack.c.bf16 %v1477_v19, %v1476_v12  ;;  %v1500_v27 = vmax.f32 %v1331_v22, 0.0  ;;  %1731 = vst [vmem:[%s2691_s18 + $0x14c] sm:$0xff] (%p2260_p5), %v1730_v8 }
 0x174   : > { %v1993_v26 = vpack.c.bf16 %v1479_v21, %v1478_v20  ;;  %v1502_v28 = vmax.f32 %v1374_v23, 0.0 }
 0x175   : > { %1654 = vst [vmem:[%s2614_s11 + $0x40] sm:$0xff] %v1992_v25  ;;  %v2004_v29 = vpack.c.bf16 %v1500_v27, %v1499_v24 }
 0x176   : > { %1655 = vst [vmem:[%s2614_s11 + $0x48] sm:$0xff] %v1993_v26  ;;  %v2005_v30 = vpack.c.bf16 %v1502_v28, %v1501_v45 }
 0x177   : > { %1666 = vst [vmem:[%s2614_s11 + $0x9c] sm:$0xff] %v2004_v29 }
 0x178   : > { %1667 = vst [vmem:[%s2614_s11 + $0xa4] sm:$0xff] %v2005_v30 }
 0x17c   : > { %v1710_v62 = vld [vmem:[%s2614_s11 + $0x40] sm:$0xff] (%p2260_p5) }
 0x17d   : > { %v1410_v31 = vpop.f32.mrb[20].mxu0  ;;  %1711 = vst [vmem:[%s2691_s18 + $0x40] sm:$0xff] (%p2260_p5), %v1710_v62  ;;  %v1712_v63 = vld [vmem:[%s2614_s11 + $0x48] sm:$0xff] (%p2260_p5) }
 0x17e   : > { %v1453_v32 = vpop.f32.mrb[20].mxu1  ;;  %v1411_v33 = vadd.f32 %v1410_v31, %v2600_v13  ;;  %v1412_v35 = vpop.f32.mrb[21].mxu0  ;;  %1713 = vst [vmem:[%s2691_s18 + $0x48] sm:$0xff] (%p2260_p5), %v1712_v63  ;;  %v1732_v9 = vld [vmem:[%s2614_s11 + $0x9c] sm:$0xff] (%p2260_p5) }
 0x17f   : > { %v1454_v34 = vadd.f32 %v1453_v32, %v2600_v13  ;;  %v2024_v36 = vpop.f32.mrb[21].mxu1  ;;  %v1413_v37 = vadd.f32 %v1412_v35, %v2600_v13  ;;  %v1414_v38 = vpop.f32.mrb[22].mxu0  ;;  %v1734_v10 = vld [vmem:[%s2614_s11 + $0xa4] sm:$0xff] (%p2260_p5)  ;;  %1733 = vst [vmem:[%s2691_s18 + $0x154] sm:$0xff] (%p2260_p5), %v1732_v9 }
 0x180   : > { %v1456_v39 = vpop.f32.mrb[22].mxu1  ;;  %v1480_v40 = vmax.f32 %v1411_v33, 0.0  ;;  %v1415_v42 = vadd.f32 %v1414_v38, %v2602_v14  ;;  %v1416_v44 = vpop.f32.mrb[23].mxu0  ;;  %1735 = vst [vmem:[%s2691_s18 + $0x15c] sm:$0xff] (%p2260_p5), %v1734_v10 }
 0x181   : > { %v1482_v41 = vmax.f32 %v1454_v34, 0.0  ;;  %v1457_v43 = vadd.f32 %v1456_v39, %v2602_v14  ;;  %v2025_v46 = vpop.f32.mrb[23].mxu1  ;;  %v1481_v47 = vmax.f32 %v1413_v37, 0.0  ;;  %v1417_v48 = vadd.f32 %v1416_v44, %v2602_v14  ;;  %1676 = sbr.rel (!%p2260_p5) target bundleno = 400 (0x190), region = 62  ;;  %v1694_v14 = vld [vmem:[%s2614_s11] sm:$0xff] (%p2260_p5) }
 0x182   : > { %v1503_v50 = vmax.f32 %v1415_v42, 0.0  ;;  %1695 = vst [vmem:[%s2691_s18] sm:$0xff] (%p2260_p5), %v1694_v14 }
 0x183   : > { %v1995_v49 = vpack.c.bf16 %v1482_v41, %v1482_v41  ;;  %v1505_v13 = vmax.f32 %v1457_v43, 0.0  ;;  %v1994_v51 = vpack.c.bf16 %v1481_v47, %v1480_v40  ;;  %v1504_v52 = vmax.f32 %v1417_v48, 0.0 }
 0x185   : > { %1657 = vst [vmem:[%s2614_s11 + $0x58] sm:$0xf] %v1995_v49  ;;  %v2007_v53 = vpack.c.bf16 %v1505_v13, %v1505_v13  ;;  %1656 = vst [vmem:[%s2614_s11 + $0x50] sm:$0xff] %v1994_v51  ;;  %v2006_v54 = vpack.c.bf16 %v1504_v52, %v1503_v50 }
 0x187   : > { %1669 = vst [vmem:[%s2614_s11 + $0xb4] sm:$0xf] %v2007_v53  ;;  %1668 = vst [vmem:[%s2614_s11 + $0xac] sm:$0xff] %v2006_v54 }
 0x18c   : > { %v1714_v0 = vld [vmem:[%s2614_s11 + $0x50] sm:$0xff]  ;;  %v1977_v12 = vld [vmem:[%s2614_s11 + $0x58] sm:$0xf] }
 0x18d   : > { %1715 = vst [vmem:[%s2691_s18 + $0x50] sm:$0xff] %v1714_v0  ;;  %1978 = vst [vmem:[%s2691_s18 + $0x58] sm:$0xf] %v1977_v12 }
 0x18e   : > { %v1736_v11 = vld [vmem:[%s2614_s11 + $0xac] sm:$0xff]  ;;  %v1979_v20 = vld [vmem:[%s2614_s11 + $0xb4] sm:$0xf] }
 0x18f   : > { %1737 = vst [vmem:[%s2691_s18 + $0x164] sm:$0xff] %v1736_v11  ;;  %1980 = vst [vmem:[%s2691_s18 + $0x16c] sm:$0xf] %v1979_v20 }
 0x190 PF: > { %p10_p10 = scmp.ge.s32.totalorder %s2247_s16, 5   ;;  %s2750_s12 = smov %s2201_s13 }
 0x191   : > { %s2751_s13 = smov %s2258_s19  ;;  %s2752_s14 = smov %s2247_s16 }
 0x192   :  { %12 = sbr.rel (!%p10_p10) target bundleno = 2 (0x2), region = 131 }

// kernel: cnn_lstm_attention_forward.4
= control target key start
LH: loop header
LB: loop body
LE: loop exit
PB: predicated region body
PF: predicated region fallthrough
CT: control target
= control target key end

     0   :  { %v932_v1 = vmov 0   ;;  %vm437_vm0 = vcmask 261120   ;;  %vm701_vm1 = vcmask 601088   ;;  %s1197_s0 = inlined_call_operand.vmem [shape: bf16[288,330], index: 0, kind: input, shape index: {}]   ;;  %s1198_s1 = inlined_call_operand.vmem [shape: bf16[32,288], index: 1, kind: input, shape index: {}]   ;;  %s1199_s2 = inlined_call_operand.vmem [shape: f32[32,1], index: 2, kind: input, shape index: {}]   ;;  %s1200_s3 = inlined_call_operand.vmem [shape: bf16[32,330], index: 3, kind: output, shape index: {}]  }
   0x1   :  { %v852_v0 = vld [vmem:[%s1197_s0 + $0x4] ss:$12 sps:$4 sm:$0xff]   ;;  %529 = vmatprep.mubr.bf16.mxu1 %v932_v1  ;;  %850 = vset.pattern.permute.xlu0 %v932_v1  ;;  %v854_v2 = vld [vmem:[%s1197_s0] ss:$12 sps:$4 sm:$0xff]   ;;  %v857_v4 = vld [vmem:[%s1197_s0 + $0x1c] ss:$12 sps:$4 sm:$0xff]  }
   0x2   :  { %851 = vset.pattern.permute.xlu1 %v932_v1  ;;  %444 = vmatprep.subr.bf16.mxu0 %v852_v0  ;;  %v855_v3 = vld [vmem:[%s1197_s0 + $0x184] ss:$12 sps:$4 sm:$0xff]   ;;  %v859_v5 = vld [vmem:[%s1197_s0 + $0x180] ss:$12 sps:$4 sm:$0xff]   ;;  %v861_v7 = vld [vmem:[%s1197_s0 + $0x19c] ss:$12 sps:$4 sm:$0xff]  }
   0x3   :  { %445 = vmatpush1.bf16.msra.mxu0 %v854_v2  ;;  %v860_v6 = vld [vmem:[%s1197_s0 + $0x18] ss:$12 sps:$4 sm:$0xff]   ;;  %497 = vmatprep.subr.bf16.mxu1 %v855_v3  ;;  %v863_v8 = vld [vmem:[%s1197_s0 + $0x34] ss:$12 sps:$4 sm:$0xff]   ;;  %v866_v10 = vld [vmem:[%s1197_s0 + $0x30] ss:$12 sps:$4 sm:$0xff]  }
   0x4   :  { %446 = vmatprep.subr.bf16.mxu0 %v857_v4  ;;  %498 = vmatpush1.bf16.msra.mxu1 %v859_v5  ;;  %v865_v9 = vld [vmem:[%s1197_s0 + $0x198] ss:$12 sps:$4 sm:$0xff]   ;;  %v867_v11 = vld [vmem:[%s1197_s0 + $0xc8] ss:$12 sps:$4 sm:$0xff]   ;;  %v873_v16 = vld [vmem:[%s1197_s0 + $0xe0] ss:$12 sps:$4 sm:$0xff]  }
   0x5   :  { %499 = vmatprep.subr.bf16.mxu1 %v861_v7  ;;  %v868_v12 = vld [vmem:[%s1197_s0 + $0x4c] ss:$12 sps:$4 sm:$0xff]   ;;  %v992_v13 = vld [vmem:[%s1198_s1 + $0x8] ss:$12 sps:$4 sm:$0xff]   ;;  %v874_v17 = vld [vmem:[%s1197_s0 + $0x64] ss:$12 sps:$4 sm:$0xff]  }
   0x6   :  { %v871_v14 = vld [vmem:[%s1197_s0 + $0x8] ss:$12 sps:$4 sm:$0xff]   ;;  %v876_v18 = vld [vmem:[%s1197_s0 + $0x20] ss:$12 sps:$4 sm:$0xff]   ;;  %v878_v20 = vld [vmem:[%s1197_s0 + $0xf8] ss:$12 sps:$4 sm:$0xff]  }
   0x7   :  { %447 = vmatpush1.bf16.msra.mxu0 %v860_v6  ;;  %v872_v15 = vld [vmem:[%s1197_s0 + $0x48] ss:$12 sps:$4 sm:$0xff]   ;;  %v877_v19 = vld [vmem:[%s1197_s0 + $0x60] ss:$12 sps:$4 sm:$0xff]   ;;  %v881_v22 = vld [vmem:[%s1197_s0 + $0x38] ss:$12 sps:$4 sm:$0xff]  }
   0x8   :  { %448 = vmatprep.subr.bf16.mxu0 %v863_v8  ;;  %500 = vmatpush1.bf16.msra.mxu1 %v865_v9  ;;  %v879_v21 = vld [vmem:[%s1197_s0 + $0x7c] ss:$12 sps:$4 sm:$0xff]   ;;  %v882_v24 = vld [vmem:[%s1197_s0 + $0x78] ss:$12 sps:$4 sm:$0xff]   ;;  %v884_v25 = vld [vmem:[%s1197_s0 + $0x94] ss:$12 sps:$4 sm:$0xff]  }
   0x9   :  { %793 = vmatprep.subr.bf16.mxu1 %v867_v11  ;;  %v883_v23 = vld [vmem:[%s1197_s0 + $0x110] ss:$12 sps:$4 sm:$0xff]   ;;  %v888_v27 = vld [vmem:[%s1197_s0 + $0x128] ss:$12 sps:$4 sm:$0xff]   ;;  %v889_v29 = vld [vmem:[%s1197_s0 + $0xac] ss:$12 sps:$4 sm:$0xff]  }
   0xa   :  { %v886_v26 = vld [vmem:[%s1197_s0 + $0x50] ss:$12 sps:$4 sm:$0xff]   ;;  %v891_v30 = vld [vmem:[%s1197_s0 + $0x68] ss:$12 sps:$4 sm:$0xff]   ;;  %v893_v31 = vld [vmem:[%s1197_s0 + $0x140] ss:$12 sps:$4 sm:$0xff]  }
   0xb   :  { %449 = vmatpush1.bf16.msra.mxu0 %v866_v10  ;;  %773 = vmatmul.mubr.msk.bf16.vlgmr.msra.gmra.mrb[0].mxu1 %vm437_vm0, %v992_v13  ;;  %v887_v28 = vld [vmem:[%s1197_s0 + $0x90] ss:$12 sps:$4 sm:$0xff]   ;;  %v892_v32 = vld [vmem:[%s1197_s0 + $0xa8] ss:$12 sps:$4 sm:$0xff]   ;;  %v1059_v34 = vld [vmem:[%s1198_s1 + $0x20] ss:$12 sps:$4 sm:$0xff]  }
   0xc   :  { %450 = vmatprep.subr.bf16.mxu0 %v868_v12  ;;  %794 = vmatpush3.bf16.msra.mxu1 %v871_v14  ;;  %v894_v33 = vld [vmem:[%s1197_s0 + $0xc4] ss:$12 sps:$4 sm:$0xff]   ;;  %v896_v35 = vld [vmem:[%s1197_s0 + $0x80] ss:$12 sps:$4 sm:$0xff]   ;;  %v900_v38 = vld [vmem:[%s1197_s0 + $0xdc] ss:$12 sps:$4 sm:$0xff]  }
   0xd   :  { %539 = vmatprep.mubr.bf16.mxu1 %v932_v1  ;;  %795 = vmatprep.subr.bf16.mxu1 %v873_v16  ;;  %v899_v36 = vld [vmem:[%s1197_s0 + $0x158] ss:$12 sps:$4 sm:$0xff]   ;;  %v897_v37 = vld [vmem:[%s1197_s0 + $0xc0] ss:$12 sps:$4 sm:$0xff]   ;;  %v904_v40 = vld [vmem:[%s1197_s0 + $0x170] ss:$12 sps:$4 sm:$0xff]  }
   0xe   :  { %v902_v39 = vld [vmem:[%s1197_s0 + $0x98] ss:$12 sps:$4 sm:$0xff]   ;;  %v905_v42 = vld [vmem:[%s1197_s0 + $0xf4] ss:$12 sps:$4 sm:$0xff]   ;;  %v907_v44 = vld [vmem:[%s1197_s0 + $0xb0] ss:$12 sps:$4 sm:$0xff]  }
   0xf   :  { %451 = vmatpush1.bf16.msra.mxu0 %v872_v15  ;;  %v903_v41 = vld [vmem:[%s1197_s0 + $0xd8] ss:$12 sps:$4 sm:$0xff]   ;;  %v908_v45 = vld [vmem:[%s1197_s0 + $0xf0] ss:$12 sps:$4 sm:$0xff]   ;;  %v909_v46 = vld [vmem:[%s1198_s1] ss:$12 sps:$4 sm:$0xff]  }
  0x10   :  { %452 = vmatprep.subr.bf16.mxu0 %v874_v17  ;;  %796 = vmatpush3.bf16.msra.mxu1 %v876_v18  ;;  %v911_v43 = vld [vmem:[%s1198_s1 + $0x4] ss:$12 sps:$4 sm:$0xff]   ;;  %v912_v47 = vld [vmem:[%s1197_s0 + $0x10c] ss:$12 sps:$4 sm:$0xff]   ;;  %v918_v48 = vld [vmem:[%s1198_s1 + $0x1c] ss:$12 sps:$4 sm:$0xff]  }
  0x11   :  { %797 = vmatprep.subr.bf16.mxu1 %v878_v20  ;;  %476 = vmatprep.mubr.bf16.mxu0 %v911_v43  ;;  %v921_v49 = vld [vmem:[%s1197_s0 + $0x188] ss:$12 sps:$4 sm:$0xff]   ;;  %v925_v51 = vld [vmem:[%s1197_s0 + $0x1a0] ss:$12 sps:$4 sm:$0xff]   ;;  %v915_v52 = vld [vmem:[%s1197_s0 + $0x124] ss:$12 sps:$4 sm:$0xff]  }
  0x12   :  { %v914_v50 = vld [vmem:[%s1197_s0 + $0x108] ss:$12 sps:$4 sm:$0xff]   ;;  %v95_v53 = vld [vmem:[%s1199_s2] sm:$0xff]  ;;  %v98_v59 = vld [vmem:[%s1199_s2 + $0x18] sm:$0xff] }
  0x13   :  { %453 = vmatpush1.bf16.msra.mxu0 %v877_v19  ;;  %774 = vmatmul.mubr.msk.bf16.gmra.mrb[4].mxu1 %vm437_vm0, %v1059_v34  ;;  %v917_v54 = vld [vmem:[%s1197_s0 + $0x120] ss:$12 sps:$4 sm:$0xff]   ;;  %v97_v55 = vld [vmem:[%s1199_s2 + $0x10] sm:$0xff]  ;;  %v920_v56 = vld [vmem:[%s1198_s1 + $0x18] ss:$12 sps:$4 sm:$0xff]  }
  0x14   :  { %454 = vmatprep.subr.bf16.mxu0 %v879_v21  ;;  %798 = vmatpush3.bf16.msra.mxu1 %v881_v22  ;;  %v922_v57 = vld [vmem:[%s1197_s0 + $0x13c] ss:$12 sps:$4 sm:$0xff]   ;;  %v924_v60 = vld [vmem:[%s1197_s0 + $0x138] ss:$12 sps:$4 sm:$0xff]   ;;  %v926_v61 = vld [vmem:[%s1197_s0 + $0x154] ss:$12 sps:$4 sm:$0xff]  }
  0x15   :  { %799 = vmatprep.subr.bf16.mxu1 %v883_v23  ;;  %582 = vmatprep.mubr.bf16.mxu1 %v911_v43  ;;  %v96_v58 = vld [vmem:[%s1199_s2 + $0x8] sm:$0xff]  ;;  %v928_v62 = vld [vmem:[%s1197_s0 + $0x150] ss:$12 sps:$4 sm:$0xff]  }
  0x16   :  { %101 = vperm.xlu0 %850, %v95_v53   ;;  %111 = vperm.xlu1 %851, %v97_v55   ;;  %v929_v63 = vld [vmem:[%s1197_s0 + $0x16c] ss:$12 sps:$4 sm:$0xff]   ;;  %v931_v0 = vld [vmem:[%s1197_s0 + $0x168] ss:$12 sps:$4 sm:$0xff]  }
  0x17   :  { %455 = vmatpush1.bf16.msra.mxu0 %v882_v24 }
  0x18   :  { %456 = vmatprep.subr.bf16.mxu0 %v884_v25  ;;  %800 = vmatpush3.bf16.msra.mxu1 %v886_v26 }
  0x19   :  { %801 = vmatprep.subr.bf16.mxu1 %v888_v27 }
  0x1a   :  { %106 = vperm.xlu0 %850, %v96_v58   ;;  %116 = vperm.xlu1 %851, %v98_v59  }
  0x1b   :  { %457 = vmatpush1.bf16.msra.mxu0 %v887_v28 }
  0x1c   :  { %458 = vmatprep.subr.bf16.mxu0 %v889_v29  ;;  %802 = vmatpush3.bf16.msra.mxu1 %v891_v30 }
  0x1d   :  { %803 = vmatprep.subr.bf16.mxu1 %v893_v31 }
  0x1f   :  { %459 = vmatpush1.bf16.msra.mxu0 %v892_v32 }
  0x20   :  { %460 = vmatprep.subr.bf16.mxu0 %v894_v33  ;;  %804 = vmatpush3.bf16.msra.mxu1 %v896_v35 }
  0x21   :  { %805 = vmatprep.subr.bf16.mxu1 %v899_v36 }
  0x23   :  { %461 = vmatpush1.bf16.msra.mxu0 %v897_v37 }
  0x24   :  { %462 = vmatprep.subr.bf16.mxu0 %v900_v38  ;;  %806 = vmatpush3.bf16.msra.mxu1 %v902_v39 }
  0x25   :  { %807 = vmatprep.subr.bf16.mxu1 %v904_v40 }
  0x27   :  { %463 = vmatpush1.bf16.msra.mxu0 %v903_v41 }
  0x28   :  { %464 = vmatprep.subr.bf16.mxu0 %v905_v42  ;;  %808 = vmatpush3.bf16.msra.mxu1 %v907_v44 }
  0x29   :  { %825 = vmatprep.subr.bf16.mxu1 %v921_v49 }
  0x2b   :  { %465 = vmatpush1.bf16.msra.mxu0 %v908_v45  ;;  %583 = vmatmul.mubr.bf16.vlgmr.msra.gmra.mrb[8].mxu1 %v909_v46 }
  0x2c   :  { %466 = vmatprep.subr.bf16.mxu0 %v912_v47  ;;  %590 = vmatprep.mubr.bf16.mxu1 %v918_v48 }
  0x2d   :  { %826 = vmatpush3.bf16.msra.mxu1 %v921_v49 }
  0x2e   :  { %827 = vmatprep.subr.bf16.mxu1 %v925_v51 }
  0x2f   :  { %467 = vmatpush1.bf16.msra.mxu0 %v914_v50 }
  0x30   :  { %468 = vmatprep.subr.bf16.mxu0 %v915_v52 }
  0x31   :  { %828 = vmatpush3.bf16.msra.mxu1 %v925_v51 }
  0x33   :  { %469 = vmatpush1.bf16.msra.mxu0 %v917_v54  ;;  %591 = vmatmul.mubr.bf16.gmra.mrb[12].mxu1 %v920_v56 }
  0x34   :  { %470 = vmatprep.subr.bf16.mxu0 %v922_v57  ;;  %829 = vmatprep.mubr.msk.bf16.mxu1 %vm437_vm0, %v992_v13 }
  0x37   :  { %471 = vmatpush1.bf16.msra.mxu0 %v924_v60 }
  0x38   :  { %472 = vmatprep.subr.bf16.mxu0 %v926_v61 }
  0x3b   :  { %473 = vmatpush1.bf16.msra.mxu0 %v928_v62  ;;  %830 = vmatmul.mubr.msk.bf16.vlgmr.msra.gmra.mrb[16].mxu1 %vm437_vm0, %v1059_v34 }
  0x3c   :  { %474 = vmatprep.subr.bf16.mxu0 %v929_v63 }
  0x3f   :  { %475 = vmatpush1.bf16.msra.mxu0 %v931_v0 }
  0x42   :  { %477 = vmatmul.mubr.bf16.vlgmr.msra.gmra.mrb[0].mxu0 %v909_v46 }
  0x43   :  { %486 = vmatprep.mubr.bf16.mxu0 %v918_v48 }
  0x4a   :  { %487 = vmatmul.mubr.bf16.gmra.mrb[4].mxu0 %v920_v56 }
  0x95   :  { %v112_v15 = vpop.permute.xlu1 %111  ;;  %v102_v16 = vpop.permute.xlu0 %101 }
  0x99   :  { %v117_v23 = vpop.permute.xlu1 %116  ;;  %v107_v24 = vpop.permute.xlu0 %106 }
  0xde   :  { %v531_v1 = vpop.f32.mrb[0].mxu1 }
  0xdf   :  { %v533_v2 = vpop.f32.mrb[1].mxu1 }
  0xe0   :  { %v535_v3 = vpop.f32.mrb[2].mxu1 }
  0xe1   :  { %v537_v4 = vpop.f32.mrb[3].mxu1 }
  0xe6   :  { %v1157_v5 = vpop.f32.mrb[4].mxu1 }
  0xe7   :  { %v1159_v6 = vpop.f32.mrb[5].mxu1 }
  0xe8   :  { %v1161_v7 = vpop.f32.mrb[6].mxu1 }
  0xe9   :  { %v1163_v8 = vpop.f32.mrb[7].mxu1 }
  0xfe   :  { %v809_v9 = vpop.f32.mrb[8].mxu1 }
  0xff   :  { %v810_v10 = vpop.f32.mrb[9].mxu1 }
 0x100   :  { %v811_v11 = vadd.f32 %v810_v10, %v809_v9  ;;  %v812_v12 = vpop.f32.mrb[10].mxu1 }
 0x101   :  { %v813_v13 = vpop.f32.mrb[11].mxu1 }
 0x102   :  { %v814_v14 = vadd.f32 %v813_v13, %v812_v12  ;;  %v585_v26 = vadd.f32 %v811_v11, %v102_v16 }
 0x104   :  { %v588_v29 = vadd.f32 %v814_v14, %v107_v24 }
 0x106   :  { %v815_v17 = vpop.f32.mrb[12].mxu1 }
 0x107   :  { %v816_v18 = vpop.f32.mrb[13].mxu1 }
 0x108   :  { %v817_v19 = vadd.f32 %v816_v18, %v815_v17  ;;  %v818_v20 = vpop.f32.mrb[14].mxu1 }
 0x109   :  { %v819_v21 = vpop.f32.mrb[15].mxu1 }
 0x10a   :  { %v820_v22 = vadd.f32 %v819_v21, %v818_v20  ;;  %v593_v25 = vadd.f32 %v817_v19, %v112_v15 }
 0x10c   :  { %v596_v27 = vadd.f32 %v820_v22, %v117_v23 }
 0x10e   :  { %v831_v28 = vpop.f32.mrb[16].mxu1 }
 0x10f   :  { %v633_v30 = vpop.f32.mrb[17].mxu1  ;;  %v642_v31 = vadd.f32 %v831_v28, %v593_v25 }
 0x110   :  { %v634_v32 = vadd.f32 %v633_v30, %v585_v26  ;;  %v832_v33 = vpop.f32.mrb[18].mxu1 }
 0x111   :  { %v636_v34 = vpop.f32.mrb[19].mxu1  ;;  %v656_v35 = vmax.f32 %v642_v31, 0.0  ;;  %v645_v36 = vadd.f32 %v832_v33, %v596_v27 }
 0x112   :  { %v650_v37 = vmax.f32 %v634_v32, 0.0  ;;  %v637_v38 = vadd.f32 %v636_v34, %v588_v29 }
 0x113   :  { %v790_v39 = vpack.c.bf16 %v656_v35, %v656_v35  ;;  %v659_v40 = vmax.f32 %v645_v36, 0.0 }
 0x114   :  { %v786_v41 = vpack.c.bf16 %v650_v37, %v650_v37  ;;  %v653_v42 = vmax.f32 %v637_v38, 0.0 }
 0x115   :  { %v478_v43 = vpop.f32.mrb[0].mxu0  ;;  %706 = vst.msk [vmem:[%s1200_s3 + $0x20] sm:$0xf] %vm701_vm1, %v790_v39  ;;  %v792_v46 = vpack.c.bf16 %v659_v40, %v659_v40 }
 0x116   :  { %v479_v44 = vadd.f32 %v478_v43, %v102_v16  ;;  %v480_v45 = vpop.f32.mrb[1].mxu0  ;;  %702 = vst.msk [vmem:[%s1200_s3 + $0x8] sm:$0xf] %vm701_vm1, %v786_v41  ;;  %v788_v47 = vpack.c.bf16 %v653_v42, %v653_v42 }
 0x117   :  { %v481_v48 = vadd.f32 %v480_v45, %v102_v16  ;;  %v482_v49 = vpop.f32.mrb[2].mxu0  ;;  %708 = vst.msk [vmem:[%s1200_s3 + $0x2c] sm:$0xf] %vm701_vm1, %v792_v46 }
 0x118   :  { %v532_v50 = vadd.f32 %v531_v1, %v479_v44  ;;  %v483_v51 = vadd.f32 %v482_v49, %v107_v24  ;;  %v484_v52 = vpop.f32.mrb[3].mxu0  ;;  %704 = vst.msk [vmem:[%s1200_s3 + $0x14] sm:$0xf] %vm701_vm1, %v788_v47 }
 0x119   :  { %v534_v53 = vadd.f32 %v533_v2, %v481_v48  ;;  %v485_v54 = vadd.f32 %v484_v52, %v107_v24 }
 0x11a   :  { %v648_v55 = vmax.f32 %v532_v50, 0.0  ;;  %v536_v56 = vadd.f32 %v535_v3, %v483_v51 }
 0x11b   :  { %v649_v57 = vmax.f32 %v534_v53, 0.0  ;;  %v538_v58 = vadd.f32 %v537_v4, %v485_v54 }
 0x11c   :  { %v651_v59 = vmax.f32 %v536_v56, 0.0 }
 0x11d   :  { %v785_v60 = vpack.c.bf16 %v649_v57, %v648_v55  ;;  %v652_v61 = vmax.f32 %v538_v58, 0.0  ;;  %v488_v62 = vpop.f32.mrb[4].mxu0 }
 0x11e   :  { %v489_v63 = vadd.f32 %v488_v62, %v112_v15  ;;  %v490_v0 = vpop.f32.mrb[5].mxu0 }
 0x11f   :  { %700 = vst [vmem:[%s1200_s3] sm:$0xff] %v785_v60  ;;  %v787_v1 = vpack.c.bf16 %v652_v61, %v651_v59  ;;  %v491_v9 = vadd.f32 %v490_v0, %v112_v15  ;;  %v492_v10 = vpop.f32.mrb[6].mxu0 }
 0x120   :  { %v542_v2 = vadd.f32 %v1157_v5, %v489_v63  ;;  %v493_v11 = vadd.f32 %v492_v10, %v117_v23  ;;  %v494_v12 = vpop.f32.mrb[7].mxu0 }
 0x121   :  { %703 = vst [vmem:[%s1200_s3 + $0xc] sm:$0xff] %v787_v1  ;;  %v544_v3 = vadd.f32 %v1159_v6, %v491_v9  ;;  %v495_v4 = vadd.f32 %v494_v12, %v117_v23 }
 0x122   :  { %v654_v13 = vmax.f32 %v542_v2, 0.0  ;;  %v546_v14 = vadd.f32 %v1161_v7, %v493_v11 }
 0x123   :  { %v655_v16 = vmax.f32 %v544_v3, 0.0  ;;  %v548_v17 = vadd.f32 %v1163_v8, %v495_v4 }
 0x124   :  { %v657_v18 = vmax.f32 %v546_v14, 0.0 }
 0x125   :  { %v789_v15 = vpack.c.bf16 %v655_v16, %v654_v13  ;;  %v658_v19 = vmax.f32 %v548_v17, 0.0 }
 0x127   :  { %705 = vst [vmem:[%s1200_s3 + $0x18] sm:$0xff] %v789_v15  ;;  %v791_v5 = vpack.c.bf16 %v658_v19, %v657_v18 }
 0x129   :  { %707 = vst [vmem:[%s1200_s3 + $0x24] sm:$0xff] %v791_v5 }

// kernel: cnn_lstm_attention_forward.5
= control target key start
LH: loop header
LB: loop body
LE: loop exit
PB: predicated region body
PF: predicated region fallthrough
CT: control target
= control target key end

     0   :  { %s10769_s0 = inlined_call_operand.vmem [shape: bf16[60,32], index: 0, kind: input, shape index: {}]   ;;  %s10770_s1 = inlined_call_operand.vmem [shape: f32[32,1], index: 1, kind: input, shape index: {}]   ;;  %s10771_s2 = inlined_call_operand.<no memory space> [shape: f32[1,1], index: 2, kind: input, shape index: {}]   ;;  %s10772_s3 = inlined_call_operand.vmem [shape: f32[32,32], index: 3, kind: input, shape index: {}]   ;;  %s10773_s4 = inlined_call_operand.vmem [shape: f32[1,32], index: 4, kind: input, shape index: {}]   ;;  %s10774_s5 = inlined_call_operand.vmem [shape: bf16[12,5000], index: 5, kind: input, shape index: {}]   ;;  %s10775_s6 = inlined_call_operand.vmem [shape: bf16[5000,128], index: 6, kind: input, shape index: {}]   ;;  %s10776_s7 = inlined_call_operand.vmem [shape: f32[1,128], index: 7, kind: input, shape index: {}]   ;;  %s10777_s8 = inlined_call_operand.vmem [shape: f32[32,128], index: 8, kind: input, shape index: {}]   ;;  %s10778_s9 = inlined_call_operand.vmem [shape: f32[32,128], index: 9, kind: input, shape index: {}]   ;;  %s10779_s10 = inlined_call_operand.vmem [shape: f32[1,128], index: 10, kind: input, shape index: {}]   ;;  %s10780_s11 = inlined_call_operand.vmem [shape: f32[32,128], index: 11, kind: input, shape index: {}]   ;;  %s10781_s12 = inlined_call_operand.vmem [shape: f32[32,16], index: 12, kind: input, shape index: {}]   ;;  %s10782_s13 = inlined_call_operand.vmem [shape: f32[1,16], index: 13, kind: input, shape index: {}]   ;;  %s10783_s14 = inlined_call_operand.vmem [shape: f32[16,1], index: 14, kind: input, shape index: {}]   ;;  %s10784_s16 = inlined_call_operand.vmem [shape: f32[64,4], index: 16, kind: input, shape index: {}]   ;;  %s10785_s17 = inlined_call_operand.vmem [shape: f32[1,4], index: 17, kind: input, shape index: {}]   ;;  %s10786_s18 = inlined_call_operand.hbm [shape: f32[2,4], index: 18, kind: output, shape index: {}]   ;;  %s10787_s15 = inlined_call_operand.<no memory space> [shape: f32[1,1], index: 15, kind: input, shape index: {}]  }
   0x1   :  { %10790 = sst [smem:[#allocation7_spill]] %s10769_s0  ;;  %v25_v1 = vstv %s10787_s15 }
   0x2   :  { %10791 = sst [smem:[#allocation8_spill]] %s10770_s1  ;;  %26 = vst [vmem:[#allocation3] sm:$0x1] %v25_v1 }
   0x3   :  { %10792 = sst [smem:[#allocation9_spill]] %s10771_s2 }
   0x4   :  { %s10793_s29 = sld [smem:[#allocation9_spill]] }
   0xa   :  { %v23_v0 = vstv %s10793_s29 }
   0xb   :  { %24 = vst [vmem:[#allocation2] sm:$0x1] %v23_v0 }
   0xc   :  { %s10794_s20 = sld [smem:[#allocation8_spill]]  ;;  %s10795_s27 = sld [smem:[#allocation7_spill]]  ;;  %vm92_vm0 = vcmask 261120   ;;  %v8856_v21 = vmov 0  }
   0xd   :  { %8375 = vset.pattern.permute.xlu1 %v8856_v21  ;;  %8376 = vset.pattern.permute.xlu0 %v8856_v21 }
  0x12   :  { %v81_v2 = vld [vmem:[%s10794_s20] sm:$0xff]  ;;  %v82_v3 = vld [vmem:[%s10794_s20 + $0x8] sm:$0xff]  ;;  %v83_v4 = vld [vmem:[%s10794_s20 + $0x10] sm:$0xff] }
  0x13   :  { %v8153_v5 = vpack.c.bf16 %v82_v3, %v81_v2  ;;  %v84_v6 = vld [vmem:[%s10794_s20 + $0x18] sm:$0xff]  ;;  %v8989_v7 = vld [vmem:[%s10795_s27] sm:$0xff]   ;;  %v8995_v10 = vld [vmem:[%s10795_s27 + $0x8] sm:$0xff]  }
  0x14   :  { %v8157_v8 = vpack.c.bf16 %v84_v6, %v83_v4  ;;  %v7203_v9 = vunpack.c.l.bf16 %v8989_v7  ;;  %v7204_v11 = vunpack.c.h.bf16 %v8989_v7  ;;  %v9004_v12 = vld [vmem:[%s10795_s27 + $0x10] sm:$0xff]   ;;  %v7207_v13 = vunpack.c.l.bf16 %v8995_v10  ;;  %v9014_v15 = vld [vmem:[%s10795_s27 + $0x18] sm:$0xf]  ;;  %v9023_v17 = vld [vmem:[%s10795_s27 + $0x1c] sm:$0x3] }
  0x15   :  { %8154 = vmatprep.subr.bf16.mxu0 %v8153_v5  ;;  %v7208_v14 = vunpack.c.h.bf16 %v8995_v10  ;;  %v7211_v16 = vunpack.c.l.bf16 %v9004_v12  ;;  %v7212_v18 = vunpack.c.h.bf16 %v9004_v12  ;;  %v79_v19 = vunpack.c.l.bf16 %v9014_v15 }
  0x16   :  { %8156 = vmatpush3.bf16.msra.mxu0 %v8153_v5  ;;  %7805 = vmatprep.mubr.msk.f32.mxu0 %vm92_vm0, %v7203_v9  ;;  %v80_v20 = vunpack.c.l.bf16 %v9023_v17 }
  0x17   :  { %8158 = vmatprep.subr.bf16.mxu0 %v8157_v8 }
  0x1a   :  { %8160 = vmatpush3.bf16.msra.mxu0 %v8157_v8 }
  0x1d   :  { %7806 = vmatmul.mubr.msk.f32.vlgmr.msra.gmra.mrb[0].mxu0 %vm92_vm0, %v7204_v11 }
  0x1e   :  { %7808 = vmatprep.mubr.msk.f32.mxu0 %vm92_vm0, %v7207_v13 }
  0x21   :  { %7809 = vmatmul.mubr.msk.f32.gmra.mrb[2].mxu0 %vm92_vm0, %v7208_v14 }
  0x22   :  { %7811 = vmatprep.mubr.msk.f32.mxu0 %vm92_vm0, %v7211_v16 }
  0x25   :  { %7812 = vmatmul.mubr.msk.f32.gmra.mrb[4].mxu0 %vm92_vm0, %v7212_v18 }
  0x26   :  { %7814 = vmatprep.mubr.msk.f32.mxu0 %vm92_vm0, %v79_v19 }
  0x29   :  { %7815 = vmatmul.mubr.msk.f32.gmra.mrb[6].mxu0 %vm92_vm0, %v80_v20 }
  0x2a   :  { %27 = vsyncpa [#allocation5], 0  ;;  %v6781_v22 = vld [vmem:[#allocation2] ss:$0 sm:$0xff]  ;;  %v8385_v8 = vld [vmem:[%s10775_s6 + $0x48] sm:$0xff]   ;;  %vm8858_vm1 = vmmov 0  }
  0x2b   :  { %v8383_v4 = vld [vmem:[%s10775_s6 + $0x40] sm:$0xff]   ;;  %vm339_vm2 = vcmask 1041408   ;;  %v8506_v15 = vld [vmem:[%s10775_s6 + $0x410] sm:$0xff]   ;;  %vm323_vm3 = vcmask 259072   ;;  %v8510_v10 = vld [vmem:[%s10775_s6 + $0x418] sm:$0xff]   ;;  %vm367_vm4 = vcmask 1040384  }
  0x2c   :  { %v8384_v5 = vld [vmem:[%s10775_s6] sm:$0xff]   ;;  %7232 = vmatprep.subr.bf16.mxu0 %v8383_v4  ;;  %vm3200_vm5 = vcmask 64512   ;;  %vm3204_vm6 = vcmask 1043456   ;;  %s8861_s26 = smov 32   ;;  %vm5787_vm7 = vcmask 130048   ;;  %s8866_s20 = smov 5  }
  0x2d   :  { %7233 = vmatpush3.bf16.msra.mxu0 %v8384_v5  ;;  %vm6606_vm8 = vcmask 7168   ;;  %vm6608_vm9 = vcmask 15360   ;;  %vm6610_vm10 = vcmask 23552   ;;  %vm6612_vm11 = vcmask 31744  }
  0x2e   :  { %7234 = vmatprep.subr.bf16.mxu0 %v8385_v8  ;;  %v8434_v8 = vld [vmem:[%s10775_s6 + $0x200] sm:$0xff]   ;;  %vm6614_vm12 = vcmask 39936   ;;  %vm6616_vm13 = vcmask 41984   ;;  %vm6685_vm14 = vcmask 523264   ;;  %vm6765_vm15 = vcmask 25600  }
  0xf0   :  { %v7807_v23 = vpop.f32.mrb[0].mxu0 }
  0xf1   :  { %v189_v24 = vadd.f32 %v7807_v23, %v6781_v22  ;;  %v183_v25 = vpop.f32.mrb[1].mxu0 }
  0xf2   :  { %v184_v26 = vadd.f32 %v6781_v22, %v183_v25  ;;  %v8388_v25 = vld [vmem:[%s10775_s6 + $0x10] sm:$0xff]  }
  0xf3   :  { %v6791_v27 = vmul.f32 -1.442695, %v189_v24  ;;  %v8387_v24 = vld [vmem:[%s10775_s6 + $0x50] sm:$0xff]  }
  0xf4   :  { %v6790_v28 = vmul.f32 -1.442695, %v184_v26  ;;  %v7810_v29 = vpop.f32.mrb[2].mxu0 }
  0xf5   :  { %8696 = vpow2.f32 %v6791_v27  ;;  %v199_v30 = vadd.f32 %v7810_v29, %v6781_v22  ;;  %v193_v31 = vpop.f32.mrb[3].mxu0  ;;  %v8389_v27 = vld [vmem:[%s10775_s6 + $0x58] sm:$0xff]   ;;  %v8391_v29 = vld [vmem:[%s10775_s6 + $0x60] sm:$0xff]  }
  0xf6   :  { %8698 = vpow2.f32 %v6790_v28  ;;  %v194_v33 = vadd.f32 %v6781_v22, %v193_v31  ;;  %v8390_v28 = vld [vmem:[%s10775_s6 + $0x18] sm:$0xff]   ;;  %v8393_v31 = vld [vmem:[%s10775_s6 + $0x68] sm:$0xff]  }
  0xf7   :  { %v6793_v32 = vmul.f32 -1.442695, %v199_v30  ;;  %v8392_v30 = vld [vmem:[%s10775_s6 + $0x20] sm:$0xff]  }
  0xf8   :  { %v7813_v34 = vpop.f32.mrb[4].mxu0  ;;  %v6792_v39 = vmul.f32 -1.442695, %v194_v33  ;;  %v369_v33 = vld [vmem:[%s10772_s3] sm:$0xff] }
  0xf9   :  { %8700 = vpow2.f32 %v6793_v32  ;;  %v209_v35 = vadd.f32 %v7813_v34, %v6781_v22  ;;  %v203_v36 = vpop.f32.mrb[5].mxu0  ;;  %v8394_v32 = vld [vmem:[%s10775_s6 + $0x28] sm:$0xff]  }
  0xfa   :  { %v204_v37 = vadd.f32 %v6781_v22, %v203_v36  ;;  %v370_v34 = vld [vmem:[%s10772_s3 + $0x8] sm:$0xff]  ;;  %v8857_v36 = vmov 0.0|0.0  }
  0xfb   :  { %v6795_v38 = vmul.f32 -1.442695, %v209_v35  ;;  %v8162_v35 = vpack.c.bf16 %v370_v34, %v369_v33  ;;  %8161 = vmatprep.subr.bf16.mxu1 %v8857_v36  ;;  %v8458_v33 = vld [vmem:[%s10775_s6 + $0x230] sm:$0xff]   ;;  %v8461_v34 = vld [vmem:[%s10775_s6 + $0x278] sm:$0xff]  }
  0xfc   :  { %v6794_v40 = vmul.f32 -1.442695, %v204_v37  ;;  %v7816_v41 = vpop.f32.mrb[6].mxu0  ;;  %v8395_v37 = vld [vmem:[%s10775_s6 + $0x70] sm:$0xff]  }
  0xfd   :  { %8702 = vpow2.f32 %v6795_v38  ;;  %v219_v42 = vadd.f32 %v7816_v41, %v6781_v22  ;;  %v213_v43 = vpop.f32.mrb[7].mxu0  ;;  %v8396_v38 = vld [vmem:[%s10775_s6 + $0x30] sm:$0xff]   ;;  %8163 = vmatpush3.bf16.msra.mxu1 %v8162_v35  ;;  %v8397_v41 = vld [vmem:[%s10775_s6 + $0x78] sm:$0xff]  }
  0xfe   :  { %8704 = vpow2.f32 %v6794_v40  ;;  %v214_v44 = vadd.f32 %v6781_v22, %v213_v43  ;;  %v8386_v22 = vld [vmem:[%s10775_s6 + $0x8] sm:$0xff]   ;;  %v372_v40 = vld [vmem:[%s10772_s3 + $0x18] sm:$0xff]  ;;  %8164 = vmatprep.subr.bf16.mxu1 %v8857_v36 }
  0xff   :  { %v8697_v45 = vpop.eup %8696  ;;  %v6797_v46 = vmul.f32 -1.442695, %v219_v42  ;;  %8706 = vpow2.f32 %v6792_v39  ;;  %7235 = vmatpush3.bf16.msra.mxu0 %v8386_v22  ;;  %v371_v39 = vld [vmem:[%s10772_s3 + $0x10] sm:$0xff]  ;;  %v8859_v42 = vmov 0.0   ;;  %v8437_v22 = vld [vmem:[%s10775_s6 + $0x248] sm:$0xff]   ;;  %v8462_v35 = vld [vmem:[%s10775_s6 + $0x238] sm:$0xff]  }
 0x100   :  { %v8699_v47 = vpop.eup %8698  ;;  %v247_v48 = vadd.f32 1.0, %v8697_v45  ;;  %v6796_v49 = vmul.f32 -1.442695, %v214_v44  ;;  %7236 = vmatprep.subr.bf16.mxu0 %v8387_v24  ;;  %7825 = vmatprep.mubr.msk.f32.mxu1 %vm8858_vm1, %v8859_v42  ;;  %v8165_v43 = vpack.c.bf16 %v372_v40, %v371_v39  ;;  %v8399_v44 = vld [vmem:[%s10775_s6 + $0xc0] sm:$0xff]   ;;  %v8398_v45 = vld [vmem:[%s10775_s6 + $0x38] sm:$0xff]   ;;  %v8441_v24 = vld [vmem:[%s10775_s6 + $0x250] sm:$0xff]  }
 0x101   :  { %v246_v50 = vadd.f32 1.0, %v8699_v47  ;;  %8708 = vpow2.f32 %v6797_v46  ;;  %v454_v46 = vld [vmem:[%s10774_s5] sm:$0xff] }
 0x102   :  { %8710 = vrcp.f32 %v247_v48  ;;  %8166 = vmatpush3.bf16.msra.mxu1 %v8165_v43  ;;  %v474_v47 = vld [vmem:[%s10774_s5 + $0xa0] sm:$0x33] }
 0x103   :  { %v8701_v51 = vpop.eup %8700  ;;  %8712 = vrcp.f32 %v246_v50  ;;  %7237 = vmatpush3.bf16.msra.mxu0 %v8388_v25  ;;  %7254 = vmatprep.subr.bf16.mxu1 %v8399_v44  ;;  %v6802_v48 = vcombine.high %v454_v46, %v474_v47  ;;  %v6801_v50 = vcombine.low %v454_v46, %v474_v47  ;;  %v8442_v25 = vld [vmem:[%s10775_s6 + $0x210] sm:$0xff]   ;;  %v8466_v43 = vld [vmem:[%s10775_s6 + $0x300] sm:$0xff]   ;;  %v8469_v44 = vld [vmem:[%s10775_s6 + $0x348] sm:$0xff]  }
 0x104   :  { %v249_v52 = vadd.f32 1.0, %v8701_v51  ;;  %8714 = vpow2.f32 %v6796_v49  ;;  %7238 = vmatprep.subr.bf16.mxu0 %v8389_v27  ;;  %v8401_v49 = vld [vmem:[%s10775_s6 + $0x140] sm:$0xff]   ;;  %v8446_v27 = vld [vmem:[%s10775_s6 + $0x218] sm:$0xff]   ;;  %v8473_v46 = vld [vmem:[%s10775_s6 + $0x350] sm:$0xff]  }
 0x105   :  { %v8402_v51 = vld [vmem:[%s10775_s6 + $0x100] sm:$0xff]   ;;  %3240 = vmatprep.mubr.bf16.mxu0 %v6802_v48  ;;  %v8474_v47 = vld [vmem:[%s10775_s6 + $0x310] sm:$0xff]   ;;  %v8477_v48 = vld [vmem:[%s10775_s6 + $0x358] sm:$0xff]  }
 0x106   :  { %8716 = vrcp.f32 %v249_v52  ;;  %v8405_v52 = vld [vmem:[%s10775_s6 + $0x148] sm:$0xff]  }
 0x107   :  { %v8703_v53 = vpop.eup %8702  ;;  %7239 = vmatpush3.bf16.msra.mxu0 %v8390_v28  ;;  %v8449_v28 = vld [vmem:[%s10775_s6 + $0x260] sm:$0xff]  }
 0x108   :  { %v8705_v54 = vpop.eup %8704  ;;  %v251_v55 = vadd.f32 1.0, %v8703_v53  ;;  %7240 = vmatprep.subr.bf16.mxu0 %v8391_v29  ;;  %v8406_v53 = vld [vmem:[%s10775_s6 + $0x108] sm:$0xff]   ;;  %v8450_v29 = vld [vmem:[%s10775_s6 + $0x220] sm:$0xff]  }
 0x109   :  { %v250_v56 = vadd.f32 1.0, %v8705_v54  ;;  %v8707_v57 = vpop.eup %8706  ;;  %v8409_v54 = vld [vmem:[%s10775_s6 + $0x150] sm:$0xff]  }
 0x10a   :  { %8718 = vrcp.f32 %v251_v55  ;;  %v248_v1 = vadd.f32 1.0, %v8707_v57  ;;  %v8410_v55 = vld [vmem:[%s10775_s6 + $0x110] sm:$0xff]   ;;  %v8414_v57 = vld [vmem:[%s10775_s6 + $0x118] sm:$0xff]  }
 0x10b   :  { %v8709_v58 = vpop.eup %8708  ;;  %8720 = vrcp.f32 %v250_v56  ;;  %7241 = vmatpush3.bf16.msra.mxu0 %v8392_v30  ;;  %v8413_v56 = vld [vmem:[%s10775_s6 + $0x158] sm:$0xff]   ;;  %v8453_v30 = vld [vmem:[%s10775_s6 + $0x268] sm:$0xff]  }
 0x10c   :  { %v8711_v59 = vpop.eup %8710  ;;  %v253_v60 = vadd.f32 1.0, %v8709_v58  ;;  %7242 = vmatprep.subr.bf16.mxu0 %v8393_v31  ;;  %v8417_v58 = vld [vmem:[%s10775_s6 + $0x160] sm:$0xff]   ;;  %v8454_v31 = vld [vmem:[%s10775_s6 + $0x228] sm:$0xff]  }
 0x10d   :  { %v8713_v61 = vpop.eup %8712  ;;  %277 = vperm.xlu1 %8375, %v8711_v59   ;;  %v8418_v59 = vld [vmem:[%s10775_s6 + $0x120] sm:$0xff]  }
 0x10e   :  { %v8715_v62 = vpop.eup %8714  ;;  %8722 = vrcp.f32 %v253_v60  ;;  %272 = vperm.xlu0 %8376, %v8713_v61   ;;  %v8421_v60 = vld [vmem:[%s10775_s6 + $0x168] sm:$0xff]  }
 0x10f   :  { %v252_v63 = vadd.f32 1.0, %v8715_v62  ;;  %7243 = vmatpush3.bf16.msra.mxu0 %v8394_v32  ;;  %v8422_v61 = vld [vmem:[%s10775_s6 + $0x128] sm:$0xff]   ;;  %v8425_v62 = vld [vmem:[%s10775_s6 + $0x170] sm:$0xff]  }
 0x110   :  { %v8717_v0 = vpop.eup %8716  ;;  %7244 = vmatprep.subr.bf16.mxu0 %v8395_v37  ;;  %v8457_v32 = vld [vmem:[%s10775_s6 + $0x270] sm:$0xff]   ;;  %v458_v37 = vld [vmem:[%s10774_s5 + $0x20] sm:$0xff] }
 0x111   :  { %8724 = vrcp.f32 %v252_v63  ;;  %v8426_v63 = vld [vmem:[%s10775_s6 + $0x130] sm:$0xff]  }
 0x112   :  { %287 = vperm.xlu0 %8376, %v8717_v0   ;;  %8726 = vrcp.f32 %v248_v1  ;;  %v8429_v0 = vld [vmem:[%s10775_s6 + $0x178] sm:$0xff]  }
 0x113   :  { %7245 = vmatpush3.bf16.msra.mxu0 %v8396_v38  ;;  %v8430_v1 = vld [vmem:[%s10775_s6 + $0x138] sm:$0xff]   ;;  %v478_v38 = vld [vmem:[%s10774_s5 + $0xc0] sm:$0x33] }
 0x114   :  { %v8719_v2 = vpop.eup %8718  ;;  %7246 = vmatprep.subr.bf16.mxu0 %v8397_v41  ;;  %v6810_v39 = vcombine.high %v458_v37, %v478_v38  ;;  %v6809_v40 = vcombine.low %v458_v37, %v478_v38  ;;  %v8465_v41 = vld [vmem:[%s10775_s6 + $0x340] sm:$0xff]  }
 0x115   :  { %v8721_v3 = vpop.eup %8720  ;;  %297 = vperm.xlu1 %8375, %v8719_v2   ;;  %v456_v2 = vld [vmem:[%s10774_s5 + $0x10] sm:$0xff] }
 0x116   :  { %292 = vperm.xlu0 %8376, %v8721_v3   ;;  %v476_v3 = vld [vmem:[%s10774_s5 + $0xb0] sm:$0x33] }
 0x117   :  { %7247 = vmatpush3.bf16.msra.mxu0 %v8398_v45  ;;  %v6806_v4 = vcombine.high %v456_v2, %v476_v3  ;;  %v6805_v5 = vcombine.low %v456_v2, %v476_v3  ;;  %v8470_v45 = vld [vmem:[%s10775_s6 + $0x308] sm:$0xff]  }
 0x118   :  { %v8723_v6 = vpop.eup %8722  ;;  %7276 = vmatprep.subr.bf16.mxu0 %v8401_v49  ;;  %v8478_v49 = vld [vmem:[%s10775_s6 + $0x318] sm:$0xff]  }
 0x11a   :  { %307 = vperm.xlu0 %8376, %v8723_v6   ;;  %3241 = vmatmul.mubr.bf16.vlgmr.msra.gmra.mrb[8].mxu0 %v6801_v50  ;;  %v8433_v6 = vld [vmem:[%s10775_s6 + $0x240] sm:$0xff]  }
 0x11b   :  { %v8725_v23 = vpop.eup %8724  ;;  %7277 = vmatpush3.bf16.msra.mxu0 %v8402_v51  ;;  %3322 = vmatprep.mubr.bf16.mxu0 %v6806_v4  ;;  %v8481_v50 = vld [vmem:[%s10775_s6 + $0x360] sm:$0xff]  }
 0x11c   :  { %302 = vperm.xlu1 %8375, %v8725_v23   ;;  %v8727_v26 = vpop.eup %8726  ;;  %7278 = vmatprep.subr.bf16.mxu0 %v8405_v52  ;;  %v8438_v23 = vld [vmem:[%s10775_s6 + $0x208] sm:$0xff]   ;;  %v8482_v51 = vld [vmem:[%s10775_s6 + $0x320] sm:$0xff]  }
 0x11d   :  { %v8485_v52 = vld [vmem:[%s10775_s6 + $0x368] sm:$0xff]  }
 0x11f   :  { %7279 = vmatpush3.bf16.msra.mxu0 %v8406_v53  ;;  %v8486_v53 = vld [vmem:[%s10775_s6 + $0x328] sm:$0xff]  }
 0x120   :  { %282 = vperm.xlu1 %8375, %v8727_v26   ;;  %7280 = vmatprep.subr.bf16.mxu0 %v8409_v54  ;;  %v8445_v26 = vld [vmem:[%s10775_s6 + $0x258] sm:$0xff]  }
 0x123   :  { %7281 = vmatpush3.bf16.msra.mxu0 %v8410_v55  ;;  %v8489_v55 = vld [vmem:[%s10775_s6 + $0x370] sm:$0xff]  }
 0x124   :  { %7282 = vmatprep.subr.bf16.mxu0 %v8413_v56  ;;  %v8490_v56 = vld [vmem:[%s10775_s6 + $0x330] sm:$0xff]  }
 0x127   :  { %7283 = vmatpush3.bf16.msra.mxu0 %v8414_v57 }
 0x128   :  { %7284 = vmatprep.subr.bf16.mxu0 %v8417_v58 }
 0x12b   :  { %7285 = vmatpush3.bf16.msra.mxu0 %v8418_v59  ;;  %v8493_v59 = vld [vmem:[%s10775_s6 + $0x378] sm:$0xff]  }
 0x12c   :  { %7286 = vmatprep.subr.bf16.mxu0 %v8421_v60  ;;  %v8494_v60 = vld [vmem:[%s10775_s6 + $0x338] sm:$0xff]  }
 0x12f   :  { %7287 = vmatpush3.bf16.msra.mxu0 %v8422_v61 }
 0x130   :  { %7288 = vmatprep.subr.bf16.mxu0 %v8425_v62 }
 0x133   :  { %7289 = vmatpush3.bf16.msra.mxu0 %v8426_v63  ;;  %v460_v63 = vld [vmem:[%s10774_s5 + $0x30] sm:$0xff] }
 0x134   :  { %7290 = vmatprep.subr.bf16.mxu0 %v8429_v0  ;;  %v480_v0 = vld [vmem:[%s10774_s5 + $0xd0] sm:$0x33] }
 0x135   :  { %v6814_v3 = vcombine.high %v460_v63, %v480_v0 }
 0x137   :  { %7291 = vmatpush3.bf16.msra.mxu0 %v8430_v1 }
 0x138   :  { %7320 = vmatprep.subr.bf16.mxu0 %v8433_v6 }
 0x13a   :  { %3323 = vmatmul.mubr.bf16.vlgmr.msra.gmra.mrb[12].mxu0 %v6805_v5  ;;  %v8497_v5 = vld [vmem:[%s10775_s6 + $0x440] sm:$0xff]  }
 0x13b   :  { %7321 = vmatpush3.bf16.msra.mxu0 %v8434_v8  ;;  %3404 = vmatprep.mubr.bf16.mxu0 %v6810_v39  ;;  %v8498_v8 = vld [vmem:[%s10775_s6 + $0x400] sm:$0xff]  }
 0x13c   :  { %7322 = vmatprep.subr.bf16.mxu0 %v8437_v22 }
 0x13f   :  { %7323 = vmatpush3.bf16.msra.mxu0 %v8438_v23 }
 0x140   :  { %7324 = vmatprep.subr.bf16.mxu0 %v8441_v24 }
 0x143   :  { %7325 = vmatpush3.bf16.msra.mxu0 %v8442_v25 }
 0x144   :  { %7326 = vmatprep.subr.bf16.mxu0 %v8445_v26 }
 0x147   :  { %7327 = vmatpush3.bf16.msra.mxu0 %v8446_v27  ;;  %v8501_v27 = vld [vmem:[%s10775_s6 + $0x448] sm:$0xff]  }
 0x148   :  { %7328 = vmatprep.subr.bf16.mxu0 %v8449_v28 }
 0x14b   :  { %7329 = vmatpush3.bf16.msra.mxu0 %v8450_v29 }
 0x14c   :  { %7330 = vmatprep.subr.bf16.mxu0 %v8453_v30 }
 0x14f   :  { %7331 = vmatpush3.bf16.msra.mxu0 %v8454_v31 }
 0x150   :  { %7332 = vmatprep.subr.bf16.mxu0 %v8457_v32  ;;  %v8505_v32 = vld [vmem:[%s10775_s6 + $0x450] sm:$0xff]  }
 0x153   :  { %7333 = vmatpush3.bf16.msra.mxu0 %v8458_v33 }
 0x154   :  { %7334 = vmatprep.subr.bf16.mxu0 %v8461_v34 }
 0x157   :  { %7335 = vmatpush3.bf16.msra.mxu0 %v8462_v35 }
 0x158   :  { %7364 = vmatprep.subr.bf16.mxu0 %v8465_v41 }
 0x15a   :  { %3405 = vmatmul.mubr.bf16.vlgmr.msra.gmra.mrb[16].mxu0 %v6809_v40 }
 0x15b   :  { %7365 = vmatpush3.bf16.msra.mxu0 %v8466_v43  ;;  %3486 = vmatprep.mubr.bf16.mxu0 %v6814_v3  ;;  %v8509_v43 = vld [vmem:[%s10775_s6 + $0x458] sm:$0xff]  }
 0x15c   :  { %7366 = vmatprep.subr.bf16.mxu0 %v8469_v44 }
 0x15f   :  { %7367 = vmatpush3.bf16.msra.mxu0 %v8470_v45 }
 0x160   :  { %7368 = vmatprep.subr.bf16.mxu0 %v8473_v46 }
 0x163   :  { %7369 = vmatpush3.bf16.msra.mxu0 %v8474_v47 }
 0x164   :  { %7370 = vmatprep.subr.bf16.mxu0 %v8477_v48 }
 0x167   :  { %7371 = vmatpush3.bf16.msra.mxu0 %v8478_v49  ;;  %v8513_v49 = vld [vmem:[%s10775_s6 + $0x460] sm:$0xff]  }
 0x168   :  { %7372 = vmatprep.subr.bf16.mxu0 %v8481_v50 }
 0x16b   :  { %7373 = vmatpush3.bf16.msra.mxu0 %v8482_v51  ;;  %v8514_v51 = vld [vmem:[%s10775_s6 + $0x420] sm:$0xff]  }
 0x16c   :  { %7374 = vmatprep.subr.bf16.mxu0 %v8485_v52 }
 0x16f   :  { %7375 = vmatpush3.bf16.msra.mxu0 %v8486_v53 }
 0x170   :  { %7376 = vmatprep.subr.bf16.mxu0 %v8489_v55  ;;  %v8517_v55 = vld [vmem:[%s10775_s6 + $0x468] sm:$0xff]  }
 0x173   :  { %7377 = vmatpush3.bf16.msra.mxu0 %v8490_v56 }
 0x174   :  { %7378 = vmatprep.subr.bf16.mxu0 %v8493_v59 }
 0x177   :  { %7379 = vmatpush3.bf16.msra.mxu0 %v8494_v60 }
 0x178   :  { %7408 = vmatprep.subr.bf16.mxu0 %v8497_v5 }
 0x18c   :  { %v278_v57 = vpop.permute.xlu1 %277 }
 0x18d   :  { %v273_v54 = vpop.permute.xlu0 %272  ;;  %v311_v12 = vmul.f32 %v7204_v11, %v278_v57  ;;  %v8502_v11 = vld [vmem:[%s10775_s6 + $0x408] sm:$0xff]  }
 0x18e   :  { %v310_v23 = vmul.f32 %v7203_v9, %v273_v54  ;;  %v8518_v57 = vld [vmem:[%s10775_s6 + $0x428] sm:$0xff]  }
 0x190   :  { %v318_v30 = vsel %vm92_vm0, %v310_v23, 0.0 }
 0x191   :  { %v288_v58 = vpop.permute.xlu0 %287 }
 0x192   :  { %v313_v61 = vmul.f32 %v7208_v14, %v288_v58  ;;  %v6813_v14 = vcombine.low %v460_v63, %v480_v0  ;;  %v8522_v63 = vld [vmem:[%s10775_s6 + $0x430] sm:$0xff]  }
 0x194   :  { %v298_v62 = vpop.permute.xlu1 %297  ;;  %v340_v22 = vrot.slane %v313_v61, 6  ;;  %3487 = vmatmul.mubr.bf16.vlgmr.msra.gmra.mrb[20].mxu0 %v6813_v14  ;;  %v8525_v14 = vld [vmem:[%s10775_s6 + $0x478] sm:$0xff]  }
 0x195   :  { %v315_v1 = vmul.f32 %v7212_v18, %v298_v62  ;;  %v293_v2 = vpop.permute.xlu0 %292  ;;  %7409 = vmatpush3.bf16.msra.mxu0 %v8498_v8 }
 0x196   :  { %v314_v4 = vmul.f32 %v7211_v16, %v293_v2  ;;  %7410 = vmatprep.subr.bf16.mxu0 %v8501_v27  ;;  %v9356_v2 = vld [vmem:[%s10774_s5 + $0xa8] sm:$0x33] }
 0x197   :  { %v343_v6 = vrot.slane %v315_v1, 6  ;;  %v9351_v1 = vld [vmem:[%s10774_s5 + $0x8] sm:$0xff] }
 0x198   :  { %v341_v18 = vrot.slane %v314_v4, 6  ;;  %v6804_v8 = vcombine.high %v9351_v1, %v9356_v2  ;;  %v8404_v27 = vld [vmem:[%s10775_s6 + $0x88] sm:$0xff]  }
 0x199   :  { %v308_v16 = vpop.permute.xlu0 %307  ;;  %7411 = vmatpush3.bf16.msra.mxu0 %v8502_v11  ;;  %v8407_v11 = vld [vmem:[%s10775_s6 + $0xd0] sm:$0xff]  }
 0x19a   :  { %v342_v24 = vsel %vm339_vm2, %v340_v22, %v341_v18  ;;  %v344_v25 = vsel %vm339_vm2, %v341_v18, %v343_v6  ;;  %v317_v26 = vmul.f32 %v308_v16, %v80_v20  ;;  %v319_v20 = vsel %vm92_vm0, %v311_v12, 0.0  ;;  %7412 = vmatprep.subr.bf16.mxu0 %v8505_v32  ;;  %v8526_v22 = vld [vmem:[%s10775_s6 + $0x438] sm:$0xff]   ;;  %v8403_v18 = vld [vmem:[%s10775_s6 + $0xc8] sm:$0xff]   ;;  %v462_v12 = vld [vmem:[%s10774_s5 + $0x40] sm:$0xff] }
 0x19b   :  { %v303_v28 = vpop.permute.xlu1 %302  ;;  %v353_v29 = vsel %vm92_vm0, %v342_v24, 0.0  ;;  %v354_v17 = vsel %vm92_vm0, %v344_v25, 0.0  ;;  %v320_v38 = vadd.f32 %v319_v20, %v318_v30  ;;  %v482_v16 = vld [vmem:[%s10774_s5 + $0xe0] sm:$0x33]  ;;  %v8537_v20 = vld [vmem:[%s10775_s6 + $0x550] sm:$0xff]   ;;  %v8412_v30 = vld [vmem:[%s10775_s6 + $0x98] sm:$0xff]  }
 0x19c   :  { %v316_v7 = vmul.f32 %v303_v28, %v79_v19  ;;  %v347_v9 = vrot.slane %v317_v26, 6  ;;  %v355_v19 = vadd.f32 %v354_v17, %v353_v29  ;;  %v6818_v24 = vcombine.high %v462_v12, %v482_v16  ;;  %v8529_v26 = vld [vmem:[%s10775_s6 + $0x540] sm:$0xff]   ;;  %v8534_v29 = vld [vmem:[%s10775_s6 + $0x508] sm:$0xff]   ;;  %v8411_v17 = vld [vmem:[%s10775_s6 + $0xd8] sm:$0xff]  }
 0x19d   :  { %7413 = vmatpush3.bf16.msra.mxu0 %v8506_v15  ;;  %v6817_v25 = vcombine.low %v462_v12, %v482_v16  ;;  %v8530_v28 = vld [vmem:[%s10775_s6 + $0x500] sm:$0xff]   ;;  %v8452_v16 = vld [vmem:[%s10775_s6 + $0x1a8] sm:$0xff]  }
 0x19e   :  { %v345_v31 = vrot.slane %v316_v7, 6  ;;  %7414 = vmatprep.subr.bf16.mxu0 %v8509_v43  ;;  %3568 = vmatprep.mubr.bf16.mxu0 %v6818_v24  ;;  %v8533_v7 = vld [vmem:[%s10775_s6 + $0x548] sm:$0xff]   ;;  %v8415_v32 = vld [vmem:[%s10775_s6 + $0xe0] sm:$0xff]   ;;  %v8455_v24 = vld [vmem:[%s10775_s6 + $0x1f0] sm:$0xff]  }
 0x19f   :  { %v283_v33 = vpop.permute.xlu1 %282  ;;  %v8416_v15 = vld [vmem:[%s10775_s6 + $0xa0] sm:$0xff]   ;;  %v8550_v43 = vld [vmem:[%s10775_s6 + $0x528] sm:$0xff]  }
 0x1a0   :  { %v346_v34 = vsel %vm339_vm2, %v343_v6, %v345_v31  ;;  %v348_v35 = vsel %vm339_vm2, %v345_v31, %v347_v9  ;;  %v312_v37 = vmul.f32 %v7207_v13, %v283_v33  ;;  %v324_v13 = vsel %vm323_vm3, %v313_v61, 0.0  ;;  %v8521_v61 = vld [vmem:[%s10775_s6 + $0x470] sm:$0xff]   ;;  %v8400_v6 = vld [vmem:[%s10775_s6 + $0x80] sm:$0xff]   ;;  %v8541_v33 = vld [vmem:[%s10775_s6 + $0x558] sm:$0xff]  }
 0x1a1   :  { %v356_v39 = vsel %vm92_vm0, %v346_v34, 0.0  ;;  %v358_v44 = vsel %vm323_vm3, %v348_v35, 0.0  ;;  %7415 = vmatpush3.bf16.msra.mxu0 %v8510_v10  ;;  %v8408_v9 = vld [vmem:[%s10775_s6 + $0x90] sm:$0xff]   ;;  %v8419_v34 = vld [vmem:[%s10775_s6 + $0xe8] sm:$0xff]   ;;  %v8545_v35 = vld [vmem:[%s10775_s6 + $0x560] sm:$0xff]  }
 0x1a2   :  { %v357_v40 = vadd.f32 %v356_v39, %v355_v19  ;;  %v321_v41 = vsel %vm92_vm0, %v312_v37, 0.0  ;;  %7416 = vmatprep.subr.bf16.mxu0 %v8513_v49  ;;  %v8538_v31 = vld [vmem:[%s10775_s6 + $0x510] sm:$0xff]   ;;  %v8542_v19 = vld [vmem:[%s10775_s6 + $0x518] sm:$0xff]   ;;  %v8420_v37 = vld [vmem:[%s10775_s6 + $0xa8] sm:$0xff]   ;;  %v6803_v49 = vcombine.low %v9351_v1, %v9356_v2 }
 0x1a3   :  { %v322_v45 = vadd.f32 %v321_v41, %v320_v38  ;;  %v8546_v38 = vld [vmem:[%s10775_s6 + $0x520] sm:$0xff]   ;;  %v8423_v39 = vld [vmem:[%s10775_s6 + $0xf0] sm:$0xff]   ;;  %v8428_v10 = vld [vmem:[%s10775_s6 + $0xb8] sm:$0xff]  }
 0x1a4   :  { %v359_v46 = vadd.f32 %v358_v44, %v357_v40  ;;  %v8549_v40 = vld [vmem:[%s10775_s6 + $0x568] sm:$0xff]   ;;  %v8424_v41 = vld [vmem:[%s10775_s6 + $0xb0] sm:$0xff]   ;;  %v8427_v44 = vld [vmem:[%s10775_s6 + $0xf8] sm:$0xff]  }
 0x1a5   :  { %v325_v47 = vadd.f32 %v324_v13, %v322_v45  ;;  %7417 = vmatpush3.bf16.msra.mxu0 %v8514_v51  ;;  %v8553_v45 = vld [vmem:[%s10775_s6 + $0x570] sm:$0xff]   ;;  %v8432_v51 = vld [vmem:[%s10775_s6 + $0x180] sm:$0xff]   ;;  %v8566_v1 = vld [vmem:[%s10775_s6 + $0x608] sm:$0xff]  }
 0x1a6   :  { %v360_v48 = vrot.slane %v359_v46, 4  ;;  %7418 = vmatprep.subr.bf16.mxu0 %v8517_v55  ;;  %v8554_v13 = vld [vmem:[%s10775_s6 + $0x530] sm:$0xff]   ;;  %v8443_v2 = vld [vmem:[%s10775_s6 + $0x1d8] sm:$0xff]   ;;  %v8577_v12 = vld [vmem:[%s10775_s6 + $0x660] sm:$0xff]  }
 0x1a7   :  { %v326_v50 = vrot.slane %v325_v47, 4  ;;  %v464_v55 = vld [vmem:[%s10774_s5 + $0x50] sm:$0xff] }
 0x1a8   :  { %v361_v52 = vadd.f32 %v360_v48, %v359_v46  ;;  %v8431_v46 = vld [vmem:[%s10775_s6 + $0x1c0] sm:$0xff]   ;;  %v9471_v48 = vld [vmem:[%s10774_s5 + $0xb8] sm:$0x33] }
 0x1a9   :  { %v327_v53 = vadd.f32 %v326_v50, %v325_v47  ;;  %7419 = vmatpush3.bf16.msra.mxu0 %v8518_v57  ;;  %v9466_v47 = vld [vmem:[%s10774_s5 + $0x18] sm:$0xff] }
 0x1aa   :  { %v362_v54 = vrot.slane %v361_v52, 2  ;;  %7420 = vmatprep.subr.bf16.mxu0 %v8521_v61  ;;  %v8557_v50 = vld [vmem:[%s10775_s6 + $0x578] sm:$0xff]   ;;  %v8562_v61 = vld [vmem:[%s10775_s6 + $0x600] sm:$0xff]  }
 0x1ab   :  { %v328_v56 = vrot.slane %v327_v53, 2 }
 0x1ac   :  { %v363_v58 = vadd.f32 %v362_v54, %v361_v52  ;;  %v6808_v52 = vcombine.high %v9466_v47, %v9471_v48  ;;  %v8435_v54 = vld [vmem:[%s10775_s6 + $0x1c8] sm:$0xff]  }
 0x1ad   :  { %v329_v59 = vadd.f32 %v328_v56, %v327_v53  ;;  %7421 = vmatpush3.bf16.msra.mxu0 %v8522_v63  ;;  %v8558_v53 = vld [vmem:[%s10775_s6 + $0x538] sm:$0xff]   ;;  %v484_v56 = vld [vmem:[%s10774_s5 + $0xf0] sm:$0x33]  ;;  %v8565_v63 = vld [vmem:[%s10775_s6 + $0x648] sm:$0xff]  }
 0x1ae   :  { %v364_v60 = vrot.slane %v363_v58, 1  ;;  %7422 = vmatprep.subr.bf16.mxu0 %v8525_v14  ;;  %v6822_v57 = vcombine.high %v464_v55, %v484_v56  ;;  %v8570_v14 = vld [vmem:[%s10775_s6 + $0x610] sm:$0xff]  }
 0x1af   :  { %v330_v62 = vrot.slane %v329_v59, 1 }
 0x1b0   :  { %v365_v0 = vadd.f32 %v364_v60, %v363_v58  ;;  %v6821_v58 = vcombine.low %v464_v55, %v484_v56  ;;  %v8436_v60 = vld [vmem:[%s10775_s6 + $0x188] sm:$0xff]   ;;  %v8610_v56 = vld [vmem:[%s10775_s6 + $0x720] sm:$0xff]  }
 0x1b1   :  { %v331_v3 = vadd.f32 %v330_v62, %v329_v59  ;;  %7423 = vmatpush3.bf16.msra.mxu0 %v8526_v22  ;;  %v8561_v59 = vld [vmem:[%s10775_s6 + $0x640] sm:$0xff]   ;;  %v8439_v62 = vld [vmem:[%s10775_s6 + $0x1d0] sm:$0xff]   ;;  %v8574_v22 = vld [vmem:[%s10775_s6 + $0x618] sm:$0xff]  }
 0x1b2   :  { %v366_v4 = vmul.f32 0.033333335, %v365_v0  ;;  %7452 = vmatprep.subr.bf16.mxu0 %v8529_v26  ;;  %v8440_v0 = vld [vmem:[%s10775_s6 + $0x190] sm:$0xff]   ;;  %v8484_v55 = vld [vmem:[%s10775_s6 + $0x2a8] sm:$0xff]  }
 0x1b3   :  { %v333_v5 = vmul.f32 0.033333335, %v331_v3  ;;  %v8569_v3 = vld [vmem:[%s10775_s6 + $0x650] sm:$0xff]  }
 0x1b4   :  { %3569 = vmatmul.mubr.bf16.vlgmr.msra.gmra.mrb[24].mxu0 %v6817_v25  ;;  %v8581_v25 = vld [vmem:[%s10775_s6 + $0x668] sm:$0xff]   ;;  %v8456_v26 = vld [vmem:[%s10775_s6 + $0x1b0] sm:$0xff]  }
 0x1b5   :  { %v368_v23 = vsel %vm367_vm4, %v333_v5, %v366_v4  ;;  %7453 = vmatpush3.bf16.msra.mxu0 %v8530_v28  ;;  %3650 = vmatprep.mubr.bf16.mxu0 %v6822_v57  ;;  %v8444_v4 = vld [vmem:[%s10775_s6 + $0x198] sm:$0xff]   ;;  %v8447_v5 = vld [vmem:[%s10775_s6 + $0x1e0] sm:$0xff]   ;;  %v8487_v57 = vld [vmem:[%s10775_s6 + $0x2f0] sm:$0xff]  }
 0x1b6   :  { %7826 = vmatmul.mubr.msk.f32.vlgmr.msra.gmra.mrb[0].mxu1 %vm92_vm0, %v368_v23  ;;  %7454 = vmatprep.subr.bf16.mxu0 %v8533_v7  ;;  %v8578_v23 = vld [vmem:[%s10775_s6 + $0x620] sm:$0xff]   ;;  %v8459_v28 = vld [vmem:[%s10775_s6 + $0x1f8] sm:$0xff]  }
 0x1b7   :  { %7255 = vmatpush3.bf16.msra.mxu1 %v8400_v6  ;;  %3281 = vmatprep.mubr.bf16.mxu1 %v6804_v8  ;;  %v8573_v6 = vld [vmem:[%s10775_s6 + $0x658] sm:$0xff]   ;;  %v8448_v8 = vld [vmem:[%s10775_s6 + $0x1a0] sm:$0xff]  }
 0x1b8   :  { %7256 = vmatprep.subr.bf16.mxu1 %v8403_v18  ;;  %v8451_v18 = vld [vmem:[%s10775_s6 + $0x1e8] sm:$0xff]   ;;  %v8460_v7 = vld [vmem:[%s10775_s6 + $0x1b8] sm:$0xff]  }
 0x1b9   :  { %7455 = vmatpush3.bf16.msra.mxu0 %v8534_v29  ;;  %v8463_v29 = vld [vmem:[%s10775_s6 + $0x2c0] sm:$0xff]  }
 0x1ba   :  { %7456 = vmatprep.subr.bf16.mxu0 %v8537_v20  ;;  %v9587_v20 = vld [vmem:[%s10774_s5 + $0xc8] sm:$0x33] }
 0x1bb   :  { %7257 = vmatpush3.bf16.msra.mxu1 %v8404_v27  ;;  %v8582_v27 = vld [vmem:[%s10775_s6 + $0x628] sm:$0xff]  }
 0x1bc   :  { %7258 = vmatprep.subr.bf16.mxu1 %v8407_v11  ;;  %v8585_v11 = vld [vmem:[%s10775_s6 + $0x670] sm:$0xff]  }
 0x1bd   :  { %7457 = vmatpush3.bf16.msra.mxu0 %v8538_v31  ;;  %v8589_v31 = vld [vmem:[%s10775_s6 + $0x678] sm:$0xff]  }
 0x1be   :  { %7458 = vmatprep.subr.bf16.mxu0 %v8541_v33 }
 0x1bf   :  { %7259 = vmatpush3.bf16.msra.mxu1 %v8408_v9  ;;  %v8586_v9 = vld [vmem:[%s10775_s6 + $0x630] sm:$0xff]  }
 0x1c0   :  { %7260 = vmatprep.subr.bf16.mxu1 %v8411_v17  ;;  %v9582_v17 = vld [vmem:[%s10774_s5 + $0x28] sm:$0xff] }
 0x1c1   :  { %7459 = vmatpush3.bf16.msra.mxu0 %v8542_v19  ;;  %v6812_v33 = vcombine.high %v9582_v17, %v9587_v20  ;;  %v8467_v19 = vld [vmem:[%s10775_s6 + $0x2c8] sm:$0xff]  }
 0x1c2   :  { %7460 = vmatprep.subr.bf16.mxu0 %v8545_v35  ;;  %v486_v35 = vld [vmem:[%s10774_s5 + $0x100] sm:$0x33] }
 0x1c3   :  { %7261 = vmatpush3.bf16.msra.mxu1 %v8412_v30  ;;  %v6807_v30 = vcombine.low %v9466_v47, %v9471_v48  ;;  %v8476_v47 = vld [vmem:[%s10775_s6 + $0x298] sm:$0xff]   ;;  %v8602_v48 = vld [vmem:[%s10775_s6 + $0x710] sm:$0xff]  }
 0x1c4   :  { %7262 = vmatprep.subr.bf16.mxu1 %v8415_v32  ;;  %v8464_v32 = vld [vmem:[%s10775_s6 + $0x280] sm:$0xff]  }
 0x1c5   :  { %7461 = vmatpush3.bf16.msra.mxu0 %v8546_v38 }
 0x1c6   :  { %7462 = vmatprep.subr.bf16.mxu0 %v8549_v40  ;;  %v8468_v40 = vld [vmem:[%s10775_s6 + $0x288] sm:$0xff]  }
 0x1c7   :  { %7263 = vmatpush3.bf16.msra.mxu1 %v8416_v15  ;;  %v8590_v15 = vld [vmem:[%s10775_s6 + $0x638] sm:$0xff]  }
 0x1c8   :  { %7264 = vmatprep.subr.bf16.mxu1 %v8419_v34  ;;  %v466_v34 = vld [vmem:[%s10774_s5 + $0x60] sm:$0xff] }
 0x1c9   :  { %7463 = vmatpush3.bf16.msra.mxu0 %v8550_v43  ;;  %v6825_v38 = vcombine.low %v466_v34, %v486_v35  ;;  %v8471_v43 = vld [vmem:[%s10775_s6 + $0x2d0] sm:$0xff]  }
 0x1ca   :  { %7464 = vmatprep.subr.bf16.mxu0 %v8553_v45  ;;  %v8472_v45 = vld [vmem:[%s10775_s6 + $0x290] sm:$0xff]  }
 0x1cb   :  { %7265 = vmatpush3.bf16.msra.mxu1 %v8420_v37  ;;  %v6826_v37 = vcombine.high %v466_v34, %v486_v35 }
 0x1cc   :  { %7266 = vmatprep.subr.bf16.mxu1 %v8423_v39  ;;  %v8593_v39 = vld [vmem:[%s10775_s6 + $0x740] sm:$0xff]  }
 0x1cd   :  { %7465 = vmatpush3.bf16.msra.mxu0 %v8554_v13  ;;  %v8475_v13 = vld [vmem:[%s10775_s6 + $0x2d8] sm:$0xff]  }
 0x1ce   :  { %7466 = vmatprep.subr.bf16.mxu0 %v8557_v50  ;;  %v8605_v50 = vld [vmem:[%s10775_s6 + $0x758] sm:$0xff]  }
 0x1cf   :  { %7267 = vmatpush3.bf16.msra.mxu1 %v8424_v41  ;;  %v8594_v41 = vld [vmem:[%s10775_s6 + $0x700] sm:$0xff]  }
 0x1d0   :  { %7268 = vmatprep.subr.bf16.mxu1 %v8427_v44  ;;  %v8597_v44 = vld [vmem:[%s10775_s6 + $0x748] sm:$0xff]  }
 0x1d1   :  { %7467 = vmatpush3.bf16.msra.mxu0 %v8558_v53  ;;  %v8483_v53 = vld [vmem:[%s10775_s6 + $0x2e8] sm:$0xff]  }
 0x1d2   :  { %7496 = vmatprep.subr.bf16.mxu0 %v8561_v59  ;;  %v8488_v59 = vld [vmem:[%s10775_s6 + $0x2b0] sm:$0xff]  }
 0x1d3   :  { %7269 = vmatpush3.bf16.msra.mxu1 %v8428_v10  ;;  %v8598_v10 = vld [vmem:[%s10775_s6 + $0x708] sm:$0xff]  }
 0x1d4   :  { %7298 = vmatprep.subr.bf16.mxu1 %v8431_v46  ;;  %3651 = vmatmul.mubr.bf16.vlgmr.msra.gmra.mrb[28].mxu0 %v6821_v58  ;;  %v8601_v46 = vld [vmem:[%s10775_s6 + $0x750] sm:$0xff]   ;;  %v8613_v58 = vld [vmem:[%s10775_s6 + $0x768] sm:$0xff]  }
 0x1d5   :  { %7497 = vmatpush3.bf16.msra.mxu0 %v8562_v61  ;;  %3732 = vmatprep.mubr.bf16.mxu0 %v6826_v37  ;;  %v8491_v61 = vld [vmem:[%s10775_s6 + $0x2f8] sm:$0xff]  }
 0x1d6   :  { %3282 = vmatmul.mubr.bf16.vlgmr.msra.gmra.mrb[4].mxu1 %v6803_v49  ;;  %7498 = vmatprep.subr.bf16.mxu0 %v8565_v63  ;;  %v8479_v49 = vld [vmem:[%s10775_s6 + $0x2e0] sm:$0xff]   ;;  %v8492_v63 = vld [vmem:[%s10775_s6 + $0x2b8] sm:$0xff]  }
 0x1d7   :  { %7299 = vmatpush3.bf16.msra.mxu1 %v8432_v51  ;;  %3363 = vmatprep.mubr.bf16.mxu1 %v6808_v52  ;;  %v8480_v51 = vld [vmem:[%s10775_s6 + $0x2a0] sm:$0xff]   ;;  %v8606_v52 = vld [vmem:[%s10775_s6 + $0x718] sm:$0xff]  }
 0x1d8   :  { %7300 = vmatprep.subr.bf16.mxu1 %v8435_v54  ;;  %v8609_v54 = vld [vmem:[%s10775_s6 + $0x760] sm:$0xff]  }
 0x1d9   :  { %7499 = vmatpush3.bf16.msra.mxu0 %v8566_v1  ;;  %v8495_v1 = vld [vmem:[%s10775_s6 + $0x3c0] sm:$0xff]  }
 0x1da   :  { %7500 = vmatprep.subr.bf16.mxu0 %v8569_v3  ;;  %v9703_v3 = vld [vmem:[%s10774_s5 + $0xd8] sm:$0x33] }
 0x1db   :  { %7301 = vmatpush3.bf16.msra.mxu1 %v8436_v60  ;;  %v8614_v60 = vld [vmem:[%s10775_s6 + $0x728] sm:$0xff]  }
 0x1dc   :  { %7302 = vmatprep.subr.bf16.mxu1 %v8439_v62  ;;  %v8617_v62 = vld [vmem:[%s10775_s6 + $0x770] sm:$0xff]  }
 0x1dd   :  { %7501 = vmatpush3.bf16.msra.mxu0 %v8570_v14  ;;  %v8621_v14 = vld [vmem:[%s10775_s6 + $0x778] sm:$0xff]  }
 0x1de   :  { %7502 = vmatprep.subr.bf16.mxu0 %v8573_v6 }
 0x1df   :  { %7303 = vmatpush3.bf16.msra.mxu1 %v8440_v0  ;;  %v8618_v0 = vld [vmem:[%s10775_s6 + $0x730] sm:$0xff]  }
 0x1e0   :  { %7304 = vmatprep.subr.bf16.mxu1 %v8443_v2  ;;  %v9698_v2 = vld [vmem:[%s10774_s5 + $0x38] sm:$0xff] }
 0x1e1   :  { %7503 = vmatpush3.bf16.msra.mxu0 %v8574_v22  ;;  %v6816_v6 = vcombine.high %v9698_v2, %v9703_v3  ;;  %v8499_v22 = vld [vmem:[%s10775_s6 + $0x3c8] sm:$0xff]  }
 0x1e2   :  { %7504 = vmatprep.subr.bf16.mxu0 %v8577_v12  ;;  %v488_v12 = vld [vmem:[%s10774_s5 + $0x110] sm:$0x33] }
 0x1e3   :  { %7305 = vmatpush3.bf16.msra.mxu1 %v8444_v4  ;;  %v6811_v4 = vcombine.low %v9582_v17, %v9587_v20  ;;  %v8508_v17 = vld [vmem:[%s10775_s6 + $0x398] sm:$0xff]   ;;  %v8634_v20 = vld [vmem:[%s10775_s6 + $0x810] sm:$0xff]  }
 0x1e4   :  { %7306 = vmatprep.subr.bf16.mxu1 %v8447_v5  ;;  %v8496_v5 = vld [vmem:[%s10775_s6 + $0x380] sm:$0xff]  }
 0x1e5   :  { %7505 = vmatpush3.bf16.msra.mxu0 %v8578_v23 }
 0x1e6   :  { %7506 = vmatprep.subr.bf16.mxu0 %v8581_v25  ;;  %v8500_v25 = vld [vmem:[%s10775_s6 + $0x388] sm:$0xff]  }
 0x1e7   :  { %7307 = vmatpush3.bf16.msra.mxu1 %v8448_v8  ;;  %v8622_v8 = vld [vmem:[%s10775_s6 + $0x738] sm:$0xff]  }
 0x1e8   :  { %7308 = vmatprep.subr.bf16.mxu1 %v8451_v18  ;;  %v468_v18 = vld [vmem:[%s10774_s5 + $0x70] sm:$0xff] }
 0x1e9   :  { %7507 = vmatpush3.bf16.msra.mxu0 %v8582_v27  ;;  %v6829_v23 = vcombine.low %v468_v18, %v488_v12  ;;  %v8503_v27 = vld [vmem:[%s10775_s6 + $0x3d0] sm:$0xff]  }
 0x1ea   :  { %7508 = vmatprep.subr.bf16.mxu0 %v8585_v11  ;;  %v8504_v11 = vld [vmem:[%s10775_s6 + $0x390] sm:$0xff]  }
 0x1eb   :  { %7309 = vmatpush3.bf16.msra.mxu1 %v8452_v16  ;;  %v6830_v16 = vcombine.high %v468_v18, %v488_v12  ;;  %v8535_v18 = vld [vmem:[%s10775_s6 + $0x4d0] sm:$0xff]   ;;  %v8661_v12 = vld [vmem:[%s10775_s6 + $0x948] sm:$0xff]  }
 0x1ec   :  { %7310 = vmatprep.subr.bf16.mxu1 %v8455_v24  ;;  %v8625_v24 = vld [vmem:[%s10775_s6 + $0x840] sm:$0xff]  }
 0x1ed   :  { %7509 = vmatpush3.bf16.msra.mxu0 %v8586_v9  ;;  %v8507_v9 = vld [vmem:[%s10775_s6 + $0x3d8] sm:$0xff]  }
 0x1ee   :  { %7510 = vmatprep.subr.bf16.mxu0 %v8589_v31  ;;  %v8637_v31 = vld [vmem:[%s10775_s6 + $0x858] sm:$0xff]  }
 0x1ef   :  { %7311 = vmatpush3.bf16.msra.mxu1 %v8456_v26  ;;  %v8626_v26 = vld [vmem:[%s10775_s6 + $0x800] sm:$0xff]  }
 0x1f0   :  { %7312 = vmatprep.subr.bf16.mxu1 %v8459_v28  ;;  %v8629_v28 = vld [vmem:[%s10775_s6 + $0x848] sm:$0xff]  }
 0x1f1   :  { %7511 = vmatpush3.bf16.msra.mxu0 %v8590_v15  ;;  %v8638_v15 = vld [vmem:[%s10775_s6 + $0x818] sm:$0xff]  }
 0x1f2   :  { %7540 = vmatprep.subr.bf16.mxu0 %v8593_v39 }
 0x1f3   :  { %7313 = vmatpush3.bf16.msra.mxu1 %v8460_v7  ;;  %v8630_v7 = vld [vmem:[%s10775_s6 + $0x808] sm:$0xff]  }
 0x1f4   :  { %7342 = vmatprep.subr.bf16.mxu1 %v8463_v29  ;;  %3733 = vmatmul.mubr.bf16.vlgmr.msra.gmra.mrb[32].mxu0 %v6825_v38  ;;  %v8633_v29 = vld [vmem:[%s10775_s6 + $0x850] sm:$0xff]   ;;  %v9780_v38 = vld [vmem:[%s10776_s7] ss:$0 sm:$0xff]  ;;  %s8865_s7 = smov 4  }
 0x1f5   :  { %7541 = vmatpush3.bf16.msra.mxu0 %v8594_v41  ;;  %3814 = vmatprep.mubr.bf16.mxu0 %v6830_v16  ;;  %v8516_v41 = vld [vmem:[%s10775_s6 + $0x3a8] sm:$0xff]   ;;  %v8536_v16 = vld [vmem:[%s10775_s6 + $0x490] sm:$0xff]  }
 0x1f6   :  { %3364 = vmatmul.mubr.bf16.vlgmr.msra.gmra.mrb[8].mxu1 %v6807_v30  ;;  %7542 = vmatprep.subr.bf16.mxu0 %v8597_v44  ;;  %v8511_v30 = vld [vmem:[%s10775_s6 + $0x3e0] sm:$0xff]  }
 0x1f7   :  { %7343 = vmatpush3.bf16.msra.mxu1 %v8464_v32  ;;  %3445 = vmatprep.mubr.bf16.mxu1 %v6812_v33  ;;  %v8512_v32 = vld [vmem:[%s10775_s6 + $0x3a0] sm:$0xff]   ;;  %v7248_v33 = vpop.f32.mrb[8].mxu0 }
 0x1f8   :  { %7344 = vmatprep.subr.bf16.mxu1 %v8467_v19  ;;  %v8515_v19 = vld [vmem:[%s10775_s6 + $0x3e8] sm:$0xff]   ;;  %v7249_v34 = vpop.f32.mrb[9].mxu0  ;;  %v8642_v44 = vld [vmem:[%s10775_s6 + $0x820] sm:$0xff]  }
 0x1f9   :  { %7543 = vmatpush3.bf16.msra.mxu0 %v8598_v10  ;;  %v9775_v35 = vadd.f32 %v7249_v34, %v7248_v33  ;;  %v7251_v37 = vpop.f32.mrb[10].mxu0  ;;  %v8552_v33 = vld [vmem:[%s10775_s6 + $0x4b0] sm:$0xff]  }
 0x1fa   :  { %7544 = vmatprep.subr.bf16.mxu0 %v8601_v46  ;;  %v7252_v39 = vpop.f32.mrb[11].mxu0  ;;  %v8520_v46 = vld [vmem:[%s10775_s6 + $0x3b0] sm:$0xff]  }
 0x1fb   :  { %7345 = vmatpush3.bf16.msra.mxu1 %v8468_v40  ;;  %v8641_v40 = vld [vmem:[%s10775_s6 + $0x860] sm:$0xff]  }
 0x1fc   :  { %7346 = vmatprep.subr.bf16.mxu1 %v8471_v43  ;;  %v7253_v43 = vadd.f32 %v7252_v39, %v7251_v37 }
 0x1fd   :  { %7545 = vmatpush3.bf16.msra.mxu0 %v8602_v48  ;;  %v8523_v48 = vld [vmem:[%s10775_s6 + $0x3f8] sm:$0xff]  }
 0x1fe   :  { %7546 = vmatprep.subr.bf16.mxu0 %v8605_v50  ;;  %v9795_v10 = vadd.f32 %v7253_v43, %v9780_v38  ;;  %v8556_v43 = vld [vmem:[%s10775_s6 + $0x4b8] sm:$0xff]  }
 0x1ff   :  { %7347 = vmatpush3.bf16.msra.mxu1 %v8472_v45  ;;  %v8519_v45 = vld [vmem:[%s10775_s6 + $0x3f0] sm:$0xff]  }
 0x200   :  { %7348 = vmatprep.subr.bf16.mxu1 %v8475_v13  ;;  %v8645_v13 = vld [vmem:[%s10775_s6 + $0x868] sm:$0xff]  }
 0x201   :  { %7547 = vmatpush3.bf16.msra.mxu0 %v8606_v52 }
 0x202   :  { %7548 = vmatprep.subr.bf16.mxu0 %v8609_v54  ;;  %v8524_v54 = vld [vmem:[%s10775_s6 + $0x3b8] sm:$0xff]  }
 0x203   :  { %7349 = vmatpush3.bf16.msra.mxu1 %v8476_v47  ;;  %v8646_v47 = vld [vmem:[%s10775_s6 + $0x828] sm:$0xff]  }
 0x204   :  { %7350 = vmatprep.subr.bf16.mxu1 %v8479_v49 }
 0x205   :  { %7549 = vmatpush3.bf16.msra.mxu0 %v8610_v56  ;;  %v8650_v56 = vld [vmem:[%s10775_s6 + $0x830] sm:$0xff]  }
 0x206   :  { %7550 = vmatprep.subr.bf16.mxu0 %v8613_v58  ;;  %v9826_v58 = vld [vmem:[%s10774_s5 + $0x48] sm:$0xff] }
 0x207   :  { %7351 = vmatpush3.bf16.msra.mxu1 %v8480_v51 }
 0x208   :  { %7352 = vmatprep.subr.bf16.mxu1 %v8483_v53  ;;  %v8649_v53 = vld [vmem:[%s10775_s6 + $0x870] sm:$0xff]  }
 0x209   :  { %7551 = vmatpush3.bf16.msra.mxu0 %v8614_v60 }
 0x20a   :  { %7552 = vmatprep.subr.bf16.mxu0 %v8617_v62  ;;  %v8653_v62 = vld [vmem:[%s10775_s6 + $0x878] sm:$0xff]  }
 0x20b   :  { %7353 = vmatpush3.bf16.msra.mxu1 %v8484_v55 }
 0x20c   :  { %7354 = vmatprep.subr.bf16.mxu1 %v8487_v57  ;;  %v8527_v57 = vld [vmem:[%s10775_s6 + $0x4c0] sm:$0xff]  }
 0x20d   :  { %7553 = vmatpush3.bf16.msra.mxu0 %v8618_v0  ;;  %v7292_v49 = vpop.f32.mrb[12].mxu0 }
 0x20e   :  { %7554 = vmatprep.subr.bf16.mxu0 %v8621_v14  ;;  %v7293_v50 = vpop.f32.mrb[13].mxu0 }
 0x20f   :  { %7355 = vmatpush3.bf16.msra.mxu1 %v8488_v59  ;;  %v9809_v51 = vadd.f32 %v7293_v50, %v7292_v49  ;;  %v7295_v52 = vpop.f32.mrb[14].mxu0  ;;  %v9831_v59 = vld [vmem:[%s10774_s5 + $0xe8] sm:$0x33]  ;;  %v8685_v50 = vld [vmem:[%s10775_s6 + $0x978] sm:$0xff]  }
 0x210   :  { %7356 = vmatprep.subr.bf16.mxu1 %v8491_v61  ;;  %v7296_v55 = vpop.f32.mrb[15].mxu0  ;;  %v6815_v61 = vcombine.low %v9698_v2, %v9703_v3  ;;  %v6820_v0 = vcombine.high %v9826_v58, %v9831_v59  ;;  %v8531_v2 = vld [vmem:[%s10775_s6 + $0x4c8] sm:$0xff]   ;;  %v470_v3 = vld [vmem:[%s10774_s5 + $0x80] sm:$0xff]  ;;  %v6819_v49 = vcombine.low %v9826_v58, %v9831_v59 }
 0x211   :  { %7555 = vmatpush3.bf16.msra.mxu0 %v8622_v8  ;;  %v9833_v60 = vadd.f32 %v7296_v55, %v7295_v52  ;;  %v8532_v8 = vld [vmem:[%s10775_s6 + $0x488] sm:$0xff]   ;;  %v8560_v52 = vld [vmem:[%s10775_s6 + $0x580] sm:$0xff]  }
 0x212   :  { %7584 = vmatprep.subr.bf16.mxu0 %v8625_v24  ;;  %v8539_v24 = vld [vmem:[%s10775_s6 + $0x4d8] sm:$0xff]   ;;  %v8563_v55 = vld [vmem:[%s10775_s6 + $0x5c8] sm:$0xff]  }
 0x213   :  { %7357 = vmatpush3.bf16.msra.mxu1 %v8492_v63  ;;  %v8528_v63 = vld [vmem:[%s10775_s6 + $0x480] sm:$0xff]  }
 0x214   :  { %7386 = vmatprep.subr.bf16.mxu1 %v8495_v1  ;;  %3815 = vmatmul.mubr.bf16.vlgmr.msra.gmra.mrb[36].mxu0 %v6829_v23  ;;  %v8654_v1 = vld [vmem:[%s10775_s6 + $0x838] sm:$0xff]   ;;  %v8662_v23 = vld [vmem:[%s10775_s6 + $0x908] sm:$0xff]  }
 0x215   :  { %7585 = vmatpush3.bf16.msra.mxu0 %v8626_v26  ;;  %v8540_v26 = vld [vmem:[%s10775_s6 + $0x498] sm:$0xff]  }
 0x216   :  { %3446 = vmatmul.mubr.bf16.vlgmr.msra.gmra.mrb[12].mxu1 %v6811_v4  ;;  %7586 = vmatprep.subr.bf16.mxu0 %v8629_v28  ;;  %v490_v4 = vld [vmem:[%s10774_s5 + $0x120] sm:$0x33] }
 0x217   :  { %7387 = vmatpush3.bf16.msra.mxu1 %v8496_v5  ;;  %3527 = vmatprep.mubr.bf16.mxu1 %v6816_v6  ;;  %v6834_v14 = vcombine.high %v470_v3, %v490_v4  ;;  %v6833_v5 = vcombine.low %v470_v3, %v490_v4  ;;  %v8657_v6 = vld [vmem:[%s10775_s6 + $0x940] sm:$0xff]   ;;  %v8579_v4 = vld [vmem:[%s10775_s6 + $0x5e8] sm:$0xff]  }
 0x218   :  { %7388 = vmatprep.subr.bf16.mxu1 %v8499_v22  ;;  %v8658_v22 = vld [vmem:[%s10775_s6 + $0x900] sm:$0xff]  }
 0x219   :  { %7587 = vmatpush3.bf16.msra.mxu0 %v8630_v7  ;;  %3896 = vmatprep.mubr.bf16.mxu0 %v6834_v14  ;;  %v8543_v28 = vld [vmem:[%s10775_s6 + $0x4e0] sm:$0xff]   ;;  %v8580_v14 = vld [vmem:[%s10775_s6 + $0x5a8] sm:$0xff]  }
 0x21a   :  { %7588 = vmatprep.subr.bf16.mxu0 %v8633_v29  ;;  %v8544_v7 = vld [vmem:[%s10775_s6 + $0x4a0] sm:$0xff]   ;;  %v8547_v29 = vld [vmem:[%s10775_s6 + $0x4e8] sm:$0xff]  }
 0x21b   :  { %7389 = vmatpush3.bf16.msra.mxu1 %v8500_v25  ;;  %v8665_v25 = vld [vmem:[%s10775_s6 + $0x950] sm:$0xff]   ;;  %v8576_v3 = vld [vmem:[%s10775_s6 + $0x5a0] sm:$0xff]  }
 0x21c   :  { %7390 = vmatprep.subr.bf16.mxu1 %v8503_v27  ;;  %v8666_v27 = vld [vmem:[%s10775_s6 + $0x910] sm:$0xff]  }
 0x21d   :  { %7589 = vmatpush3.bf16.msra.mxu0 %v8634_v20  ;;  %v8548_v20 = vld [vmem:[%s10775_s6 + $0x4a8] sm:$0xff]  }
 0x21e   :  { %7590 = vmatprep.subr.bf16.mxu0 %v8637_v31  ;;  %v8551_v31 = vld [vmem:[%s10775_s6 + $0x4f0] sm:$0xff]  }
 0x21f   :  { %7391 = vmatpush3.bf16.msra.mxu1 %v8504_v11  ;;  %v8669_v11 = vld [vmem:[%s10775_s6 + $0x958] sm:$0xff]  }
 0x220   :  { %7392 = vmatprep.subr.bf16.mxu1 %v8507_v9  ;;  %v8670_v9 = vld [vmem:[%s10775_s6 + $0x918] sm:$0xff]  }
 0x221   :  { %7591 = vmatpush3.bf16.msra.mxu0 %v8638_v15  ;;  %v8678_v15 = vld [vmem:[%s10775_s6 + $0x928] sm:$0xff]  }
 0x222   :  { %7592 = vmatprep.subr.bf16.mxu0 %v8641_v40 }
 0x223   :  { %7393 = vmatpush3.bf16.msra.mxu1 %v8508_v17  ;;  %v8673_v17 = vld [vmem:[%s10775_s6 + $0x960] sm:$0xff]  }
 0x224   :  { %7394 = vmatprep.subr.bf16.mxu1 %v8511_v30  ;;  %v8674_v30 = vld [vmem:[%s10775_s6 + $0x920] sm:$0xff]  }
 0x225   :  { %7593 = vmatpush3.bf16.msra.mxu0 %v8642_v44 }
 0x226   :  { %7594 = vmatprep.subr.bf16.mxu0 %v8645_v13  ;;  %v8559_v13 = vld [vmem:[%s10775_s6 + $0x5c0] sm:$0xff]  }
 0x227   :  { %7395 = vmatpush3.bf16.msra.mxu1 %v8512_v32  ;;  %v8677_v32 = vld [vmem:[%s10775_s6 + $0x968] sm:$0xff]  }
 0x228   :  { %7396 = vmatprep.subr.bf16.mxu1 %v8515_v19  ;;  %v8555_v19 = vld [vmem:[%s10775_s6 + $0x4f8] sm:$0xff]  }
 0x229   :  { %7595 = vmatpush3.bf16.msra.mxu0 %v8646_v47  ;;  %v9951_v47 = vld [vmem:[%s10774_s5 + $0xf8] sm:$0x33] }
 0x22a   :  { %7596 = vmatprep.subr.bf16.mxu0 %v8649_v53 }
 0x22b   :  { %7397 = vmatpush3.bf16.msra.mxu1 %v8516_v41  ;;  %v8681_v41 = vld [vmem:[%s10775_s6 + $0x970] sm:$0xff]  }
 0x22c   :  { %7398 = vmatprep.subr.bf16.mxu1 %v8519_v45  ;;  %v8682_v45 = vld [vmem:[%s10775_s6 + $0x930] sm:$0xff]  }
 0x22d   :  { %7597 = vmatpush3.bf16.msra.mxu0 %v8650_v56  ;;  %v7336_v34 = vpop.f32.mrb[16].mxu0  ;;  %v472_v56 = vld [vmem:[%s10774_s5 + $0x90] sm:$0xff] }
 0x22e   :  { %7598 = vmatprep.subr.bf16.mxu0 %v8653_v62  ;;  %v7337_v37 = vpop.f32.mrb[17].mxu0  ;;  %v8567_v62 = vld [vmem:[%s10775_s6 + $0x5d0] sm:$0xff]  }
 0x22f   :  { %7399 = vmatpush3.bf16.msra.mxu1 %v8520_v46  ;;  %v9929_v39 = vadd.f32 %v7337_v37, %v7336_v34  ;;  %v7339_v40 = vpop.f32.mrb[18].mxu0  ;;  %v9946_v46 = vld [vmem:[%s10774_s5 + $0x58] sm:$0xff]  ;;  %v8600_v34 = vld [vmem:[%s10775_s6 + $0x690] sm:$0xff]  }
 0x230   :  { %7400 = vmatprep.subr.bf16.mxu1 %v8523_v48  ;;  %v7340_v44 = vpop.f32.mrb[19].mxu0  ;;  %v6824_v53 = vcombine.high %v9946_v46, %v9951_v47  ;;  %v8603_v37 = vld [vmem:[%s10775_s6 + $0x6d8] sm:$0xff]  }
 0x231   :  { %7599 = vmatpush3.bf16.msra.mxu0 %v8654_v1  ;;  %v9953_v48 = vadd.f32 %v7340_v44, %v7339_v40  ;;  %v8572_v1 = vld [vmem:[%s10775_s6 + $0x598] sm:$0xff]   ;;  %v8611_v44 = vld [vmem:[%s10775_s6 + $0x6e8] sm:$0xff]  }
 0x232   :  { %7628 = vmatprep.subr.bf16.mxu0 %v8657_v6  ;;  %v8584_v6 = vld [vmem:[%s10775_s6 + $0x5b0] sm:$0xff]   ;;  %v8604_v40 = vld [vmem:[%s10775_s6 + $0x698] sm:$0xff]  }
 0x233   :  { %7401 = vmatpush3.bf16.msra.mxu1 %v8524_v54  ;;  %v8686_v54 = vld [vmem:[%s10775_s6 + $0x938] sm:$0xff]  }
 0x234   :  { %7430 = vmatprep.subr.bf16.mxu1 %v8527_v57  ;;  %3897 = vmatmul.mubr.bf16.vlgmr.msra.gmra.mrb[40].mxu0 %v6833_v5  ;;  %v492_v57 = vld [vmem:[%s10774_s5 + $0x130] sm:$0x33] }
 0x235   :  { %7629 = vmatpush3.bf16.msra.mxu0 %v8658_v22  ;;  %v6838_v58 = vcombine.high %v472_v56, %v492_v57  ;;  %v6837_v59 = vcombine.low %v472_v56, %v492_v57  ;;  %v8583_v5 = vld [vmem:[%s10775_s6 + $0x5f0] sm:$0xff]   ;;  %v8620_v56 = vld [vmem:[%s10775_s6 + $0x6b8] sm:$0xff]  }
 0x236   :  { %3528 = vmatmul.mubr.bf16.vlgmr.msra.gmra.mrb[16].mxu1 %v6815_v61  ;;  %7630 = vmatprep.subr.bf16.mxu0 %v8661_v12  ;;  %v8564_v61 = vld [vmem:[%s10775_s6 + $0x588] sm:$0xff]  }
 0x237   :  { %7431 = vmatpush3.bf16.msra.mxu1 %v8528_v63  ;;  %3609 = vmatprep.mubr.bf16.mxu1 %v6820_v0  ;;  %v8568_v63 = vld [vmem:[%s10775_s6 + $0x590] sm:$0xff]   ;;  %v8571_v0 = vld [vmem:[%s10775_s6 + $0x5d8] sm:$0xff]  }
 0x238   :  { %7432 = vmatprep.subr.bf16.mxu1 %v8531_v2  ;;  %3978 = vmatprep.mubr.bf16.mxu0 %v6838_v58  ;;  %v8575_v2 = vld [vmem:[%s10775_s6 + $0x5e0] sm:$0xff]  }
 0x239   :  { %7631 = vmatpush3.bf16.msra.mxu0 %v8662_v23  ;;  %v8588_v23 = vld [vmem:[%s10775_s6 + $0x5b8] sm:$0xff]   ;;  %v8623_v58 = vld [vmem:[%s10775_s6 + $0x7c0] sm:$0xff]  }
 0x23a   :  { %7632 = vmatprep.subr.bf16.mxu0 %v8665_v25  ;;  %v8591_v25 = vld [vmem:[%s10775_s6 + $0x6c0] sm:$0xff]  }
 0x23b   :  { %7433 = vmatpush3.bf16.msra.mxu1 %v8532_v8  ;;  %v8587_v8 = vld [vmem:[%s10775_s6 + $0x5f8] sm:$0xff]  }
 0x23c   :  { %7434 = vmatprep.subr.bf16.mxu1 %v8535_v18 }
 0x23d   :  { %7633 = vmatpush3.bf16.msra.mxu0 %v8666_v27  ;;  %v10032_v27 = vld [vmem:[%s10774_s5 + $0x108] sm:$0x33] }
 0x23e   :  { %7634 = vmatprep.subr.bf16.mxu0 %v8669_v11  ;;  %v4028_v11 = vld [vmem:[%s10777_s8] sm:$0xff] }
 0x23f   :  { %7435 = vmatpush3.bf16.msra.mxu1 %v8536_v16 }
 0x240   :  { %7436 = vmatprep.subr.bf16.mxu1 %v8539_v24 }
 0x241   :  { %7635 = vmatpush3.bf16.msra.mxu0 %v8670_v9  ;;  %v6823_v9 = vcombine.low %v9946_v46, %v9951_v47 }
 0x242   :  { %7636 = vmatprep.subr.bf16.mxu0 %v8673_v17  ;;  %v8592_v17 = vld [vmem:[%s10775_s6 + $0x680] sm:$0xff]  }
 0x243   :  { %7437 = vmatpush3.bf16.msra.mxu1 %v8540_v26  ;;  %v10027_v26 = vld [vmem:[%s10774_s5 + $0x68] sm:$0xff] }
 0x244   :  { %7438 = vmatprep.subr.bf16.mxu1 %v8543_v28 }
 0x245   :  { %7637 = vmatpush3.bf16.msra.mxu0 %v8674_v30  ;;  %v8595_v30 = vld [vmem:[%s10775_s6 + $0x6c8] sm:$0xff]  }
 0x246   :  { %7638 = vmatprep.subr.bf16.mxu0 %v8677_v32  ;;  %v4031_v32 = vld [vmem:[%s10777_s8 + $0x18] sm:$0xff] }
 0x247   :  { %7439 = vmatpush3.bf16.msra.mxu1 %v8544_v7  ;;  %v4029_v7 = vld [vmem:[%s10777_s8 + $0x8] sm:$0xff] }
 0x248   :  { %7440 = vmatprep.subr.bf16.mxu1 %v8547_v29  ;;  %v10044_v29 = vpack.c.bf16 %v4029_v7, %v4028_v11  ;;  %v8648_v7 = vld [vmem:[%s10775_s6 + $0x7b0] sm:$0xff]  }
 0x249   :  { %7639 = vmatpush3.bf16.msra.mxu0 %v8678_v15  ;;  %v8596_v15 = vld [vmem:[%s10775_s6 + $0x688] sm:$0xff]  }
 0x24a   :  { %7640 = vmatprep.subr.bf16.mxu0 %v8681_v41  ;;  %v8607_v41 = vld [vmem:[%s10775_s6 + $0x6e0] sm:$0xff]  }
 0x24b   :  { %7441 = vmatpush3.bf16.msra.mxu1 %v8548_v20  ;;  %v6828_v20 = vcombine.high %v10027_v26, %v10032_v27 }
 0x24c   :  { %7442 = vmatprep.subr.bf16.mxu1 %v8551_v31  ;;  %v4030_v31 = vld [vmem:[%s10777_s8 + $0x10] sm:$0xff] }
 0x24d   :  { %7641 = vmatpush3.bf16.msra.mxu0 %v8682_v45  ;;  %v8612_v45 = vld [vmem:[%s10775_s6 + $0x6a8] sm:$0xff]  }
 0x24e   :  { %7642 = vmatprep.subr.bf16.mxu0 %v8685_v50  ;;  %v8619_v50 = vld [vmem:[%s10775_s6 + $0x6f8] sm:$0xff]  }
 0x24f   :  { %7443 = vmatpush3.bf16.msra.mxu1 %v8552_v33  ;;  %v10062_v33 = vpack.c.bf16 %v4031_v32, %v4030_v31 }
 0x250   :  { %7444 = vmatprep.subr.bf16.mxu1 %v8555_v19  ;;  %v8599_v19 = vld [vmem:[%s10775_s6 + $0x6d0] sm:$0xff]  }
 0x251   :  { %7643 = vmatpush3.bf16.msra.mxu0 %v8686_v54 }
 0x252   :  { %8167 = vmatprep.subr.bf16.mxu0 %v8857_v36 }
 0x253   :  { %7445 = vmatpush3.bf16.msra.mxu1 %v8556_v43  ;;  %v8608_v43 = vld [vmem:[%s10775_s6 + $0x6a0] sm:$0xff]  }
 0x254   :  { %7474 = vmatprep.subr.bf16.mxu1 %v8559_v13  ;;  %3979 = vmatmul.mubr.bf16.vlgmr.msra.gmra.mrb[44].mxu0 %v6837_v59  ;;  %v8615_v13 = vld [vmem:[%s10775_s6 + $0x6f0] sm:$0xff]   ;;  %v10118_v59 = vld [vmem:[%s10774_s5 + $0x78] sm:$0xff] }
 0x255   :  { %7836 = vmatprep.mubr.msk.f32.mxu0 %vm8858_vm1, %v8859_v42  ;;  %8169 = vmatpush3.bf16.msra.mxu0 %v10044_v29 }
 0x256   :  { %3610 = vmatmul.mubr.bf16.vlgmr.msra.gmra.mrb[20].mxu1 %v6819_v49  ;;  %8170 = vmatprep.subr.bf16.mxu0 %v8857_v36  ;;  %v8616_v49 = vld [vmem:[%s10775_s6 + $0x6b0] sm:$0xff]  }
 0x257   :  { %7475 = vmatpush3.bf16.msra.mxu1 %v8560_v52  ;;  %3691 = vmatprep.mubr.bf16.mxu1 %v6824_v53 }
 0x258   :  { %7476 = vmatprep.subr.bf16.mxu1 %v8563_v55 }
 0x259   :  { %8172 = vmatpush3.bf16.msra.mxu0 %v10062_v33 }
 0x25a   :  { %8173 = vmatprep.subr.bf16.mxu0 %v8857_v36 }
 0x25b   :  { %7477 = vmatpush3.bf16.msra.mxu1 %v8564_v61  ;;  %v10123_v61 = vld [vmem:[%s10774_s5 + $0x118] sm:$0x33] }
 0x25c   :  { %7478 = vmatprep.subr.bf16.mxu1 %v8567_v62  ;;  %7837 = vmatmul.mubr.f32.vlgmr.msra.gmra.mrb[48].mxu0 %v8859_v42 }
 0x25d   :  { %7847 = vmatprep.mubr.msk.f32.mxu0 %vm8858_vm1, %v8859_v42 }
 0x25f   :  { %7479 = vmatpush3.bf16.msra.mxu1 %v8568_v63  ;;  %v6827_v63 = vcombine.low %v10027_v26, %v10032_v27 }
 0x260   :  { %7480 = vmatprep.subr.bf16.mxu1 %v8571_v0  ;;  %v8624_v0 = vld [vmem:[%s10775_s6 + $0x780] sm:$0xff]  }
 0x263   :  { %7481 = vmatpush3.bf16.msra.mxu1 %v8572_v1  ;;  %v6832_v1 = vcombine.high %v10118_v59, %v10123_v61 }
 0x264   :  { %7482 = vmatprep.subr.bf16.mxu1 %v8575_v2  ;;  %v8627_v2 = vld [vmem:[%s10775_s6 + $0x7c8] sm:$0xff]  }
 0x267   :  { %7483 = vmatpush3.bf16.msra.mxu1 %v8576_v3  ;;  %v7380_v22 = vpop.f32.mrb[20].mxu0  ;;  %v8628_v3 = vld [vmem:[%s10775_s6 + $0x788] sm:$0xff]  }
 0x268   :  { %7484 = vmatprep.subr.bf16.mxu1 %v8579_v4  ;;  %v7381_v18 = vpop.f32.mrb[21].mxu0  ;;  %v8631_v4 = vld [vmem:[%s10775_s6 + $0x7d0] sm:$0xff]  }
 0x269   :  { %v10016_v12 = vadd.f32 %v7381_v18, %v7380_v22  ;;  %v7383_v16 = vpop.f32.mrb[22].mxu0  ;;  %v8640_v22 = vld [vmem:[%s10775_s6 + $0x7a0] sm:$0xff]   ;;  %v8643_v18 = vld [vmem:[%s10775_s6 + $0x7e8] sm:$0xff]  }
 0x26a   :  { %v7384_v24 = vpop.f32.mrb[23].mxu0 }
 0x26b   :  { %7485 = vmatpush3.bf16.msra.mxu1 %v8580_v14  ;;  %v10034_v28 = vadd.f32 %v7384_v24, %v7383_v16  ;;  %v8632_v14 = vld [vmem:[%s10775_s6 + $0x790] sm:$0xff]   ;;  %v8644_v16 = vld [vmem:[%s10775_s6 + $0x7a8] sm:$0xff]   ;;  %v3243_v24 = vadd.f32 %v9775_v35, %v9780_v38 }
 0x26c   :  { %7486 = vmatprep.subr.bf16.mxu1 %v8583_v5  ;;  %v8635_v5 = vld [vmem:[%s10775_s6 + $0x7d8] sm:$0xff]  }
 0x26f   :  { %7487 = vmatpush3.bf16.msra.mxu1 %v8584_v6  ;;  %v8636_v6 = vld [vmem:[%s10775_s6 + $0x798] sm:$0xff]  }
 0x270   :  { %7488 = vmatprep.subr.bf16.mxu1 %v8587_v8  ;;  %v8639_v8 = vld [vmem:[%s10775_s6 + $0x7e0] sm:$0xff]  }
 0x273   :  { %7489 = vmatpush3.bf16.msra.mxu1 %v8588_v23  ;;  %v8647_v23 = vld [vmem:[%s10775_s6 + $0x7f0] sm:$0xff]  }
 0x274   :  { %7518 = vmatprep.subr.bf16.mxu1 %v8591_v25 }
 0x276   :  { %3692 = vmatmul.mubr.bf16.vlgmr.msra.gmra.mrb[24].mxu1 %v6823_v9 }
 0x277   :  { %7519 = vmatpush3.bf16.msra.mxu1 %v8592_v17  ;;  %3773 = vmatprep.mubr.bf16.mxu1 %v6828_v20  ;;  %v8651_v17 = vld [vmem:[%s10775_s6 + $0x7f8] sm:$0xff]  }
 0x278   :  { %7520 = vmatprep.subr.bf16.mxu1 %v8595_v30 }
 0x27b   :  { %7521 = vmatpush3.bf16.msra.mxu1 %v8596_v15 }
 0x27c   :  { %7522 = vmatprep.subr.bf16.mxu1 %v8599_v19 }
 0x27f   :  { %7523 = vmatpush3.bf16.msra.mxu1 %v8600_v34  ;;  %v8652_v34 = vld [vmem:[%s10775_s6 + $0x7b8] sm:$0xff]  }
 0x280   :  { %7524 = vmatprep.subr.bf16.mxu1 %v8603_v37 }
 0x283   :  { %7525 = vmatpush3.bf16.msra.mxu1 %v8604_v40  ;;  %v8655_v40 = vld [vmem:[%s10775_s6 + $0x8c0] sm:$0xff]  }
 0x284   :  { %7526 = vmatprep.subr.bf16.mxu1 %v8607_v41  ;;  %v10188_v41 = vld [vmem:[%s10774_s5 + $0x88] sm:$0xff] }
 0x287   :  { %7527 = vmatpush3.bf16.msra.mxu1 %v8608_v43  ;;  %v7424_v52 = vpop.f32.mrb[24].mxu0 }
 0x288   :  { %7528 = vmatprep.subr.bf16.mxu1 %v8611_v44  ;;  %v7425_v53 = vpop.f32.mrb[25].mxu0  ;;  %v6831_v44 = vcombine.low %v10118_v59, %v10123_v61  ;;  %v8679_v59 = vld [vmem:[%s10775_s6 + $0x8f0] sm:$0xff]  }
 0x289   :  { %v10099_v46 = vpop.f32.mrb[0].mxu1  ;;  %v10107_v54 = vadd.f32 %v7425_v53, %v7424_v52  ;;  %v7427_v55 = vpop.f32.mrb[26].mxu0  ;;  %v8667_v52 = vld [vmem:[%s10775_s6 + $0x8d8] sm:$0xff]  }
 0x28a   :  { %v7827_v47 = vpop.f32.mrb[1].mxu1  ;;  %v7428_v57 = vpop.f32.mrb[27].mxu0  ;;  %v8668_v53 = vld [vmem:[%s10775_s6 + $0x898] sm:$0xff]  }
 0x28b   :  { %7529 = vmatpush3.bf16.msra.mxu1 %v8612_v45  ;;  %v10125_v62 = vadd.f32 %v7428_v57, %v7427_v55  ;;  %v8656_v45 = vld [vmem:[%s10775_s6 + $0x880] sm:$0xff]   ;;  %v8659_v47 = vld [vmem:[%s10775_s6 + $0x8c8] sm:$0xff]  }
 0x28c   :  { %7530 = vmatprep.subr.bf16.mxu1 %v8615_v13  ;;  %v8671_v55 = vld [vmem:[%s10775_s6 + $0x8e0] sm:$0xff]   ;;  %v8675_v57 = vld [vmem:[%s10775_s6 + $0x8e8] sm:$0xff]  }
 0x28f   :  { %7531 = vmatpush3.bf16.msra.mxu1 %v8616_v49  ;;  %v8663_v49 = vld [vmem:[%s10775_s6 + $0x8d0] sm:$0xff]  }
 0x290   :  { %7532 = vmatprep.subr.bf16.mxu1 %v8619_v50  ;;  %v8664_v50 = vld [vmem:[%s10775_s6 + $0x890] sm:$0xff]  }
 0x293   :  { %7533 = vmatpush3.bf16.msra.mxu1 %v8620_v56  ;;  %v8672_v56 = vld [vmem:[%s10775_s6 + $0x8a0] sm:$0xff]  }
 0x294   :  { %7562 = vmatprep.subr.bf16.mxu1 %v8623_v58  ;;  %v8676_v58 = vld [vmem:[%s10775_s6 + $0x8a8] sm:$0xff]  }
 0x296   :  { %3774 = vmatmul.mubr.bf16.vlgmr.msra.gmra.mrb[28].mxu1 %v6827_v63 }
 0x297   :  { %7563 = vmatpush3.bf16.msra.mxu1 %v8624_v0  ;;  %3855 = vmatprep.mubr.bf16.mxu1 %v6832_v1 }
 0x298   :  { %7564 = vmatprep.subr.bf16.mxu1 %v8627_v2  ;;  %v8680_v2 = vld [vmem:[%s10775_s6 + $0x8b0] sm:$0xff]  }
 0x29b   :  { %7565 = vmatpush3.bf16.msra.mxu1 %v8628_v3 }
 0x29c   :  { %7566 = vmatprep.subr.bf16.mxu1 %v8631_v4  ;;  %v8683_v4 = vld [vmem:[%s10775_s6 + $0x8f8] sm:$0xff]  }
 0x29f   :  { %7567 = vmatpush3.bf16.msra.mxu1 %v8632_v14 }
 0x2a0   :  { %7568 = vmatprep.subr.bf16.mxu1 %v8635_v5 }
 0x2a3   :  { %7569 = vmatpush3.bf16.msra.mxu1 %v8636_v6 }
 0x2a4   :  { %7570 = vmatprep.subr.bf16.mxu1 %v8639_v8 }
 0x2a7   :  { %7571 = vmatpush3.bf16.msra.mxu1 %v8640_v22  ;;  %v7468_v20 = vpop.f32.mrb[28].mxu0 }
 0x2a8   :  { %7572 = vmatprep.subr.bf16.mxu1 %v8643_v18  ;;  %v7469_v32 = vpop.f32.mrb[29].mxu0 }
 0x2a9   :  { %v7270_v25 = vpop.f32.mrb[4].mxu1  ;;  %v10175_v35 = vadd.f32 %v7469_v32, %v7468_v20  ;;  %v7471_v38 = vpop.f32.mrb[30].mxu0  ;;  %v8688_v20 = vld [vmem:[%s10775_s6 + $0x988] sm:$0xff]  }
 0x2aa   :  { %v7271_v26 = vpop.f32.mrb[5].mxu1  ;;  %v7472_v37 = vpop.f32.mrb[31].mxu0  ;;  %v8692_v32 = vld [vmem:[%s10775_s6 + $0x9a8] sm:$0xff]  }
 0x2ab   :  { %v7272_v27 = vadd.f32 %v7271_v26, %v7270_v25  ;;  %v7273_v11 = vpop.f32.mrb[6].mxu1  ;;  %7573 = vmatpush3.bf16.msra.mxu1 %v8644_v16  ;;  %v473_v26 = vld [vmem:[%s10774_s5 + $0x98] sm:$0xff] }
 0x2ac   :  { %v7274_v9 = vpop.f32.mrb[7].mxu1  ;;  %7574 = vmatprep.subr.bf16.mxu1 %v8647_v23 }
 0x2ad   :  { %v3284_v30 = vadd.f32 %v7272_v27, %v3243_v24  ;;  %v7275_v31 = vadd.f32 %v7274_v9, %v7273_v11  ;;  %v8684_v24 = vld [vmem:[%s10775_s6 + $0x8b8] sm:$0xff]   ;;  %v8687_v9 = vld [vmem:[%s10775_s6 + $0x980] sm:$0xff]  }
 0x2ae   :  { %v493_v27 = vld [vmem:[%s10774_s5 + $0x138] sm:$0x33] }
 0x2af   :  { %v3287_v15 = vadd.f32 %v7275_v31, %v9795_v10  ;;  %v3325_v19 = vadd.f32 %v9809_v51, %v3284_v30  ;;  %7575 = vmatpush3.bf16.msra.mxu1 %v8648_v7  ;;  %v491_v10 = vld [vmem:[%s10774_s5 + $0x128] sm:$0x33]  ;;  %v10193_v51 = vadd.f32 %v7472_v37, %v7471_v38  ;;  %v8690_v30 = vld [vmem:[%s10775_s6 + $0x998] sm:$0xff]   ;;  %v8691_v31 = vld [vmem:[%s10775_s6 + $0x9a0] sm:$0xff]  }
 0x2b0   :  { %7576 = vmatprep.subr.bf16.mxu1 %v8651_v17  ;;  %v6836_v13 = vcombine.high %v10188_v41, %v491_v10  ;;  %v6840_v17 = vcombine.high %v473_v26, %v493_v27  ;;  %v8693_v37 = vld [vmem:[%s10775_s6 + $0x9b0] sm:$0xff]  }
 0x2b1   :  { %v3328_v43 = vadd.f32 %v9833_v60, %v3287_v15  ;;  %v8660_v60 = vld [vmem:[%s10775_s6 + $0x888] sm:$0xff]  }
 0x2b3   :  { %7577 = vmatpush3.bf16.msra.mxu1 %v8652_v34 }
 0x2b4   :  { %7606 = vmatprep.subr.bf16.mxu1 %v8655_v40 }
 0x2b6   :  { %3856 = vmatmul.mubr.bf16.vlgmr.msra.gmra.mrb[32].mxu1 %v6831_v44 }
 0x2b7   :  { %7607 = vmatpush3.bf16.msra.mxu1 %v8656_v45  ;;  %3937 = vmatprep.mubr.bf16.mxu1 %v6836_v13 }
 0x2b8   :  { %7608 = vmatprep.subr.bf16.mxu1 %v8659_v47 }
 0x2bb   :  { %7609 = vmatpush3.bf16.msra.mxu1 %v8660_v60 }
 0x2bc   :  { %7610 = vmatprep.subr.bf16.mxu1 %v8663_v49  ;;  %v8694_v49 = vld [vmem:[%s10775_s6 + $0x9b8] sm:$0xff]  }
 0x2bf   :  { %7611 = vmatpush3.bf16.msra.mxu1 %v8664_v50 }
 0x2c0   :  { %7612 = vmatprep.subr.bf16.mxu1 %v8667_v52  ;;  %v8695_v52 = vld [vmem:[%s10775_s6 + $0x9c0] ss:$0 sps:$4 sm:$0xff]  }
 0x2c3   :  { %7613 = vmatpush3.bf16.msra.mxu1 %v8668_v53 }
 0x2c4   :  { %7614 = vmatprep.subr.bf16.mxu1 %v8671_v55 }
 0x2c7   :  { %7615 = vmatpush3.bf16.msra.mxu1 %v8672_v56  ;;  %v7512_v14 = vpop.f32.mrb[32].mxu0  ;;  %v6839_v56 = vcombine.low %v473_v26, %v493_v27 }
 0x2c8   :  { %7616 = vmatprep.subr.bf16.mxu1 %v8675_v57  ;;  %v7513_v8 = vpop.f32.mrb[33].mxu0 }
 0x2c9   :  { %v7314_v61 = vpop.f32.mrb[8].mxu1  ;;  %v10241_v22 = vadd.f32 %v7513_v8, %v7512_v14  ;;  %v7515_v18 = vpop.f32.mrb[34].mxu0 }
 0x2ca   :  { %v7315_v63 = vpop.f32.mrb[9].mxu1  ;;  %v7516_v25 = vpop.f32.mrb[35].mxu0 }
 0x2cb   :  { %v7316_v0 = vadd.f32 %v7315_v63, %v7314_v61  ;;  %v7317_v1 = vpop.f32.mrb[10].mxu1  ;;  %7617 = vmatpush3.bf16.msra.mxu1 %v8676_v58  ;;  %v10253_v11 = vadd.f32 %v7516_v25, %v7515_v18 }
 0x2cc   :  { %v7318_v3 = vpop.f32.mrb[11].mxu1  ;;  %7618 = vmatprep.subr.bf16.mxu1 %v8679_v59 }
 0x2cd   :  { %v3366_v5 = vadd.f32 %v7316_v0, %v3325_v19  ;;  %v7319_v6 = vadd.f32 %v7318_v3, %v7317_v1 }
 0x2cf   :  { %v3369_v16 = vadd.f32 %v7319_v6, %v3328_v43  ;;  %v3407_v23 = vadd.f32 %v9929_v39, %v3366_v5  ;;  %7619 = vmatpush3.bf16.msra.mxu1 %v8680_v2  ;;  %v6835_v39 = vcombine.low %v10188_v41, %v491_v10 }
 0x2d0   :  { %7620 = vmatprep.subr.bf16.mxu1 %v8683_v4 }
 0x2d1   :  { %v3410_v7 = vadd.f32 %v9953_v48, %v3369_v16  ;;  %v8689_v48 = vld [vmem:[%s10775_s6 + $0x990] sm:$0xff]   ;;  %s8860_s6 = smov 64  }
 0x2d3   :  { %7621 = vmatpush3.bf16.msra.mxu1 %v8684_v24 }
 0x2d4   :  { %3987 = vmatprep.subr.bf16.mxu1 %v8856_v21 }
 0x2d6   :  { %3938 = vmatmul.mubr.bf16.vlgmr.msra.gmra.mrb[36].mxu1 %v6835_v39 }
 0x2d7   :  { %3988 = vmatpush1.bf16.msra.mxu1 %v8687_v9  ;;  %7154 = vmatprep.mubr.msk.bf16.mxu1 %vm3200_vm5, %v6840_v17 }
 0x2d8   :  { %3989 = vmatprep.subr.bf16.mxu1 %v8856_v21 }
 0x2db   :  { %3990 = vmatpush1.bf16.msra.mxu1 %v8688_v20 }
 0x2dc   :  { %3991 = vmatprep.subr.bf16.mxu1 %v8856_v21 }
 0x2df   :  { %3992 = vmatpush1.bf16.msra.mxu1 %v8689_v48 }
 0x2e0   :  { %3993 = vmatprep.subr.bf16.mxu1 %v8856_v21 }
 0x2e3   :  { %3994 = vmatpush1.bf16.msra.mxu1 %v8690_v30 }
 0x2e4   :  { %3995 = vmatprep.subr.bf16.mxu1 %v8856_v21 }
 0x2e7   :  { %3996 = vmatpush1.bf16.msra.mxu1 %v8691_v31  ;;  %v7556_v41 = vpop.f32.mrb[36].mxu0 }
 0x2e8   :  { %3997 = vmatprep.subr.bf16.mxu1 %v8856_v21  ;;  %v7557_v44 = vpop.f32.mrb[37].mxu0 }
 0x2e9   :  { %v7358_v38 = vpop.f32.mrb[12].mxu1  ;;  %v10285_v45 = vadd.f32 %v7557_v44, %v7556_v41  ;;  %v7559_v13 = vpop.f32.mrb[38].mxu0 }
 0x2ea   :  { %v7359_v15 = vpop.f32.mrb[13].mxu1  ;;  %v7560_v50 = vpop.f32.mrb[39].mxu0 }
 0x2eb   :  { %v7360_v19 = vadd.f32 %v7359_v15, %v7358_v38  ;;  %v7361_v34 = vpop.f32.mrb[14].mxu1  ;;  %3998 = vmatpush1.bf16.msra.mxu1 %v8692_v32  ;;  %v10295_v53 = vadd.f32 %v7560_v50, %v7559_v13 }
 0x2ec   :  { %v7362_v40 = vpop.f32.mrb[15].mxu1  ;;  %3999 = vmatprep.subr.bf16.mxu1 %v8856_v21 }
 0x2ed   :  { %v3448_v10 = vadd.f32 %v7360_v19, %v3407_v23  ;;  %v7363_v43 = vadd.f32 %v7362_v40, %v7361_v34 }
 0x2ef   :  { %v3451_v47 = vadd.f32 %v7363_v43, %v3410_v7  ;;  %v3489_v60 = vadd.f32 %v10016_v12, %v3448_v10  ;;  %4000 = vmatpush1.bf16.msra.mxu1 %v8693_v37  ;;  %v3206_v12 = vsel %vm3204_vm6, %v8695_v52, 0 }
 0x2f0   :  { %4001 = vmatprep.subr.bf16.mxu1 %v8856_v21 }
 0x2f1   :  { %v3492_v55 = vadd.f32 %v10034_v28, %v3451_v47 }
 0x2f3   :  { %4002 = vmatpush1.bf16.msra.mxu1 %v8694_v49 }
 0x2f4   :  { %4003 = vmatprep.subr.bf16.mxu1 %v8856_v21 }
 0x2f7   :  { %4004 = vmatpush1.bf16.msra.mxu1 %v3206_v12 }
 0x2f8   :  { %8179 = vmatprep.subr.bf16.mxu1 %v8857_v36 }
 0x2fa   :  { %4020 = vmatmul.mubr.bf16.vlgmr.msra.gmra.mrb[40].mxu1 %v6839_v56 }
 0x2fb   :  { %7858 = vmatprep.mubr.msk.f32.mxu1 %vm8858_vm1, %v8859_v42 }
 0x307   :  { %v7600_v0 = vpop.f32.mrb[40].mxu0 }
 0x308   :  { %v7601_v2 = vpop.f32.mrb[41].mxu0 }
 0x309   :  { %v7402_v57 = vpop.f32.mrb[16].mxu1  ;;  %v7602_v3 = vadd.f32 %v7601_v2, %v7600_v0  ;;  %v7603_v21 = vpop.f32.mrb[42].mxu0 }
 0x30a   :  { %v7403_v58 = vpop.f32.mrb[17].mxu1  ;;  %v7604_v5 = vpop.f32.mrb[43].mxu0 }
 0x30b   :  { %v7404_v59 = vadd.f32 %v7403_v58, %v7402_v57  ;;  %v7405_v61 = vpop.f32.mrb[18].mxu1  ;;  %v7605_v6 = vadd.f32 %v7604_v5, %v7603_v21 }
 0x30c   :  { %v7406_v63 = vpop.f32.mrb[19].mxu1 }
 0x30d   :  { %v3530_v28 = vadd.f32 %v7404_v59, %v3489_v60  ;;  %v7407_v1 = vadd.f32 %v7406_v63, %v7405_v61 }
 0x30f   :  { %v3533_v4 = vadd.f32 %v7407_v1, %v3492_v55  ;;  %v3571_v14 = vadd.f32 %v10107_v54, %v3530_v28 }
 0x311   :  { %v3574_v8 = vadd.f32 %v10125_v62, %v3533_v4 }
 0x327   :  { %v7644_v26 = vpop.f32.mrb[44].mxu0 }
 0x328   :  { %v7645_v39 = vpop.f32.mrb[45].mxu0 }
 0x329   :  { %v7446_v18 = vpop.f32.mrb[20].mxu1  ;;  %v7646_v9 = vadd.f32 %v7645_v39, %v7644_v26  ;;  %v7647_v17 = vpop.f32.mrb[46].mxu0 }
 0x32a   :  { %v7447_v16 = vpop.f32.mrb[21].mxu1  ;;  %v7648_v30 = vpop.f32.mrb[47].mxu0 }
 0x32b   :  { %v7448_v23 = vadd.f32 %v7447_v16, %v7446_v18  ;;  %v7449_v24 = vpop.f32.mrb[22].mxu1  ;;  %v7649_v54 = vadd.f32 %v7648_v30, %v7647_v17 }
 0x32c   :  { %v7450_v25 = vpop.f32.mrb[23].mxu1 }
 0x32d   :  { %v3612_v27 = vadd.f32 %v7448_v23, %v3571_v14  ;;  %v7451_v7 = vadd.f32 %v7450_v25, %v7449_v24 }
 0x32f   :  { %v3615_v20 = vadd.f32 %v7451_v7, %v3574_v8  ;;  %v3653_v48 = vadd.f32 %v10175_v35, %v3612_v27  ;;  %v4110_v40 = vpop.f32.mrb[48].mxu0 }
 0x330   :  { %v7838_v43 = vpop.f32.mrb[49].mxu0 }
 0x331   :  { %v3656_v31 = vadd.f32 %v10193_v51, %v3615_v20 }
 0x349   :  { %v7490_v32 = vpop.f32.mrb[24].mxu1 }
 0x34a   :  { %v7491_v62 = vpop.f32.mrb[25].mxu1 }
 0x34b   :  { %v7492_v38 = vadd.f32 %v7491_v62, %v7490_v32  ;;  %v7493_v15 = vpop.f32.mrb[26].mxu1  ;;  %v4032_v32 = vld [vmem:[%s10778_s9] sm:$0xff]  ;;  %v4033_v62 = vld [vmem:[%s10778_s9 + $0x8] sm:$0xff] }
 0x34c   :  { %v7494_v19 = vpop.f32.mrb[27].mxu1 }
 0x34d   :  { %v3694_v34 = vadd.f32 %v7492_v38, %v3653_v48  ;;  %v7495_v37 = vadd.f32 %v7494_v19, %v7493_v15  ;;  %v4036_v38 = vld [vmem:[%s10780_s11] sm:$0xff]  ;;  %v10329_v15 = vpack.c.bf16 %v4033_v62, %v4032_v32  ;;  %v4037_v19 = vld [vmem:[%s10780_s11 + $0x8] sm:$0xff] }
 0x34f   :  { %v3697_v41 = vadd.f32 %v7495_v37, %v3656_v31  ;;  %v3735_v10 = vadd.f32 %v10241_v22, %v3694_v34  ;;  %v4034_v34 = vld [vmem:[%s10778_s9 + $0x10] sm:$0xff]  ;;  %v4035_v37 = vld [vmem:[%s10778_s9 + $0x18] sm:$0xff]  ;;  %8175 = vmatpush3.bf16.msra.mxu0 %v10329_v15 }
 0x350   :  { %v10349_v43 = vpack.c.bf16 %v4035_v37, %v4034_v34  ;;  %8176 = vmatprep.subr.bf16.mxu0 %v8857_v36 }
 0x351   :  { %v3738_v44 = vadd.f32 %v10253_v11, %v3697_v41  ;;  %v4038_v41 = vld [vmem:[%s10780_s11 + $0x10] sm:$0xff] }
 0x353   :  { %8178 = vmatpush3.bf16.msra.mxu0 %v10349_v43 }
 0x354   :  { %8185 = vmatprep.subr.bf16.mxu0 %v8857_v36 }
 0x369   :  { %v7534_v13 = vpop.f32.mrb[28].mxu1 }
 0x36a   :  { %v7535_v35 = vpop.f32.mrb[29].mxu1 }
 0x36b   :  { %v7536_v47 = vadd.f32 %v7535_v35, %v7534_v13  ;;  %v7537_v60 = vpop.f32.mrb[30].mxu1 }
 0x36c   :  { %v7538_v49 = vpop.f32.mrb[31].mxu1 }
 0x36d   :  { %v3776_v51 = vadd.f32 %v7536_v47, %v3735_v10  ;;  %v7539_v50 = vadd.f32 %v7538_v49, %v7537_v60  ;;  %v4039_v10 = vld [vmem:[%s10780_s11 + $0x18] sm:$0xff] }
 0x36f   :  { %v3779_v52 = vadd.f32 %v7539_v50, %v3738_v44  ;;  %v3817_v55 = vadd.f32 %v10285_v45, %v3776_v51  ;;  %v10353_v44 = vpack.c.bf16 %v4039_v10, %v4038_v41  ;;  %v10386_v50 = vld [vmem:[%s10779_s10] ss:$0 sm:$0xff] }
 0x371   :  { %v3820_v12 = vadd.f32 %v10295_v53, %v3779_v52 }
 0x389   :  { %v7578_v56 = vpop.f32.mrb[32].mxu1 }
 0x38a   :  { %v7579_v57 = vpop.f32.mrb[33].mxu1 }
 0x38b   :  { %v7580_v58 = vadd.f32 %v7579_v57, %v7578_v56  ;;  %v7581_v59 = vpop.f32.mrb[34].mxu1 }
 0x38c   :  { %v7582_v22 = vpop.f32.mrb[35].mxu1 }
 0x38d   :  { %v3858_v61 = vadd.f32 %v7580_v58, %v3817_v55  ;;  %v7583_v63 = vadd.f32 %v7582_v22, %v7581_v59 }
 0x38f   :  { %v3861_v11 = vadd.f32 %v7583_v63, %v3820_v12  ;;  %v3899_v0 = vadd.f32 %v7602_v3, %v3858_v61 }
 0x391   :  { %v3902_v28 = vadd.f32 %v7605_v6, %v3861_v11 }
 0x3a9   :  { %v7622_v1 = vpop.f32.mrb[36].mxu1 }
 0x3aa   :  { %v7623_v2 = vpop.f32.mrb[37].mxu1 }
 0x3ab   :  { %v7624_v21 = vadd.f32 %v7623_v2, %v7622_v1  ;;  %v7625_v4 = vpop.f32.mrb[38].mxu1 }
 0x3ac   :  { %v7626_v14 = vpop.f32.mrb[39].mxu1 }
 0x3ad   :  { %v3940_v5 = vadd.f32 %v7624_v21, %v3899_v0  ;;  %v7627_v8 = vadd.f32 %v7626_v14, %v7625_v4 }
 0x3af   :  { %v3943_v45 = vadd.f32 %v7627_v8, %v3902_v28  ;;  %v3981_v18 = vadd.f32 %v7646_v9, %v3940_v5 }
 0x3b1   :  { %v3984_v53 = vadd.f32 %v7649_v54, %v3943_v45 }
 0x3cd   :  { %v4021_v16 = vpop.f32.mrb[40].mxu1 }
 0x3ce   :  { %v10310_v23 = vadd.f32 %v4021_v16, %v3981_v18  ;;  %v4023_v24 = vpop.f32.mrb[41].mxu1 }
 0x3cf   :  { %v4024_v25 = vpop.f32.mrb[42].mxu1 }
 0x3d0   :  { %v4114_v26 = vadd.f32 %v4110_v40, %v10310_v23  ;;  %v10313_v27 = vadd.f32 %v4024_v25, %v3984_v53  ;;  %v4026_v3 = vpop.f32.mrb[43].mxu1  ;;  %v10340_v40 = vpack.c.bf16 %v4037_v19, %v4036_v38 }
 0x3d2   :  { %8728 = vtanh.f32 %v4114_v26  ;;  %v7155_v7 = vmul.f32 -1.442695, %v4114_v26  ;;  %8181 = vmatpush3.bf16.msra.mxu1 %v10340_v40 }
 0x3d3   :  { %8182 = vmatprep.subr.bf16.mxu1 %v8857_v36 }
 0x3d4   :  { %8730 = vpow2.f32 %v7155_v7 }
 0x3d6   :  { %8184 = vmatpush3.bf16.msra.mxu1 %v10353_v44 }
 0x3d7   :  { %8203 = vmatprep.subr.bf16.mxu1 %v8857_v36 }
 0x3d9   :  { %7859 = vmatmul.mubr.f32.vlgmr.msra.gmra.mrb[2].mxu1 %v8859_v42 }
 0x3da   :  { %8205 = vmatpush3.bf16.msra.mxu1 %v10044_v29  ;;  %7902 = vmatprep.mubr.msk.f32.mxu1 %vm8858_vm1, %v8859_v42 }
 0x3db   :  { %8206 = vmatprep.subr.bf16.mxu1 %v8857_v36 }
 0x3dc   :  { %v8729_v6 = vpop.eup %8728 }
 0x3dd   :  { %4124 = vrot.lane.b32.xlu0 %v8729_v6, %s8860_s6 }
 0x3de   :  { %v8731_v39 = vpop.eup %8730  ;;  %8208 = vmatpush3.bf16.msra.mxu1 %v10062_v33 }
 0x3df   :  { %v4118_v9 = vadd.f32 1.0, %v8731_v39  ;;  %8209 = vmatprep.subr.bf16.mxu1 %v8857_v36 }
 0x3e1   :  { %8732 = vrcp.f32 %v4118_v9 }
 0x3eb   :  { %v8733_v17 = vpop.eup %8732 }
 0x3ec   :  { %v4122_v30 = vmul.f32 0.0, %v8733_v17 }
 0x44f   :  { %v4125_v20 = vpop.permute.xlu0 %4124 }
 0x450   :  { %v4127_v48 = vmul.f32 %v8733_v17, %v4125_v20 }
 0x452   :  { %4129 = vrot.lane.b32.xlu1 %v4127_v48, %s8861_s26 }
 0x4ac   :  { %v4286_v49 = vpop.f32.mrb[2].mxu1 }
 0x4ad   :  { %v7860_v51 = vpop.f32.mrb[3].mxu1 }
 0x4c4   :  { %v4130_v54 = vpop.permute.xlu1 %4129 }
 0x4c5   :  { %v10317_v31 = vadd.f32 %v4130_v54, %v4122_v30 }
 0x4c7   :  { %8734 = vtanh.f32 %v10317_v31  ;;  %v4397_v25 = vrot.slane %v10317_v31, 6 }
 0x4d1   :  { %v8735_v13 = vpop.eup %8734 }
 0x4d2   :  { %4135 = vrot.lane.b32.xlu0 %v8735_v13, %s8860_s6 }
 0x544   :  { %v4136_v35 = vpop.permute.xlu0 %4135 }
 0x545   :  { %v4138_v47 = vmul.f32 %v8733_v17, %v4136_v35 }
 0x547   :  { %4146 = vrot.lane.b32.xlu1 %v4138_v47, %s8861_s26 }
 0x5b9   :  { %v4147_v60 = vpop.permute.xlu1 %4146 }
 0x5ba   :  { %7848 = vmatmul.mubr.msk.f32.vlgmr.msra.gmra.mrb[50].mxu0 %vm92_vm0, %v4147_v60 }
 0x5bb   :  { %8187 = vmatpush3.bf16.msra.mxu0 %v10044_v29  ;;  %7869 = vmatprep.mubr.msk.f32.mxu0 %vm8858_vm1, %v8859_v42 }
 0x5bc   :  { %8188 = vmatprep.subr.bf16.mxu0 %v8857_v36 }
 0x5bf   :  { %8190 = vmatpush3.bf16.msra.mxu0 %v10062_v33 }
 0x5c0   :  { %8191 = vmatprep.subr.bf16.mxu0 %v8857_v36 }
 0x5c2   :  { %7870 = vmatmul.mubr.msk.f32.vlgmr.msra.gmra.mrb[52].mxu0 %vm92_vm0, %v4147_v60 }
 0x5c3   :  { %8193 = vmatpush3.bf16.msra.mxu0 %v10329_v15  ;;  %7880 = vmatprep.mubr.msk.f32.mxu0 %vm8858_vm1, %v8859_v42 }
 0x5c4   :  { %8194 = vmatprep.subr.bf16.mxu0 %v8857_v36 }
 0x5c7   :  { %8196 = vmatpush3.bf16.msra.mxu0 %v10349_v43 }
 0x5c8   :  { %8197 = vmatprep.subr.bf16.mxu0 %v8857_v36 }
 0x68d   :  { %v4216_v52 = vpop.f32.mrb[50].mxu0 }
 0x68e   :  { %v4217_v55 = vadd.f32 %v10386_v50, %v4216_v52  ;;  %v7849_v12 = vpop.f32.mrb[51].mxu0 }
 0x690   :  { %v4290_v56 = vadd.f32 %v4286_v49, %v4217_v55 }
 0x692   :  { %8736 = vtanh.f32 %v4290_v56  ;;  %v7158_v11 = vmul.f32 -1.442695, %v4290_v56 }
 0x695   :  { %v4381_v57 = vpop.f32.mrb[52].mxu0 }
 0x696   :  { %v4386_v58 = vrot.slane %v4381_v57, 6  ;;  %v7871_v59 = vpop.f32.mrb[53].mxu0 }
 0x698   :  { %v4388_v22 = vadd.f32 %v4386_v58, %v10310_v23 }
 0x69a   :  { %8738 = vtanh.f32 %v4388_v22  ;;  %v7160_v0 = vmul.f32 -1.442695, %v4388_v22 }
 0x69b   :  { %8740 = vpow2.f32 %v7158_v11 }
 0x69c   :  { %v8737_v61 = vpop.eup %8736  ;;  %8742 = vpow2.f32 %v7160_v0 }
 0x69d   :  { %4300 = vrot.lane.b32.xlu1 %v8737_v61, %s8860_s6 }
 0x6a4   :  { %v8739_v63 = vpop.eup %8738 }
 0x6a5   :  { %4401 = vrot.lane.b32.xlu0 %v8739_v63, %s8860_s6  ;;  %v8741_v28 = vpop.eup %8740 }
 0x6a6   :  { %v4294_v1 = vadd.f32 1.0, %v8741_v28  ;;  %v8743_v2 = vpop.eup %8742 }
 0x6a7   :  { %v4392_v21 = vadd.f32 1.0, %v8743_v2 }
 0x6a8   :  { %8744 = vrcp.f32 %v4294_v1 }
 0x6a9   :  { %8746 = vrcp.f32 %v4392_v21 }
 0x6b2   :  { %v8745_v4 = vpop.eup %8744 }
 0x6b3   :  { %v8747_v8 = vpop.eup %8746  ;;  %v4298_v53 = vmul.f32 0.0, %v8745_v4 }
 0x6b4   :  { %v4399_v26 = vmul.f32 %v8747_v8, %v4397_v25 }
 0x70f   :  { %v4301_v14 = vpop.permute.xlu1 %4300 }
 0x710   :  { %v4303_v5 = vmul.f32 %v8745_v4, %v4301_v14 }
 0x712   :  { %4305 = vrot.lane.b32.xlu1 %v4303_v5, %s8861_s26 }
 0x717   :  { %v4402_v45 = vpop.permute.xlu0 %4401 }
 0x718   :  { %v4404_v18 = vmul.f32 %v8747_v8, %v4402_v45 }
 0x71a   :  { %4406 = vrot.lane.b32.xlu0 %v4404_v18, %s8861_s26 }
 0x784   :  { %v4306_v16 = vpop.permute.xlu1 %4305 }
 0x785   :  { %v10394_v24 = vadd.f32 %v4306_v16, %v4298_v53 }
 0x787   :  { %8748 = vtanh.f32 %v10394_v24 }
 0x78c   :  { %v4407_v3 = vpop.permute.xlu0 %4406 }
 0x78d   :  { %v10398_v6 = vadd.f32 %v4407_v3, %v4399_v26 }
 0x78f   :  { %8750 = vtanh.f32 %v10398_v6  ;;  %v4674_v22 = vrot.slane %v10398_v6, 6 }
 0x791   :  { %v8749_v7 = vpop.eup %8748 }
 0x792   :  { %4311 = vrot.lane.b32.xlu1 %v8749_v7, %s8860_s6 }
 0x799   :  { %v8751_v39 = vpop.eup %8750 }
 0x79a   :  { %4412 = vrot.lane.b32.xlu0 %v8751_v39, %s8860_s6 }
 0x804   :  { %v4312_v9 = vpop.permute.xlu1 %4311 }
 0x805   :  { %v10403_v17 = vmul.f32 %v8745_v4, %v4312_v9 }
 0x807   :  { %4493 = vrot.lane.b32.xlu1 %v10403_v17, %s8861_s26 }
 0x80c   :  { %v4413_v20 = vpop.permute.xlu0 %4412 }
 0x80d   :  { %v4415_v48 = vmul.f32 %v8747_v8, %v4413_v20 }
 0x80f   :  { %v4417_v30 = vrot.slane %v4415_v48, 2 }
 0x811   :  { %4418 = vrot.lane.b32.xlu0 %v4417_v30, %s8861_s26 }
 0x879   :  { %v10421_v31 = vpop.permute.xlu1 %4493 }
 0x883   :  { %v4419_v54 = vpop.permute.xlu0 %4418 }
 0x884   :  { %7881 = vmatmul.mubr.msk.f32.vlgmr.msra.gmra.mrb[54].mxu0 %vm92_vm0, %v4419_v54  ;;  %7903 = vmatmul.mubr.msk.f32.vlgmr.msra.gmra.mrb[44].mxu1 %vm92_vm0, %v4419_v54 }
 0x885   :  { %8199 = vmatpush3.bf16.msra.mxu0 %v10340_v40  ;;  %7891 = vmatprep.mubr.msk.f32.mxu0 %vm8858_vm1, %v8859_v42 }
 0x886   :  { %8200 = vmatprep.subr.bf16.mxu0 %v8857_v36  ;;  %8211 = vmatpush3.bf16.msra.mxu1 %v10329_v15 }
 0x887   :  { %8212 = vmatprep.subr.bf16.mxu1 %v8857_v36  ;;  %7913 = vmatprep.mubr.msk.f32.mxu1 %vm8858_vm1, %v8859_v42 }
 0x889   :  { %8202 = vmatpush3.bf16.msra.mxu0 %v10353_v44 }
 0x88a   :  { %8221 = vmatprep.subr.bf16.mxu0 %v8857_v36  ;;  %8214 = vmatpush3.bf16.msra.mxu1 %v10349_v43 }
 0x88b   :  { %8215 = vmatprep.subr.bf16.mxu1 %v8857_v36 }
 0x88c   :  { %7892 = vmatmul.mubr.msk.f32.vlgmr.msra.gmra.mrb[54].mxu0 %vm92_vm0, %v10421_v31 }
 0x88d   :  { %8223 = vmatpush3.bf16.msra.mxu0 %v10044_v29  ;;  %7935 = vmatprep.mubr.msk.f32.mxu0 %vm8858_vm1, %v8859_v42 }
 0x88e   :  { %8224 = vmatprep.subr.bf16.mxu0 %v8857_v36 }
 0x891   :  { %8226 = vmatpush3.bf16.msra.mxu0 %v10062_v33 }
 0x892   :  { %8227 = vmatprep.subr.bf16.mxu0 %v8857_v36 }
 0x957   :  { %v4658_v32 = vpop.f32.mrb[44].mxu1 }
 0x958   :  { %v4663_v62 = vrot.slane %v4658_v32, 4  ;;  %v7904_v38 = vpop.f32.mrb[45].mxu1 }
 0x95a   :  { %v4665_v19 = vadd.f32 %v4663_v62, %v10310_v23 }
 0x95c   :  { %8752 = vtanh.f32 %v4665_v19  ;;  %v7165_v35 = vmul.f32 -1.442695, %v4665_v19 }
 0x95f   :  { %v4563_v34 = vpop.f32.mrb[54].mxu0 }
 0x960   :  { %v8343_v37 = vadd.f32 %v10386_v50, %v4563_v34  ;;  %v7893_v41 = vpop.f32.mrb[55].mxu0 }
 0x962   :  { %8754 = vtanh.f32 %v8343_v37  ;;  %v7163_v47 = vmul.f32 -1.442695, %v8343_v37 }
 0x963   :  { %8756 = vpow2.f32 %v7165_v35 }
 0x964   :  { %8758 = vpow2.f32 %v7163_v47 }
 0x966   :  { %v8753_v10 = vpop.eup %8752 }
 0x967   :  { %4678 = vrot.lane.b32.xlu0 %v8753_v10, %s8860_s6 }
 0x96c   :  { %v8755_v13 = vpop.eup %8754 }
 0x96d   :  { %4577 = vrot.lane.b32.xlu1 %v8755_v13, %s8860_s6  ;;  %v8757_v60 = vpop.eup %8756 }
 0x96e   :  { %v4669_v49 = vadd.f32 1.0, %v8757_v60  ;;  %v8759_v51 = vpop.eup %8758 }
 0x96f   :  { %v4571_v52 = vadd.f32 1.0, %v8759_v51 }
 0x970   :  { %8760 = vrcp.f32 %v4669_v49 }
 0x971   :  { %8762 = vrcp.f32 %v4571_v52 }
 0x97a   :  { %v8761_v55 = vpop.eup %8760 }
 0x97b   :  { %v8763_v57 = vpop.eup %8762  ;;  %v4676_v61 = vmul.f32 %v8761_v55, %v4674_v22 }
 0x97c   :  { %v4575_v0 = vmul.f32 %v8763_v57, %v10394_v24 }
 0x9d9   :  { %v4679_v12 = vpop.permute.xlu0 %4678 }
 0x9da   :  { %v4681_v56 = vmul.f32 %v8761_v55, %v4679_v12 }
 0x9dc   :  { %4683 = vrot.lane.b32.xlu0 %v4681_v56, %s8861_s26 }
 0x9df   :  { %v4578_v58 = vpop.permute.xlu1 %4577 }
 0x9e0   :  { %v4580_v59 = vmul.f32 %v8763_v57, %v4578_v58 }
 0x9e2   :  { %4582 = vrot.lane.b32.xlu1 %v4580_v59, %s8861_s26 }
 0xa4e   :  { %v4684_v63 = vpop.permute.xlu0 %4683 }
 0xa4f   :  { %v10439_v11 = vadd.f32 %v4684_v63, %v4676_v61 }
 0xa51   :  { %8764 = vtanh.f32 %v10439_v11  ;;  %v4951_v10 = vrot.slane %v10439_v11, 6 }
 0xa54   :  { %v4583_v28 = vpop.permute.xlu1 %4582 }
 0xa55   :  { %v10443_v1 = vadd.f32 %v4583_v28, %v4575_v0 }
 0xa57   :  { %8766 = vtanh.f32 %v10443_v1 }
 0xa5b   :  { %v8765_v2 = vpop.eup %8764 }
 0xa5c   :  { %4689 = vrot.lane.b32.xlu0 %v8765_v2, %s8860_s6 }
 0xa61   :  { %v8767_v21 = vpop.eup %8766 }
 0xa62   :  { %4588 = vrot.lane.b32.xlu1 %v8767_v21, %s8860_s6 }
 0xace   :  { %v4690_v4 = vpop.permute.xlu0 %4689 }
 0xacf   :  { %v4692_v14 = vmul.f32 %v8761_v55, %v4690_v4 }
 0xad1   :  { %v4694_v5 = vrot.slane %v4692_v14, 4 }
 0xad3   :  { %4695 = vrot.lane.b32.xlu0 %v4694_v5, %s8861_s26 }
 0xad4   :  { %v4589_v8 = vpop.permute.xlu1 %4588 }
 0xad5   :  { %v10449_v45 = vmul.f32 %v8763_v57, %v4589_v8 }
 0xad7   :  { %4770 = vrot.lane.b32.xlu1 %v10449_v45, %s8861_s26 }
 0xb45   :  { %v4696_v18 = vpop.permute.xlu0 %4695 }
 0xb46   :  { %7914 = vmatmul.mubr.msk.f32.vlgmr.msra.gmra.mrb[46].mxu1 %vm92_vm0, %v4696_v18  ;;  %7936 = vmatmul.mubr.msk.f32.vlgmr.msra.gmra.mrb[56].mxu0 %vm92_vm0, %v4696_v18 }
 0xb47   :  { %8217 = vmatpush3.bf16.msra.mxu1 %v10340_v40  ;;  %7924 = vmatprep.mubr.msk.f32.mxu1 %vm8858_vm1, %v8859_v42 }
 0xb48   :  { %8218 = vmatprep.subr.bf16.mxu1 %v8857_v36  ;;  %8229 = vmatpush3.bf16.msra.mxu0 %v10329_v15 }
 0xb49   :  { %8230 = vmatprep.subr.bf16.mxu0 %v8857_v36  ;;  %7946 = vmatprep.mubr.msk.f32.mxu0 %vm8858_vm1, %v8859_v42  ;;  %v10466_v53 = vpop.permute.xlu1 %4770 }
 0xb4b   :  { %8220 = vmatpush3.bf16.msra.mxu1 %v10353_v44 }
 0xb4c   :  { %8239 = vmatprep.subr.bf16.mxu1 %v8857_v36  ;;  %8232 = vmatpush3.bf16.msra.mxu0 %v10349_v43 }
 0xb4d   :  { %8233 = vmatprep.subr.bf16.mxu0 %v8857_v36 }
 0xb4e   :  { %7925 = vmatmul.mubr.msk.f32.vlgmr.msra.gmra.mrb[46].mxu1 %vm92_vm0, %v10466_v53 }
 0xb4f   :  { %8241 = vmatpush3.bf16.msra.mxu1 %v10044_v29  ;;  %7968 = vmatprep.mubr.msk.f32.mxu1 %vm8858_vm1, %v8859_v42 }
 0xb50   :  { %8242 = vmatprep.subr.bf16.mxu1 %v8857_v36 }
 0xb53   :  { %8244 = vmatpush3.bf16.msra.mxu1 %v10062_v33 }
 0xb54   :  { %8245 = vmatprep.subr.bf16.mxu1 %v8857_v36 }
 0xc19   :  { %v4935_v16 = vpop.f32.mrb[56].mxu0 }
 0xc1a   :  { %v4940_v24 = vrot.slane %v4935_v16, 2  ;;  %v7937_v25 = vpop.f32.mrb[57].mxu0 }
 0xc1c   :  { %v4942_v26 = vadd.f32 %v4940_v24, %v10310_v23 }
 0xc1e   :  { %8768 = vtanh.f32 %v4942_v26  ;;  %v7170_v20 = vmul.f32 -1.442695, %v4942_v26 }
 0xc21   :  { %v4840_v3 = vpop.f32.mrb[46].mxu1 }
 0xc22   :  { %v8344_v6 = vadd.f32 %v10386_v50, %v4840_v3  ;;  %v7926_v7 = vpop.f32.mrb[47].mxu1 }
 0xc24   :  { %8770 = vtanh.f32 %v8344_v6  ;;  %v7168_v48 = vmul.f32 -1.442695, %v8344_v6 }
 0xc25   :  { %8772 = vpow2.f32 %v7170_v20 }
 0xc26   :  { %8774 = vpow2.f32 %v7168_v48 }
 0xc28   :  { %v8769_v39 = vpop.eup %8768 }
 0xc29   :  { %4955 = vrot.lane.b32.xlu0 %v8769_v39, %s8860_s6 }
 0xc2e   :  { %v8771_v9 = vpop.eup %8770 }
 0xc2f   :  { %4854 = vrot.lane.b32.xlu1 %v8771_v9, %s8860_s6  ;;  %v8773_v30 = vpop.eup %8772 }
 0xc30   :  { %v4946_v54 = vadd.f32 1.0, %v8773_v30  ;;  %v8775_v32 = vpop.eup %8774 }
 0xc31   :  { %v4848_v23 = vadd.f32 1.0, %v8775_v32 }
 0xc32   :  { %8776 = vrcp.f32 %v4946_v54 }
 0xc33   :  { %8778 = vrcp.f32 %v4848_v23 }
 0xc3c   :  { %v8777_v62 = vpop.eup %8776 }
 0xc3d   :  { %v8779_v34 = vpop.eup %8778  ;;  %v4953_v13 = vmul.f32 %v8777_v62, %v4951_v10  ;;  %v5697_v10 = vld [vmem:[%s10781_s12 + $0x8] sm:$0xff] }
 0xc3e   :  { %v4852_v60 = vmul.f32 %v8779_v34, %v10443_v1 }
 0xc9b   :  { %v4956_v38 = vpop.permute.xlu0 %4955 }
 0xc9c   :  { %v4958_v19 = vmul.f32 %v8777_v62, %v4956_v38 }
 0xc9e   :  { %4960 = vrot.lane.b32.xlu0 %v4958_v19, %s8861_s26 }
 0xca1   :  { %v4855_v37 = vpop.permute.xlu1 %4854 }
 0xca2   :  { %v4857_v41 = vmul.f32 %v8779_v34, %v4855_v37 }
 0xca4   :  { %4859 = vrot.lane.b32.xlu1 %v4857_v41, %s8861_s26  ;;  %v5696_v41 = vld [vmem:[%s10781_s12] sm:$0xff] }
 0xd10   :  { %v4961_v35 = vpop.permute.xlu0 %4960 }
 0xd11   :  { %v10484_v47 = vadd.f32 %v4961_v35, %v4953_v13  ;;  %v10560_v13 = vpack.c.bf16 %v5697_v10, %v5696_v41  ;;  %v5698_v35 = vld [vmem:[%s10781_s12 + $0x10] sm:$0xff] }
 0xd13   :  { %8780 = vtanh.f32 %v10484_v47  ;;  %v5225_v7 = vrot.slane %v10484_v47, 6  ;;  %v5699_v47 = vld [vmem:[%s10781_s12 + $0x18] sm:$0xff] }
 0xd16   :  { %v4860_v49 = vpop.permute.xlu1 %4859 }
 0xd17   :  { %v10488_v51 = vadd.f32 %v4860_v49, %v4852_v60  ;;  %v10576_v60 = vpack.c.bf16 %v5699_v47, %v5698_v35  ;;  %v5779_v49 = vld [vmem:[%s10783_s14 + $0x8] sm:$0xff] }
 0xd19   :  { %8782 = vtanh.f32 %v10488_v51 }
 0xd1d   :  { %v8781_v52 = vpop.eup %8780 }
 0xd1e   :  { %4966 = vrot.lane.b32.xlu0 %v8781_v52, %s8860_s6 }
 0xd23   :  { %v8783_v55 = vpop.eup %8782 }
 0xd24   :  { %4865 = vrot.lane.b32.xlu1 %v8783_v55, %s8860_s6 }
 0xd90   :  { %v4967_v12 = vpop.permute.xlu0 %4966 }
 0xd91   :  { %v4969_v56 = vmul.f32 %v8777_v62, %v4967_v12 }
 0xd93   :  { %v4971_v57 = vrot.slane %v4969_v56, 6 }
 0xd95   :  { %4972 = vrot.lane.b32.xlu0 %v4971_v57, %s8861_s26 }
 0xd96   :  { %v4866_v58 = vpop.permute.xlu1 %4865 }
 0xd97   :  { %v10494_v59 = vmul.f32 %v8779_v34, %v4866_v58 }
 0xd99   :  { %5047 = vrot.lane.b32.xlu1 %v10494_v59, %s8861_s26 }
 0xe07   :  { %v4973_v22 = vpop.permute.xlu0 %4972 }
 0xe08   :  { %7947 = vmatmul.mubr.msk.f32.vlgmr.msra.gmra.mrb[58].mxu0 %vm92_vm0, %v4973_v22  ;;  %7969 = vmatmul.mubr.msk.f32.vlgmr.msra.gmra.mrb[48].mxu1 %vm92_vm0, %v4973_v22  ;;  %v10602_v22 = vld [vmem:[%s10782_s13] ss:$0 sm:$0xff]  ;;  %s8862_s13 = smov 1  }
 0xe09   :  { %8235 = vmatpush3.bf16.msra.mxu0 %v10340_v40  ;;  %7957 = vmatprep.mubr.msk.f32.mxu0 %vm8858_vm1, %v8859_v42 }
 0xe0a   :  { %8236 = vmatprep.subr.bf16.mxu0 %v8857_v36  ;;  %8247 = vmatpush3.bf16.msra.mxu1 %v10329_v15 }
 0xe0b   :  { %8248 = vmatprep.subr.bf16.mxu1 %v8857_v36  ;;  %7979 = vmatprep.mubr.msk.f32.mxu1 %vm8858_vm1, %v8859_v42  ;;  %v10511_v61 = vpop.permute.xlu1 %5047 }
 0xe0d   :  { %8238 = vmatpush3.bf16.msra.mxu0 %v10353_v44 }
 0xe0e   :  { %8257 = vmatprep.subr.bf16.mxu0 %v8857_v36  ;;  %8250 = vmatpush3.bf16.msra.mxu1 %v10349_v43 }
 0xe0f   :  { %8251 = vmatprep.subr.bf16.mxu1 %v8857_v36 }
 0xe10   :  { %7958 = vmatmul.mubr.msk.f32.vlgmr.msra.gmra.mrb[58].mxu0 %vm92_vm0, %v10511_v61 }
 0xe11   :  { %8259 = vmatpush3.bf16.msra.mxu0 %v10044_v29  ;;  %8001 = vmatprep.mubr.msk.f32.mxu0 %vm8858_vm1, %v8859_v42 }
 0xe12   :  { %8260 = vmatprep.subr.bf16.mxu0 %v8857_v36 }
 0xe15   :  { %8262 = vmatpush3.bf16.msra.mxu0 %v10062_v33 }
 0xe16   :  { %8263 = vmatprep.subr.bf16.mxu0 %v8857_v36 }
 0xedb   :  { %v5212_v63 = vpop.f32.mrb[48].mxu1 }
 0xedc   :  { %v5216_v11 = vadd.f32 %v5212_v63, %v10313_v27  ;;  %v7970_v0 = vpop.f32.mrb[49].mxu1 }
 0xede   :  { %8784 = vtanh.f32 %v5216_v11  ;;  %v7175_v4 = vmul.f32 -1.442695, %v5216_v11 }
 0xee3   :  { %v5117_v28 = vpop.f32.mrb[58].mxu0 }
 0xee4   :  { %v8345_v1 = vadd.f32 %v10386_v50, %v5117_v28  ;;  %v7959_v2 = vpop.f32.mrb[59].mxu0 }
 0xee6   :  { %8786 = vtanh.f32 %v8345_v1  ;;  %v7173_v33 = vmul.f32 -1.442695, %v8345_v1 }
 0xee7   :  { %8788 = vpow2.f32 %v7175_v4 }
 0xee8   :  { %v8785_v29 = vpop.eup %8784  ;;  %8790 = vpow2.f32 %v7173_v33 }
 0xee9   :  { %5229 = vrot.lane.b32.xlu0 %v8785_v29, %s8860_s6 }
 0xef0   :  { %v8787_v21 = vpop.eup %8786 }
 0xef1   :  { %5131 = vrot.lane.b32.xlu1 %v8787_v21, %s8860_s6  ;;  %v8789_v14 = vpop.eup %8788 }
 0xef2   :  { %v5220_v5 = vadd.f32 1.0, %v8789_v14  ;;  %v8791_v8 = vpop.eup %8790 }
 0xef3   :  { %v5125_v18 = vadd.f32 1.0, %v8791_v8 }
 0xef4   :  { %8792 = vrcp.f32 %v5220_v5 }
 0xef5   :  { %8794 = vrcp.f32 %v5125_v18 }
 0xefe   :  { %v8793_v16 = vpop.eup %8792 }
 0xeff   :  { %v8795_v26 = vpop.eup %8794  ;;  %v5227_v39 = vmul.f32 %v8793_v16, %v5225_v7 }
 0xf00   :  { %v5129_v48 = vmul.f32 %v8795_v26, %v10488_v51 }
 0xf5b   :  { %v5230_v24 = vpop.permute.xlu0 %5229 }
 0xf5c   :  { %v5232_v25 = vmul.f32 %v8793_v16, %v5230_v24 }
 0xf5e   :  { %5234 = vrot.lane.b32.xlu0 %v5232_v25, %s8861_s26 }
 0xf63   :  { %v5132_v3 = vpop.permute.xlu1 %5131 }
 0xf64   :  { %v5134_v6 = vmul.f32 %v8795_v26, %v5132_v3 }
 0xf66   :  { %5136 = vrot.lane.b32.xlu1 %v5134_v6, %s8861_s26 }
 0xfd0   :  { %v5235_v9 = vpop.permute.xlu0 %5234 }
 0xfd1   :  { %v10529_v20 = vadd.f32 %v5235_v9, %v5227_v39 }
 0xfd3   :  { %8796 = vtanh.f32 %v10529_v20  ;;  %v5501_v6 = vrot.slane %v10529_v20, 6 }
 0xfd8   :  { %v5137_v30 = vpop.permute.xlu1 %5136 }
 0xfd9   :  { %v10533_v54 = vadd.f32 %v5137_v30, %v5129_v48 }
 0xfdb   :  { %8798 = vtanh.f32 %v10533_v54 }
 0xfdd   :  { %v8797_v32 = vpop.eup %8796 }
 0xfde   :  { %5240 = vrot.lane.b32.xlu0 %v8797_v32, %s8860_s6 }
 0xfe5   :  { %v8799_v23 = vpop.eup %8798 }
 0xfe6   :  { %5142 = vrot.lane.b32.xlu1 %v8799_v23, %s8860_s6 }
0x1050   :  { %v5241_v62 = vpop.permute.xlu0 %5240 }
0x1051   :  { %v5243_v38 = vmul.f32 %v8793_v16, %v5241_v62 }
0x1053   :  { %5245 = vrot.lane.b32.xlu0 %v5243_v38, %s8861_s26 }
0x1058   :  { %v5143_v19 = vpop.permute.xlu1 %5142 }
0x1059   :  { %v10539_v34 = vmul.f32 %v8795_v26, %v5143_v19 }
0x105b   :  { %5320 = vrot.lane.b32.xlu1 %v10539_v34, %s8861_s26 }
0x10c5   :  { %v5246_v37 = vpop.permute.xlu0 %5245 }
0x10c6   :  { %7980 = vmatmul.mubr.msk.f32.vlgmr.msra.gmra.mrb[50].mxu1 %vm92_vm0, %v5246_v37  ;;  %8002 = vmatmul.mubr.msk.f32.vlgmr.msra.gmra.mrb[60].mxu0 %vm92_vm0, %v5246_v37 }
0x10c7   :  { %8253 = vmatpush3.bf16.msra.mxu1 %v10340_v40  ;;  %7990 = vmatprep.mubr.msk.f32.mxu1 %vm8858_vm1, %v8859_v42 }
0x10c8   :  { %8254 = vmatprep.subr.bf16.mxu1 %v8857_v36  ;;  %8265 = vmatpush3.bf16.msra.mxu0 %v10329_v15 }
0x10c9   :  { %8266 = vmatprep.subr.bf16.mxu0 %v8857_v36  ;;  %8012 = vmatprep.mubr.msk.f32.mxu0 %vm8858_vm1, %v8859_v42 }
0x10cb   :  { %8256 = vmatpush3.bf16.msra.mxu1 %v10353_v44 }
0x10cc   :  { %8275 = vmatprep.subr.bf16.mxu1 %v8857_v36  ;;  %8268 = vmatpush3.bf16.msra.mxu0 %v10349_v43  ;;  %v5778_v43 = vld [vmem:[%s10783_s14] sm:$0xff]  ;;  %s8863_s14 = smov 2  }
0x10cd   :  { %v10570_v15 = vpop.permute.xlu1 %5320  ;;  %8269 = vmatprep.subr.bf16.mxu0 %v8857_v36  ;;  %v10593_v51 = vpack.c.bf16 %v5779_v49, %v5778_v43 }
0x10ce   :  { %7991 = vmatmul.mubr.msk.f32.vlgmr.msra.gmra.mrb[50].mxu1 %vm92_vm0, %v10570_v15 }
0x10cf   :  { %8277 = vmatpush3.bf16.msra.mxu1 %v10560_v13  ;;  %8034 = vmatprep.mubr.msk.f32.mxu1 %vm8858_vm1, %v8859_v42 }
0x10d0   :  { %8278 = vmatprep.subr.bf16.mxu1 %v8857_v36 }
0x10d3   :  { %8280 = vmatpush3.bf16.msra.mxu1 %v10576_v60 }
0x10d4   :  { %8281 = vmatprep.subr.bf16.mxu1 %v8857_v36 }
0x10d6   :  { %8035 = vmatmul.mubr.msk.f32.vlgmr.msra.gmra.mrb[52].mxu1 %vm92_vm0, %v10421_v31 }
0x10d7   :  { %8041 = vmatprep.mubr.msk.f32.mxu1 %vm8858_vm1, %v8859_v42  ;;  %8283 = vmatpush3.bf16.msra.mxu1 %v10593_v51 }
0x10d8   :  { %8290 = vmatprep.subr.bf16.mxu1 %v8857_v36 }
0x1199   :  { %v5485_v52 = vpop.f32.mrb[60].mxu0 }
0x119a   :  { %v5490_v55 = vrot.slane %v5485_v52, 6  ;;  %v8003_v31 = vpop.f32.mrb[61].mxu0 }
0x119c   :  { %v5492_v12 = vadd.f32 %v5490_v55, %v10313_v27 }
0x119e   :  { %8800 = vtanh.f32 %v5492_v12  ;;  %v7180_v2 = vmul.f32 -1.442695, %v5492_v12 }
0x11a1   :  { %v5390_v56 = vpop.f32.mrb[50].mxu1 }
0x11a2   :  { %v8346_v57 = vadd.f32 %v10386_v50, %v5390_v56  ;;  %v7992_v58 = vpop.f32.mrb[51].mxu1 }
0x11a4   :  { %8802 = vtanh.f32 %v8346_v57  ;;  %v7178_v29 = vmul.f32 -1.442695, %v8346_v57 }
0x11a5   :  { %8804 = vpow2.f32 %v7180_v2 }
0x11a6   :  { %8806 = vpow2.f32 %v7178_v29 }
0x11a8   :  { %v8801_v63 = vpop.eup %8800 }
0x11a9   :  { %v5773_v11 = vpop.f32.mrb[52].mxu1  ;;  %5505 = vrot.lane.b32.xlu0 %v8801_v63, %s8860_s6 }
0x11aa   :  { %v5774_v0 = vadd.f32 %v10602_v22, %v5773_v11  ;;  %v8036_v28 = vpop.f32.mrb[53].mxu1 }
0x11ac   :  { %v5777_v27 = vmax.f32 %v5774_v0, 0.0 }
0x11ae   :  { %v8803_v1 = vpop.eup %8802  ;;  %8042 = vmatmul.mubr.msk.f32.vlgmr.msra.gmra.mrb[54].mxu1 %vm5787_vm7, %v5777_v27 }
0x11af   :  { %5404 = vrot.lane.b32.xlu1 %v8803_v1, %s8860_s6  ;;  %8292 = vmatpush3.bf16.msra.mxu1 %v10593_v51  ;;  %v8805_v21 = vpop.eup %8804 }
0x11b0   :  { %8059 = vmatprep.mubr.msk.f32.mxu1 %vm8858_vm1, %v8859_v42  ;;  %8293 = vmatprep.subr.bf16.mxu1 %v8857_v36  ;;  %v5496_v4 = vadd.f32 1.0, %v8805_v21  ;;  %v8807_v33 = vpop.eup %8806  ;;  %v7186_v21 = vld [vmem:[#allocation3] ss:$0 sm:$0xff] }
0x11b1   :  { %v5398_v14 = vadd.f32 1.0, %v8807_v33 }
0x11b2   :  { %8808 = vrcp.f32 %v5496_v4 }
0x11b3   :  { %8810 = vrcp.f32 %v5398_v14 }
0x11bc   :  { %v8809_v5 = vpop.eup %8808 }
0x11bd   :  { %v8811_v16 = vpop.eup %8810  ;;  %v5503_v7 = vmul.f32 %v8809_v5, %v5501_v6 }
0x11be   :  { %v5402_v48 = vmul.f32 %v8811_v16, %v10533_v54 }
0x121b   :  { %v5506_v8 = vpop.permute.xlu0 %5505 }
0x121c   :  { %v5508_v18 = vmul.f32 %v8809_v5, %v5506_v8 }
0x121e   :  { %5510 = vrot.lane.b32.xlu0 %v5508_v18, %s8861_s26 }
0x1221   :  { %v5405_v24 = vpop.permute.xlu1 %5404 }
0x1222   :  { %v5407_v25 = vmul.f32 %v8811_v16, %v5405_v24 }
0x1224   :  { %5409 = vrot.lane.b32.xlu1 %v5407_v25, %s8861_s26 }
0x1281   :  { %v10614_v26 = vpop.f32.mrb[54].mxu1 }
0x1282   :  { %v8043_v3 = vpop.f32.mrb[55].mxu1 }
0x1290   :  { %v5511_v39 = vpop.permute.xlu0 %5510 }
0x1291   :  { %v5513_v9 = vadd.f32 %v5511_v39, %v5503_v7 }
0x1293   :  { %8812 = vtanh.f32 %v5513_v9 }
0x1296   :  { %v5410_v30 = vpop.permute.xlu1 %5409 }
0x1297   :  { %v10618_v32 = vadd.f32 %v5410_v30, %v5402_v48 }
0x1299   :  { %8814 = vtanh.f32 %v10618_v32 }
0x129d   :  { %v8813_v23 = vpop.eup %8812 }
0x129e   :  { %5516 = vrot.lane.b32.xlu0 %v8813_v23, %s8860_s6 }
0x12a3   :  { %v8815_v62 = vpop.eup %8814 }
0x12a4   :  { %5415 = vrot.lane.b32.xlu1 %v8815_v62, %s8860_s6 }
0x1310   :  { %v5517_v38 = vpop.permute.xlu0 %5516 }
0x1311   :  { %v5519_v19 = vmul.f32 %v8809_v5, %v5517_v38 }
0x1313   :  { %v5521_v20 = vrot.slane %v5519_v19, 2 }
0x1315   :  { %5522 = vrot.lane.b32.xlu0 %v5521_v20, %s8861_s26 }
0x1316   :  { %v5416_v37 = vpop.permute.xlu1 %5415 }
0x1317   :  { %v10624_v41 = vmul.f32 %v8811_v16, %v5416_v37 }
0x1319   :  { %5597 = vrot.lane.b32.xlu1 %v10624_v41, %s8861_s26 }
0x1387   :  { %v5523_v54 = vpop.permute.xlu0 %5522 }
0x1388   :  { %8013 = vmatmul.mubr.msk.f32.vlgmr.msra.gmra.mrb[62].mxu0 %vm92_vm0, %v5523_v54 }
0x1389   :  { %8271 = vmatpush3.bf16.msra.mxu0 %v10340_v40  ;;  %8023 = vmatprep.mubr.msk.f32.mxu0 %vm8858_vm1, %v8859_v42 }
0x138a   :  { %8272 = vmatprep.subr.bf16.mxu0 %v8857_v36 }
0x138b   :  { %v10635_v10 = vpop.permute.xlu1 %5597 }
0x138d   :  { %8274 = vmatpush3.bf16.msra.mxu0 %v10353_v44 }
0x138e   :  { %8284 = vmatprep.subr.bf16.mxu0 %v8857_v36 }
0x1390   :  { %8024 = vmatmul.mubr.msk.f32.vlgmr.msra.gmra.mrb[62].mxu0 %vm92_vm0, %v10635_v10 }
0x1391   :  { %8286 = vmatpush3.bf16.msra.mxu0 %v10560_v13  ;;  %8052 = vmatprep.mubr.msk.f32.mxu0 %vm8858_vm1, %v8859_v42 }
0x1392   :  { %8287 = vmatprep.subr.bf16.mxu0 %v8857_v36 }
0x1395   :  { %8289 = vmatpush3.bf16.msra.mxu0 %v10576_v60 }
0x1396   :  { %8299 = vmatprep.subr.bf16.mxu0 %v8857_v36 }
0x1398   :  { %8053 = vmatmul.mubr.msk.f32.vlgmr.msra.gmra.mrb[64].mxu0 %vm92_vm0, %v10466_v53 }
0x1399   :  { %8301 = vmatpush3.bf16.msra.mxu0 %v10593_v51  ;;  %8077 = vmatprep.mubr.msk.f32.mxu0 %vm8858_vm1, %v8859_v42 }
0x139a   :  { %8302 = vmatprep.subr.bf16.mxu0 %v8857_v36 }
0x1463   :  { %v5667_v40 = vpop.f32.mrb[62].mxu0 }
0x1464   :  { %v8347_v44 = vadd.f32 %v10386_v50, %v5667_v40  ;;  %v8025_v35 = vpop.f32.mrb[63].mxu0 }
0x1466   :  { %8816 = vtanh.f32 %v8347_v44  ;;  %v7183_v50 = vmul.f32 -1.442695, %v8347_v44  ;;  %v5858_v44 = vadd.f32 %v7186_v21, %v10614_v26 }
0x1468   :  { %8818 = vpow2.f32 %v7183_v50 }
0x146b   :  { %v5927_v47 = vpop.f32.mrb[64].mxu0 }
0x146c   :  { %v5928_v43 = vadd.f32 %v10602_v22, %v5927_v47  ;;  %v8054_v49 = vpop.f32.mrb[65].mxu0 }
0x146e   :  { %v5931_v52 = vmax.f32 %v5928_v43, 0.0 }
0x1470   :  { %v8817_v55 = vpop.eup %8816  ;;  %8060 = vmatmul.mubr.msk.f32.vlgmr.msra.gmra.mrb[56].mxu1 %vm5787_vm7, %v5931_v52 }
0x1471   :  { %8295 = vmatpush3.bf16.msra.mxu1 %v10560_v13  ;;  %5681 = vrot.lane.b32.xlu0 %v8817_v55, %s8860_s6 }
0x1472   :  { %8296 = vmatprep.subr.bf16.mxu1 %v8857_v36  ;;  %8070 = vmatprep.mubr.msk.f32.mxu1 %vm8858_vm1, %v8859_v42  ;;  %v8819_v53 = vpop.eup %8818 }
0x1473   :  { %v5675_v31 = vadd.f32 1.0, %v8819_v53 }
0x1475   :  { %8298 = vmatpush3.bf16.msra.mxu1 %v10576_v60  ;;  %8820 = vrcp.f32 %v5675_v31 }
0x1476   :  { %8308 = vmatprep.subr.bf16.mxu1 %v8857_v36 }
0x1478   :  { %8071 = vmatmul.mubr.msk.f32.vlgmr.msra.gmra.mrb[58].mxu1 %vm92_vm0, %v10511_v61 }
0x1479   :  { %8310 = vmatpush3.bf16.msra.mxu1 %v10593_v51  ;;  %8095 = vmatprep.mubr.msk.f32.mxu1 %vm8858_vm1, %v8859_v42 }
0x147a   :  { %8311 = vmatprep.subr.bf16.mxu1 %v8857_v36 }
0x147f   :  { %v8821_v12 = vpop.eup %8820 }
0x1480   :  { %v5679_v27 = vmul.f32 %v8821_v12, %v10618_v32 }
0x14e3   :  { %v5682_v56 = vpop.permute.xlu0 %5681 }
0x14e4   :  { %v5684_v57 = vmul.f32 %v8821_v12, %v5682_v56 }
0x14e6   :  { %5686 = vrot.lane.b32.xlu1 %v5684_v57, %s8861_s26  ;;  %v8867_v57 = vmov 1  }
0x14e7   :  { %8377 = vset.pattern.permute.xlu1 %v8867_v57 }
0x1543   :  { %v6001_v58 = vpop.f32.mrb[56].mxu1 }
0x1544   :  { %v8061_v63 = vpop.f32.mrb[57].mxu1  ;;  %v6002_v4 = vadd.f32 %v7186_v21, %v6001_v58 }
0x154b   :  { %v6071_v61 = vpop.f32.mrb[58].mxu1 }
0x154c   :  { %v6072_v11 = vadd.f32 %v10602_v22, %v6071_v61  ;;  %v8072_v0 = vpop.f32.mrb[59].mxu1 }
0x154d   :  { %v8869_v0 = vmov 3  }
0x154e   :  { %v6075_v28 = vmax.f32 %v6072_v11, 0.0  ;;  %v8868_v11 = vmov 2  }
0x1550   :  { %8078 = vmatmul.mubr.msk.f32.vlgmr.msra.gmra.mrb[66].mxu0 %vm5787_vm7, %v6075_v28  ;;  %v8870_v28 = vmov 4  }
0x1551   :  { %8304 = vmatpush3.bf16.msra.mxu0 %v10560_v13  ;;  %8088 = vmatprep.mubr.msk.f32.mxu0 %vm8858_vm1, %v8859_v42 }
0x1552   :  { %8305 = vmatprep.subr.bf16.mxu0 %v8857_v36 }
0x1555   :  { %8307 = vmatpush3.bf16.msra.mxu0 %v10576_v60 }
0x1556   :  { %8317 = vmatprep.subr.bf16.mxu0 %v8857_v36 }
0x1558   :  { %8089 = vmatmul.mubr.msk.f32.vlgmr.msra.gmra.mrb[68].mxu0 %vm92_vm0, %v10570_v15  ;;  %v5687_v1 = vpop.permute.xlu1 %5686 }
0x1559   :  { %v5689_v2 = vadd.f32 %v5687_v1, %v5679_v27  ;;  %8319 = vmatpush3.bf16.msra.mxu0 %v10593_v51  ;;  %8113 = vmatprep.mubr.msk.f32.mxu0 %vm8858_vm1, %v8859_v42  ;;  %v8871_v27 = vmov 5   ;;  %v6670_v1 = vld [vmem:[%s10784_s16] sm:$0xff] }
0x155a   :  { %8320 = vmatprep.subr.bf16.mxu0 %v8857_v36 }
0x155b   :  { %8822 = vtanh.f32 %v5689_v2  ;;  %v6671_v2 = vld [vmem:[%s10784_s16 + $0x8] sm:$0xff] }
0x1565   :  { %v8823_v29 = vpop.eup %8822 }
0x1566   :  { %5692 = vrot.lane.b32.xlu0 %v8823_v29, %s8860_s6  ;;  %v6672_v29 = vld [vmem:[%s10784_s16 + $0x10] sm:$0xff] }
0x156a   :  { %6587 = vrot.lane.b32.xlu0 %v6002_v4, %s8862_s13  ;;  %v6673_v4 = vld [vmem:[%s10784_s16 + $0x18] sm:$0xff] }
0x15d8   :  { %v5693_v33 = vpop.permute.xlu0 %5692 }
0x15d9   :  { %v10684_v14 = vmul.f32 %v8821_v12, %v5693_v33  ;;  %v8333_v33 = vpack.c.bf16 %v6673_v4, %v6672_v29 }
0x15db   :  { %6438 = vrot.lane.b32.xlu1 %v10684_v14, %s8861_s26  ;;  %s8864_s26 = smov 3  }
0x1623   :  { %v6145_v15 = vpop.f32.mrb[66].mxu0 }
0x1624   :  { %v6146_v5 = vadd.f32 %v7186_v21, %v6145_v15  ;;  %v8079_v8 = vpop.f32.mrb[67].mxu0  ;;  %v6674_v15 = vld [vmem:[%s10784_s16 + $0x20] sm:$0xff] }
0x1626   :  { %6591 = vrot.lane.b32.xlu1 %v6146_v5, %s8863_s14  ;;  %v6675_v5 = vld [vmem:[%s10784_s16 + $0x28] sm:$0xff] }
0x1627   :  { %v8336_v8 = vpack.c.bf16 %v6675_v5, %v6674_v15 }
0x162b   :  { %v6215_v18 = vpop.f32.mrb[68].mxu0 }
0x162c   :  { %v6216_v16 = vadd.f32 %v10602_v22, %v6215_v18  ;;  %v8090_v24 = vpop.f32.mrb[69].mxu0  ;;  %v6676_v18 = vld [vmem:[%s10784_s16 + $0x30] sm:$0xff] }
0x162e   :  { %v6219_v25 = vmax.f32 %v6216_v16, 0.0  ;;  %v6677_v16 = vld [vmem:[%s10784_s16 + $0x38] sm:$0xff] }
0x162f   :  { %v8339_v24 = vpack.c.bf16 %v6677_v16, %v6676_v18 }
0x1630   :  { %8096 = vmatmul.mubr.msk.f32.vlgmr.msra.gmra.mrb[60].mxu1 %vm5787_vm7, %v6219_v25 }
0x1631   :  { %8313 = vmatpush3.bf16.msra.mxu1 %v10560_v13  ;;  %8106 = vmatprep.mubr.msk.f32.mxu1 %vm8858_vm1, %v8859_v42 }
0x1632   :  { %8314 = vmatprep.subr.bf16.mxu1 %v8857_v36 }
0x1635   :  { %8316 = vmatpush3.bf16.msra.mxu1 %v10576_v60 }
0x1636   :  { %8326 = vmatprep.subr.bf16.mxu1 %v8857_v36 }
0x1638   :  { %8107 = vmatmul.mubr.msk.f32.vlgmr.msra.gmra.mrb[62].mxu1 %vm92_vm0, %v10635_v10  ;;  %v6588_v10 = vpop.permute.xlu0 %6587 }
0x1639   :  { %8328 = vmatpush3.bf16.msra.mxu1 %v10593_v51  ;;  %8131 = vmatprep.mubr.msk.f32.mxu1 %vm8858_vm1, %v8859_v42  ;;  %v6607_v35 = vsel %vm6606_vm8, %v5858_v44, %v6588_v10 }
0x163a   :  { %8329 = vmatprep.subr.bf16.mxu1 %v8857_v36 }
0x164d   :  { %v6439_v51 = vpop.permute.xlu1 %6438 }
0x1698   :  { %v6592_v40 = vpop.permute.xlu1 %6591 }
0x1699   :  { %v6609_v43 = vsel %vm6608_vm9, %v6607_v35, %v6592_v40 }
0x1703   :  { %v6289_v3 = vpop.f32.mrb[60].mxu1 }
0x1704   :  { %v6290_v6 = vadd.f32 %v7186_v21, %v6289_v3  ;;  %v8097_v7 = vpop.f32.mrb[61].mxu1 }
0x1706   :  { %6595 = vrot.lane.b32.xlu0 %v6290_v6, %s8864_s26 }
0x170b   :  { %v6359_v39 = vpop.f32.mrb[62].mxu1 }
0x170c   :  { %v6360_v9 = vadd.f32 %v10602_v22, %v6359_v39  ;;  %v8108_v48 = vpop.f32.mrb[63].mxu1 }
0x170e   :  { %v6363_v30 = vmax.f32 %v6360_v9, 0.0 }
0x1710   :  { %8114 = vmatmul.mubr.msk.f32.vlgmr.msra.gmra.mrb[70].mxu0 %vm5787_vm7, %v6363_v30 }
0x1711   :  { %8322 = vmatpush3.bf16.msra.mxu0 %v10560_v13  ;;  %8124 = vmatprep.mubr.msk.f32.mxu0 %vm8858_vm1, %v8859_v42 }
0x1712   :  { %8323 = vmatprep.subr.bf16.mxu0 %v8857_v36 }
0x1715   :  { %8325 = vmatpush3.bf16.msra.mxu0 %v10576_v60 }
0x1718   :  { %8125 = vmatmul.mubr.msk.f32.vlgmr.msra.gmra.mrb[72].mxu0 %vm92_vm0, %v6439_v51 }
0x17e3   :  { %v6433_v32 = vpop.f32.mrb[70].mxu0 }
0x17e4   :  { %v6434_v23 = vadd.f32 %v7186_v21, %v6433_v32  ;;  %v8115_v62 = vpop.f32.mrb[71].mxu0 }
0x17e6   :  { %6599 = vrot.lane.b32.xlu1 %v6434_v23, %s8865_s7 }
0x17eb   :  { %v6508_v38 = vpop.f32.mrb[72].mxu0 }
0x17ec   :  { %v6509_v19 = vadd.f32 %v10602_v22, %v6508_v38  ;;  %v8126_v20 = vpop.f32.mrb[73].mxu0  ;;  %v6596_v22 = vpop.permute.xlu0 %6595 }
0x17ed   :  { %v6611_v49 = vsel %vm6610_vm10, %v6609_v43, %v6596_v22 }
0x17ee   :  { %v6512_v13 = vmax.f32 %v6509_v19, 0.0 }
0x17f0   :  { %8132 = vmatmul.mubr.msk.f32.vlgmr.msra.gmra.mrb[64].mxu1 %vm5787_vm7, %v6512_v13 }
0x17f1   :  { %8150 = vmatprep.mubr.msk.f32.mxu1 %vm8858_vm1, %v8859_v42 }
0x1858   :  { %v6600_v47 = vpop.permute.xlu1 %6599 }
0x1859   :  { %v6613_v42 = vsel %vm6612_vm11, %v6611_v49, %v6600_v47 }
0x18c3   :  { %v6582_v37 = vpop.f32.mrb[64].mxu1 }
0x18c4   :  { %v6583_v60 = vadd.f32 %v7186_v21, %v6582_v37  ;;  %v8133_v54 = vpop.f32.mrb[65].mxu1  ;;  %v8330_v21 = vpack.c.bf16 %v6671_v2, %v6670_v1 }
0x18c6   :  { %6603 = vrot.lane.b32.xlu0 %v6583_v60, %s8866_s20  ;;  %8331 = vmatpush3.bf16.msra.mxu1 %v8330_v21 }
0x18c7   :  { %8332 = vmatprep.subr.bf16.mxu1 %v8857_v36 }
0x18ca   :  { %8334 = vmatpush3.bf16.msra.mxu1 %v8333_v33 }
0x18cb   :  { %8335 = vmatprep.subr.bf16.mxu1 %v8857_v36 }
0x18ce   :  { %8337 = vmatpush3.bf16.msra.mxu1 %v8336_v8 }
0x18cf   :  { %8338 = vmatprep.subr.bf16.mxu1 %v8857_v36 }
0x18d2   :  { %8340 = vmatpush3.bf16.msra.mxu1 %v8339_v24 }
0x1938   :  { %v6604_v52 = vpop.permute.xlu0 %6603 }
0x1939   :  { %v6615_v55 = vsel %vm6614_vm12, %v6613_v42, %v6604_v52 }
0x193a   :  { %v6617_v50 = vsel %vm6616_vm13, %v6615_v55, -inf }
0x193b   :  { %6618 = vmax.xlane.f32.xlu1 %v6617_v50 }
0x19c8   :  { %v6619_v53 = vpop.xlane.xlu1 %6618 }
0x19c9   :  { %v6620_v31 = vsub.f32 %v6615_v55, %v6619_v53 }
0x19cb   :  { %v6621_v12 = vmul.f32 1.442695, %v6620_v31 }
0x19cd   :  { %8824 = vpow2.f32 %v6621_v12 }
0x19d7   :  { %v8825_v26 = vpop.eup %8824 }
0x19d8   :  { %v6623_v56 = vsel %vm6616_vm13, %v8825_v26, 0.0 }
0x19d9   :  { %6624 = vadd.xlane.f32.xlu0 %v6623_v56 }
0x1a66   :  { %v6625_v58 = vpop.xlane.xlu0 %6624 }
0x1a67   :  { %8826 = vrcp.f32 %v6625_v58 }
0x1a71   :  { %v8827_v63 = vpop.eup %8826 }
0x1a72   :  { %v6627_v61 = vmul.f32 %v8827_v63, %v8825_v26 }
0x1a74   :  { %6636 = vperm.xlu1 %8377, %v6627_v61   ;;  %6630 = vperm.xlu0 %8376, %v6627_v61  }
0x1a78   :  { %8378 = vset.pattern.permute.xlu1 %v8868_v11  ;;  %8379 = vset.pattern.permute.xlu0 %v8869_v0 }
0x1a79   :  { %6642 = vperm.xlu1 %8378, %v6627_v61   ;;  %6648 = vperm.xlu0 %8379, %v6627_v61  }
0x1a7d   :  { %8380 = vset.pattern.permute.xlu1 %v8870_v28  ;;  %8382 = vset.pattern.permute.xlu0 %v8871_v27 }
0x1a7e   :  { %6654 = vperm.xlu1 %8380, %v6627_v61  }
0x1a82   :  { %8381 = vset.pattern.permute.xlu1 %v8871_v27 }
0x1a83   :  { %6660 = vperm.xlu1 %8381, %v6627_v61  }
0x1af3   :  { %v6637_v25 = vpop.permute.xlu1 %6636  ;;  %v6631_v3 = vpop.permute.xlu0 %6630 }
0x1af4   :  { %v6639_v6 = vmul.f32 %v6637_v25, %v10449_v45  ;;  %v6633_v7 = vmul.f32 %v6631_v3, %v10403_v17  ;;  %v6798_v17 = vld [vmem:[%s10773_s4] ss:$0 sm:$0xff]  ;;  %s8872_s4 = smov [#allocation4]  }
0x1af5   :  { %v450_v45 = vadd.f32 %v6798_v17, %v10099_v46 }
0x1af6   :  { %v6640_v9 = vadd.f32 %v6639_v6, %v6633_v7 }
0x1af8   :  { %v6643_v39 = vpop.permute.xlu1 %6642  ;;  %v6649_v30 = vpop.permute.xlu0 %6648 }
0x1af9   :  { %v6645_v48 = vmul.f32 %v6643_v39, %v10494_v59  ;;  %v6651_v32 = vmul.f32 %v6649_v30, %v10539_v34  ;;  %v453_v59 = vmax.f32 %v450_v45, 0.0 }
0x1afb   :  { %v6646_v51 = vadd.f32 %v6645_v48, %v6640_v9 }
0x1afd   :  { %v6655_v23 = vpop.permute.xlu1 %6654  ;;  %v6652_v62 = vadd.f32 %v6651_v32, %v6646_v51 }
0x1afe   :  { %v6657_v38 = vmul.f32 %v6655_v23, %v10624_v41  ;;  %v7198_v41 = vld [vmem:[%s10785_s17] ss:$0 sm:$0xff] }
0x1b00   :  { %v6658_v19 = vadd.f32 %v6657_v38, %v6652_v62 }
0x1b02   :  { %v6661_v36 = vpop.permute.xlu1 %6660 }
0x1b03   :  { %v6663_v20 = vmul.f32 %v6661_v36, %v10684_v14 }
0x1b05   :  { %v6664_v13 = vadd.f32 %v6663_v20, %v6658_v19 }
0x1b07   :  { %6666 = vrot.lane.b32.xlu0 %v6664_v13, %s8860_s6  ;;  %s6773_s6 = sshll.u32 %s8872_s4, 4  ;;  %s6774_s6 = int_to_ptr.vmem [resolvable:$true] %s6773_s6 }
0x1b08   :  { %s8832_s19 = scalar_lea.vmem %s6774_s6, 32  ;;  %p8837_p1 = scmp.lt.s32.totalorder %s6774_s6, %s6774_s6 }
0x1b09   :  { %p8833_p0 = scmp.ne.s32.totalorder %s6774_s6, %s8832_s19  ;;  %p8838_p2 = scmp.lt.s32.totalorder %s8832_s19, %s8832_s19 }
0x1b0b   :  { %p8839_p3 = por %p8838_p2, %p8837_p1 }
0x1b0d   :  { %p8840_p4 = pnand %p8839_p3, %p8833_p0 }
0x1b79   :  { %v6667_v34 = vpop.permute.xlu0 %6666 }
0x1b7a   :  { %v6669_v37 = vsel %vm92_vm0, %v453_v59, %v6667_v34 }
0x1b7b   :  { %8151 = vmatmul.mubr.msk.f32.vlgmr.msra.gmra.mrb[66].mxu1 %vm6685_vm14, %v6669_v37 }
0x1c4e   :  { %v6755_v14 = vpop.f32.mrb[66].mxu1 }
0x1c4f   :  { %v6756_v60 = vadd.f32 %v7198_v41, %v6755_v14  ;;  %v8152_v54 = vpop.f32.mrb[67].mxu1 }
0x1c51   :  { %v7200_v10 = vmul.f32 -1.442695, %v6756_v60 }
0x1c53   :  { %8828 = vpow2.f32 %v7200_v10 }
0x1c5d   :  { %v8829_v40 = vpop.eup %8828 }
0x1c5e   :  { %v6762_v44 = vadd.f32 1.0, %v8829_v40 }
0x1c60   :  { %8830 = vrcp.f32 %v6762_v44 }
0x1c6a   :  { %v8831_v46 = vpop.eup %8830 }
0x1c6b   :  { %6766 = vst.msk [vmem:[#allocation4] sm:$0x3] %vm6765_vm15, %v8831_v46 }
0x1c6c   :  { %8843 = shalt.err (!%p8840_p4)
}
0x1c6d   :  { %s8844_s13 = scalar_lea.hbm %s10786_s18, 32 }
0x1c6e   :  { %p8845_p5 = scmp.ne.s32.totalorder %s10786_s18, %s8844_s13  ;;  %p8848_p6 = scmp.lt.u32.totalorder %s8844_s13, %s10786_s18 }
0x1c70   :  { %p8850_p7 = pnand %p8848_p6, %p8845_p5 }
0x1c72   :  { %8853 = shalt.err (!%p8850_p7)
}
0x1c73   :  { %6776 = dma.vmem_to_hbm [thread:$0]  %s6774_s6, 32, %s10786_s18, [#allocation5]  }
0x1c74   :  { %8854 = dma.done.wait [#allocation5], 32  }
0x1c75   :  { %8855 = vsyncadd [#allocation5], 4294967264 }
0x1c76   :  { %6780 = vsyncpa [#allocation5], 1 }

</bundles_post_ra>
